<compile_context>
chip_gen: v7x
topology: tpu7x:2x2x1
jax: 0.10.0
libtpu: 0.0.40
codegen_flags: <defaults>
</compile_context>

<pallas_src>
import functools

import jax
import jax.numpy as jnp
from jax.experimental import pallas as pl
from jax.experimental.pallas import tpu as pltpu

_BN_EPS = 1e-5


def _round_up(x, m):
    return (x + m - 1) // m * m


def _vmem_budget_bytes():
    """3/4 of physical VMEM (headroom for compiler scratch / weight buffers):
    ~48 MiB on v7x, ~96 MiB on v5e/v6e.  Falls back to 96 MiB if the query is
    unavailable."""
    cap = 128 * 1024 * 1024
    try:
        cap = int(getattr(pltpu.get_tpu_info(), "vmem_capacity_bytes", cap))
    except Exception:
        pass
    return max(32 << 20, min(cap * 3 // 4, 100 << 20))


def _choose_block_h(H, W, Cp, halo, budget_bytes, target_flat_rows=4096):
    """Largest row tile that divides H, is >= halo, targets ~4096-row matmuls
    and whose per-step working set (~24 B per W*Cp element: bf16 in/out double
    buffers + bf16 taps + f32 intermediates) fits the VMEM budget."""
    per_row = W * Cp * 24
    cap = min(H,
              max(1, target_flat_rows // W),
              max(1, (budget_bytes // 2) // per_row))
    for th in range(max(cap, min(halo, H)), 0, -1):
        if H % th == 0 and th >= halo:
            return th
    return H


# --------------------------------------------------------------------------- #
# Kernel
# --------------------------------------------------------------------------- #
def _nb1d_kernel(x_ref, x_hbm_ref,
                 w1a_ref, b1a_ref, w1b_ref, sh1_ref,
                 w2a_ref, b2a_ref, w2b_ref, sh2_ref,
                 out_ref, top_buf, bot_buf, sem,
                 *, H, W, TH, dilation, compute_dtype):
    n = pl.program_id(0)            # batch index
    i = pl.program_id(1)            # row-tile index
    halo = dilation + 1             # rows of context needed above / below tile
    E = TH + 2 * halo               # rows in the halo-extended tile
    Cp = x_ref.shape[-1]
    r0 = i * TH                     # first image row of this tile

    # ---- halo DMAs (start ASAP).  Offsets are clamped into the image; rows
    #      that fall outside the image are zero-masked below, which reproduces
    #      the convs' zero padding at the top / bottom of the image. -----------
    top_start = jnp.maximum(r0 - halo, 0)
    bot_start = jnp.minimum(r0 + TH, H - halo)
    top_cp = pltpu.make_async_copy(
        x_hbm_ref.at[n, pl.ds(top_start, halo), :, :], top_buf, sem.at[0])
    bot_cp = pltpu.make_async_copy(
        x_hbm_ref.at[n, pl.ds(bot_start, halo), :, :], bot_buf, sem.at[1])
    top_cp.start()
    bot_cp.start()

    # ---- in-kernel coordinates (replaces the old lane-padded wcol input) ----
    col = jax.lax.broadcasted_iota(jnp.int32, (E, W, 1), 1).reshape(E * W, 1)
    row = jax.lax.broadcasted_iota(jnp.int32, (E, W, 1), 0).reshape(E * W, 1)
    grow = row + (r0 - halo)                  # global image row of each flat row
    in_image = (grow >= 0) & (grow < H)

    def shift_rows(t, s):
        """z[p] = t[p - s] with zero fill; s is a static python int (may be <0)."""
        zeros = jnp.zeros((abs(s), t.shape[1]), t.dtype)
        if s > 0:
            return jnp.concatenate([zeros, t[:t.shape[0] - s]], axis=0)
        return jnp.concatenate([t[-s:], zeros], axis=0)

    def conv_h(t, w_ref, b, d):
        # (3,1) conv, padding (d,0), dilation (d,1): taps at rows h-d, h, h+d.
        # Taps are built and concatenated in compute_dtype (bf16) so the MXU
        # feed and the shifted copies stay half width; accumulation is f32.
        tb = t if t.dtype == compute_dtype else t.astype(compute_dtype)
        s = d * W
        taps = jnp.concatenate([shift_rows(tb, s), tb, shift_rows(tb, -s)],
                               axis=1)
        return jnp.dot(taps, w_ref[...], preferred_element_type=jnp.float32) + b

    def conv_w(t, w_ref, b, d, cols):
        # (1,3) conv, padding (0,d), dilation (1,d): taps at cols w-d, w, w+d.
        # Flat +-d shifts wrap across image-row boundaries; wrapped positions
        # are masked via the column coordinate (== the conv's zero padding).
        tb = t if t.dtype == compute_dtype else t.astype(compute_dtype)
        left = jnp.where(cols >= d, shift_rows(tb, d), 0.0)
        right = jnp.where(cols < W - d, shift_rows(tb, -d), 0.0)
        taps = jnp.concatenate([left, tb, right], axis=1)
        return jnp.dot(taps, w_ref[...], preferred_element_type=jnp.float32) + b

    # ---- assemble the halo-extended tile (bf16, lane-dense channels) --------
    top_cp.wait()
    bot_cp.wait()
    xc = x_ref[0].reshape(TH * W, Cp)                       # center rows (bf16)
    xe = jnp.concatenate([top_buf[...].reshape(halo * W, Cp), xc,
                          bot_buf[...].reshape(halo * W, Cp)], axis=0)
    xe = jnp.where(in_image, xe, 0.0)       # zero padding above / below image

    # conv1 branch: (3,1) -> ReLU -> (1,3)[bias+BN folded] -> ReLU  (dilation 1)
    t = jnp.maximum(conv_h(xe, w1a_ref, b1a_ref[...], 1), 0.0)
    t = jnp.maximum(conv_w(t, w1b_ref, sh1_ref[...], 1, col), 0.0)
    # Rows above/below the image must be zero before the dilated (3,1) conv:
    # this reproduces conv2's zero padding at image-boundary tiles.
    t = jnp.where(in_image, t, 0.0)
    # conv2 branch: (3,1) -> ReLU -> (1,3)[bias+BN folded]          (dilated)
    t = jnp.maximum(conv_h(t, w2a_ref, b2a_ref[...], dilation), 0.0)
    # Only the central TH rows are needed from here on (the (1,3) conv has no
    # row halo), so the last matmul and the store are interior-only.
    tc = t[halo * W:halo * W + TH * W]
    cc = col[halo * W:halo * W + TH * W]
    tc = conv_w(tc, w2b_ref, sh2_ref[...], dilation, cc)
    # Dropout2d == identity (eval).  Residual add + final ReLU, store in bf16.
    y = jnp.maximum(tc + xc.astype(jnp.float32), 0.0)
    out_ref[0] = y.reshape(TH, W, Cp).astype(out_ref.dtype)


# --------------------------------------------------------------------------- #
# Host-side parameter packing (padding, tap merging, bias + BN folding)
# --------------------------------------------------------------------------- #
def _bn_scale_shift(bn):
    scale = bn["gamma"] / jnp.sqrt(bn["var"] + _BN_EPS)
    shift = bn["beta"] - bn["mean"] * scale
    return scale, shift


def prepare_params(params, compute_dtype=jnp.bfloat16):
    """One-off packing: pad channels to a 128 multiple, stack the 3 taps along
    the contraction axis ((3,C,C) -> (3*Cp,Cp)) in compute_dtype, and fold the
    second conv bias + the branch BatchNorm affine into weights / f32 shifts.
    Call ONCE outside the jitted forward and pass the result in."""
    C = params["w1a"].shape[-1]
    Cp = _round_up(C, 128)

    def pack_w(w):                                   # (3, C, C) -> (3*Cp, Cp)
        w = jnp.pad(w, ((0, 0), (0, Cp - C), (0, Cp - C)))
        return w.reshape(3 * Cp, Cp).astype(compute_dtype)

    def pack_v(v):                                   # (1, C) -> (1, Cp) float32
        return jnp.pad(v.astype(jnp.float32), ((0, 0), (0, Cp - C)))

    s1, t1 = _bn_scale_shift(params["bn1"])
    s2, t2 = _bn_scale_shift(params["bn2"])
    return dict(
        w1a=pack_w(params["w1a"]), b1a=pack_v(params["b1a"]),
        w1b=pack_w(params["w1b"] * s1), sh1=pack_v(t1 + params["b1b"] * s1),
        w2a=pack_w(params["w2a"]), b2a=pack_v(params["b2a"]),
        w2b=pack_w(params["w2b"] * s2), sh2=pack_v(t2 + params["b2b"] * s2),
    )


# --------------------------------------------------------------------------- #
# Wrappers
# --------------------------------------------------------------------------- #
def nonbottleneck1d_nhwc(x_nhwc, packed, dilation, block_h=None):
    """NonBottleneck1dBlock forward on NHWC input (preferred layout: avoids the
    NCHW<->NHWC HBM transpose round trips).  `packed` = prepare_params(...).
    Returns bf16 (the kernel's I/O dtype)."""
    N, H, W, C = x_nhwc.shape
    Cp = packed["w1a"].shape[-1]
    io_dtype = packed["w1a"].dtype
    assert Cp == _round_up(C, 128)
    assert 0 < dilation < min(H, W)

    halo = dilation + 1
    budget = _vmem_budget_bytes()
    TH = _choose_block_h(H, W, Cp, halo, budget) if block_h is None else block_h
    assert H % TH == 0 and TH >= halo, (H, TH, halo)
    nt = H // TH

    # bf16 activation I/O (halves HBM DMA volume); pad channels only if needed.
    x = x_nhwc.astype(io_dtype)
    if Cp != C:
        x = jnp.pad(x, ((0, 0), (0, 0), (0, 0), (0, Cp - C)))

    kern = functools.partial(_nb1d_kernel, H=H, W=W, TH=TH, dilation=dilation,
                             compute_dtype=io_dtype)

    xspec = pl.BlockSpec((1, TH, W, Cp), lambda n, i: (n, i, 0, 0))
    # Grid-invariant (constant index_map) -> fetched once, not re-DMA'd per step.
    wspec = pl.BlockSpec((3 * Cp, Cp), lambda n, i: (0, 0))
    vspec = pl.BlockSpec((1, Cp), lambda n, i: (0, 0))

    out = pl.pallas_call(
        kern,
        out_shape=jax.ShapeDtypeStruct((N, H, W, Cp), io_dtype),
        grid_spec=pltpu.PrefetchScalarGridSpec(
            num_scalar_prefetch=0,
            grid=(N, nt),
            in_specs=[xspec,
                      pl.BlockSpec(memory_space=pl.ANY),  # same x, for halo DMA
                      wspec, vspec, wspec, vspec,
                      wspec, vspec, wspec, vspec],
            out_specs=xspec,
            scratch_shapes=[pltpu.VMEM((halo, W, Cp), io_dtype),
                            pltpu.VMEM((halo, W, Cp), io_dtype),
                            pltpu.SemaphoreType.DMA((2,))]),
        compiler_params=pltpu.CompilerParams(
            dimension_semantics=("parallel", "parallel"),
            vmem_limit_bytes=budget),
    )(x, x,
      packed["w1a"], packed["b1a"], packed["w1b"], packed["sh1"],
      packed["w2a"], packed["b2a"], packed["w2b"], packed["sh2"])

    return out[..., :C] if Cp != C else out


@functools.partial(jax.jit, static_argnums=(2, 3))
def nonbottleneck1d(x_nchw, packed, dilation, block_h=None):
    """NCHW convenience wrapper matching the PyTorch module layout.  Prefer
    nonbottleneck1d_nhwc in an NHWC network: each transpose here is a full
    activation HBM round trip outside the kernel."""
    x = jnp.transpose(x_nchw, (0, 2, 3, 1))
    out = nonbottleneck1d_nhwc(x, packed, dilation, block_h=block_h)
    return jnp.transpose(out, (0, 3, 1, 2))


# --------------------------------------------------------------------------- #
# Deterministic parameter init (raw, PyTorch-style) and pure-JAX reference
# --------------------------------------------------------------------------- #
def init_params(key, C):
    """Conv weights stored as (3, Cin, Cout), i.e. PyTorch weight[co, ci, k]
    transposed to [k, ci, co]; biases as (1, C); BN stored as raw stats."""
    ks = jax.random.split(key, 10)
    bound = (3.0 * C) ** -0.5

    def conv_w(k):
        return jax.random.uniform(k, (3, C, C), jnp.float32, -bound, bound)

    def conv_b(k):
        return jax.random.uniform(k, (1, C), jnp.float32, -bound, bound)

    def bn(k):
        kg, kb, km, kv = jax.random.split(k, 4)
        return dict(
            gamma=1.0 + 0.1 * jax.random.normal(kg, (1, C), jnp.float32),
            beta=0.1 * jax.random.normal(kb, (1, C), jnp.float32),
            mean=0.1 * jax.random.normal(km, (1, C), jnp.float32),
            var=1.0 + 0.1 * jnp.abs(jax.random.normal(kv, (1, C), jnp.float32)),
        )

    return dict(
        w1a=conv_w(ks[0]), b1a=conv_b(ks[1]), w1b=conv_w(ks[2]), b1b=conv_b(ks[3]),
        w2a=conv_w(ks[4]), b2a=conv_b(ks[5]), w2b=conv_w(ks[6]), b2b=conv_b(ks[7]),
        bn1=bn(ks[8]), bn2=bn(ks[9]),
    )


def reference(x_nchw, params, dilation):
    """Independent pure-JAX f32 reference (HIGHEST matmul precision), NCHW."""
    hi = jax.lax.Precision.HIGHEST
    x = jnp.transpose(x_nchw, (0, 2, 3, 1)).astype(jnp.float32)
    _, H, W, _ = x.shape

    def conv_h(inp, w, b, d):
        xp = jnp.pad(inp, ((0, 0), (d, d), (0, 0), (0, 0)))
        out = sum(jnp.einsum("nhwc,cd->nhwd", xp[:, k * d:k * d + H], w[k],
                             precision=hi) for k in range(3))
        return out + b

    def conv_w_(inp, w, b, d):
        xp = jnp.pad(inp, ((0, 0), (0, 0), (d, d), (0, 0)))
        out = sum(jnp.einsum("nhwc,cd->nhwd", xp[:, :, k * d:k * d + W], w[k],
                             precision=hi) for k in range(3))
        return out + b

    def bn(t, p):
        return (t - p["mean"]) / jnp.sqrt(p["var"] + _BN_EPS) * p["gamma"] + p["beta"]

    t = jax.nn.relu(conv_h(x, params["w1a"], params["b1a"], 1))
    t = jax.nn.relu(bn(conv_w_(t, params["w1b"], params["b1b"], 1), params["bn1"]))
    t = jax.nn.relu(conv_h(t, params["w2a"], params["b2a"], dilation))
    t = bn(conv_w_(t, params["w2b"], params["b2b"], dilation), params["bn2"])
    return jnp.transpose(jax.nn.relu(t + x), (0, 3, 1, 2))


if __name__ == "__main__":
    key = jax.random.PRNGKey(0)
    kx, kp = jax.random.split(key)

    N, C, H, W = 2, 8, 16, 16          # NCHW, matching the PyTorch module
    dilation = 2

    x = jax.random.normal(kx, (N, C, H, W), jnp.float32)
    params = init_params(kp, C)
    packed = prepare_params(params)    # one-off host-side packing, outside jit

    # block_h=8 -> two row tiles per image: exercises the interior halo-DMA
    # path as well as the top / bottom zero-padding masks.
    out = jax.block_until_ready(nonbottleneck1d(x, packed, dilation, 8))
    ref = reference(x, params, dilation)

    assert out.shape == (N, C, H, W)
    out_f32 = out.astype(jnp.float32)
    max_err = float(jnp.max(jnp.abs(out_f32 - ref)))
    # bf16 activations end-to-end (I/O + MXU operands) with f32 accumulation:
    # loosened tolerance vs. the full-f32 reference.
    assert jnp.allclose(out_f32, ref, atol=1e-1, rtol=5e-2), f"max_err={max_err}"

    # Auto tile selection (single-tile path here) must agree as well.
    out2 = jax.block_until_ready(nonbottleneck1d(x, packed, dilation, None))
    assert jnp.allclose(out2.astype(jnp.float32), ref, atol=1e-1, rtol=5e-2)

    print("KERNEL_OK")
</pallas_src>

<mosaic_0001>
module attributes {stable_mosaic.version = 11 : i64} {
  func.func @_nb1d_kernel(%arg0: i32, %arg1: i32, %arg2: memref<1x8x16x128xbf16, #tpu.memory_space<vmem>>, %arg3: memref<2x16x16x128xbf16, #tpu.memory_space<any>>, %arg4: memref<384x128xbf16, #tpu.memory_space<vmem>>, %arg5: memref<1x128xf32, #tpu.memory_space<vmem>>, %arg6: memref<384x128xbf16, #tpu.memory_space<vmem>>, %arg7: memref<1x128xf32, #tpu.memory_space<vmem>>, %arg8: memref<384x128xbf16, #tpu.memory_space<vmem>>, %arg9: memref<1x128xf32, #tpu.memory_space<vmem>>, %arg10: memref<384x128xbf16, #tpu.memory_space<vmem>>, %arg11: memref<1x128xf32, #tpu.memory_space<vmem>>, %arg12: memref<1x8x16x128xbf16, #tpu.memory_space<vmem>>, %arg13: memref<3x16x128xbf16, #tpu.memory_space<vmem>>, %arg14: memref<3x16x128xbf16, #tpu.memory_space<vmem>>, %arg15: memref<2x!tpu.dma_semaphore, #tpu.memory_space<semaphore_mem>>) attributes {dimension_semantics = [#tpu.dimension_semantics<parallel>, #tpu.dimension_semantics<parallel>], iteration_bounds = array<i64: 2, 2>, scalar_prefetch = 0 : i64, scratch_operands = 3 : i64, tpu.core_type = #tpu.core_type<tc>, window_params = [{transform_indices = @transform_0, window_bounds = array<i64: 1, 8, 16, 128>}, {}, {pipeline_mode = #tpu.pipeline_mode<synchronous>, transform_indices = @transform_2, window_bounds = array<i64: 384, 128>}, {pipeline_mode = #tpu.pipeline_mode<synchronous>, transform_indices = @transform_3, window_bounds = array<i64: 1, 128>}, {pipeline_mode = #tpu.pipeline_mode<synchronous>, transform_indices = @transform_4, window_bounds = array<i64: 384, 128>}, {pipeline_mode = #tpu.pipeline_mode<synchronous>, transform_indices = @transform_5, window_bounds = array<i64: 1, 128>}, {pipeline_mode = #tpu.pipeline_mode<synchronous>, transform_indices = @transform_6, window_bounds = array<i64: 384, 128>}, {pipeline_mode = #tpu.pipeline_mode<synchronous>, transform_indices = @transform_7, window_bounds = array<i64: 1, 128>}, {pipeline_mode = #tpu.pipeline_mode<synchronous>, transform_indices = @transform_8, window_bounds = array<i64: 384, 128>}, {pipeline_mode = #tpu.pipeline_mode<synchronous>, transform_indices = @transform_9, window_bounds = array<i64: 1, 128>}, {transform_indices = @transform_10, window_bounds = array<i64: 1, 8, 16, 128>}]} {
    %c8_i32 = arith.constant 8 : i32
    %0 = arith.muli %arg1, %c8_i32 : i32
    %c3_i32 = arith.constant 3 : i32
    %1 = arith.subi %0, %c3_i32 : i32
    %c0_i32 = arith.constant 0 : i32
    %2 = arith.maxsi %1, %c0_i32 : i32
    %c8_i32_0 = arith.constant 8 : i32
    %3 = arith.addi %0, %c8_i32_0 : i32
    %c13_i32 = arith.constant 13 : i32
    %4 = arith.minsi %3, %c13_i32 : i32
    %c0_i32_1 = arith.constant 0 : i32
    %c0_i32_2 = arith.constant 0 : i32
    %c0_i32_3 = arith.constant 0 : i32
    %5 = tpu.memref_slice %arg3[%arg0, %2, %c0_i32_2, %c0_i32_3] : memref<2x16x16x128xbf16, #tpu.memory_space<any>> -> memref<1x3x16x128xbf16, #tpu.memory_space<any>>
    %6 = tpu.memref_squeeze %5 : memref<1x3x16x128xbf16, #tpu.memory_space<any>> -> memref<3x16x128xbf16, #tpu.memory_space<any>>
    %7 = tpu.memref_slice %arg15[%c0_i32_1] : memref<2x!tpu.dma_semaphore, #tpu.memory_space<semaphore_mem>> -> memref<1x!tpu.dma_semaphore, #tpu.memory_space<semaphore_mem>>
    %8 = tpu.memref_squeeze %7 : memref<1x!tpu.dma_semaphore, #tpu.memory_space<semaphore_mem>> -> memref<!tpu.dma_semaphore, #tpu.memory_space<semaphore_mem>>
    tpu.enqueue_dma source(%6 : memref<3x16x128xbf16, #tpu.memory_space<any>>) target(%arg13 : memref<3x16x128xbf16, #tpu.memory_space<vmem>>) target_semaphore(%8 : memref<!tpu.dma_semaphore, #tpu.memory_space<semaphore_mem>>)
    %c1_i32 = arith.constant 1 : i32
    %c0_i32_4 = arith.constant 0 : i32
    %c0_i32_5 = arith.constant 0 : i32
    %9 = tpu.memref_slice %arg3[%arg0, %4, %c0_i32_4, %c0_i32_5] : memref<2x16x16x128xbf16, #tpu.memory_space<any>> -> memref<1x3x16x128xbf16, #tpu.memory_space<any>>
    %10 = tpu.memref_squeeze %9 : memref<1x3x16x128xbf16, #tpu.memory_space<any>> -> memref<3x16x128xbf16, #tpu.memory_space<any>>
    %11 = tpu.memref_slice %arg15[%c1_i32] : memref<2x!tpu.dma_semaphore, #tpu.memory_space<semaphore_mem>> -> memref<1x!tpu.dma_semaphore, #tpu.memory_space<semaphore_mem>>
    %12 = tpu.memref_squeeze %11 : memref<1x!tpu.dma_semaphore, #tpu.memory_space<semaphore_mem>> -> memref<!tpu.dma_semaphore, #tpu.memory_space<semaphore_mem>>
    tpu.enqueue_dma source(%10 : memref<3x16x128xbf16, #tpu.memory_space<any>>) target(%arg14 : memref<3x16x128xbf16, #tpu.memory_space<vmem>>) target_semaphore(%12 : memref<!tpu.dma_semaphore, #tpu.memory_space<semaphore_mem>>)
    %13 = tpu.iota {dimensions = array<i32: 1>} : vector<14x16x1xi32>
    %14 = vector.shape_cast %13 : vector<14x16x1xi32> to vector<224x1xi32>
    %15 = tpu.iota {dimensions = array<i32: 0>} : vector<14x16x1xi32>
    %16 = vector.shape_cast %15 : vector<14x16x1xi32> to vector<224x1xi32>
    %c3_i32_6 = arith.constant 3 : i32
    %17 = arith.subi %0, %c3_i32_6 : i32
    %18 = vector.broadcast %17 : i32 to vector<224x1xi32>
    %19 = arith.addi %16, %18 : vector<224x1xi32>
    %c0_i32_7 = arith.constant 0 : i32
    %20 = vector.broadcast %c0_i32_7 : i32 to vector<224x1xi32>
    %21 = arith.cmpi sge, %19, %20 : vector<224x1xi32>
    %c16_i32 = arith.constant 16 : i32
    %22 = vector.broadcast %c16_i32 : i32 to vector<224x1xi32>
    %23 = arith.cmpi slt, %19, %22 : vector<224x1xi32>
    %24 = arith.andi %21, %23 : vector<224x1xi1>
    %c0_i32_8 = arith.constant 0 : i32
    %c0_i32_9 = arith.constant 0 : i32
    %c0_i32_10 = arith.constant 0 : i32
    %25 = tpu.memref_slice %arg3[%arg0, %2, %c0_i32_9, %c0_i32_10] : memref<2x16x16x128xbf16, #tpu.memory_space<any>> -> memref<1x3x16x128xbf16, #tpu.memory_space<any>>
    %26 = tpu.memref_squeeze %25 : memref<1x3x16x128xbf16, #tpu.memory_space<any>> -> memref<3x16x128xbf16, #tpu.memory_space<any>>
    %27 = tpu.memref_slice %arg15[%c0_i32_8] : memref<2x!tpu.dma_semaphore, #tpu.memory_space<semaphore_mem>> -> memref<1x!tpu.dma_semaphore, #tpu.memory_space<semaphore_mem>>
    %28 = tpu.memref_squeeze %27 : memref<1x!tpu.dma_semaphore, #tpu.memory_space<semaphore_mem>> -> memref<!tpu.dma_semaphore, #tpu.memory_space<semaphore_mem>>
    tpu.wait_dma2 semaphore(%28 : memref<!tpu.dma_semaphore, #tpu.memory_space<semaphore_mem>>) src(%26 : memref<3x16x128xbf16, #tpu.memory_space<any>>) dst(%arg13 : memref<3x16x128xbf16, #tpu.memory_space<vmem>>)
    %c1_i32_11 = arith.constant 1 : i32
    %c0_i32_12 = arith.constant 0 : i32
    %c0_i32_13 = arith.constant 0 : i32
    %29 = tpu.memref_slice %arg3[%arg0, %4, %c0_i32_12, %c0_i32_13] : memref<2x16x16x128xbf16, #tpu.memory_space<any>> -> memref<1x3x16x128xbf16, #tpu.memory_space<any>>
    %30 = tpu.memref_squeeze %29 : memref<1x3x16x128xbf16, #tpu.memory_space<any>> -> memref<3x16x128xbf16, #tpu.memory_space<any>>
    %31 = tpu.memref_slice %arg15[%c1_i32_11] : memref<2x!tpu.dma_semaphore, #tpu.memory_space<semaphore_mem>> -> memref<1x!tpu.dma_semaphore, #tpu.memory_space<semaphore_mem>>
    %32 = tpu.memref_squeeze %31 : memref<1x!tpu.dma_semaphore, #tpu.memory_space<semaphore_mem>> -> memref<!tpu.dma_semaphore, #tpu.memory_space<semaphore_mem>>
    tpu.wait_dma2 semaphore(%32 : memref<!tpu.dma_semaphore, #tpu.memory_space<semaphore_mem>>) src(%30 : memref<3x16x128xbf16, #tpu.memory_space<any>>) dst(%arg14 : memref<3x16x128xbf16, #tpu.memory_space<vmem>>)
    %c0 = arith.constant 0 : index
    %c0_14 = arith.constant 0 : index
    %c0_15 = arith.constant 0 : index
    %c0_16 = arith.constant 0 : index
    %33 = vector.load %arg2[%c0, %c0_14, %c0_15, %c0_16] : memref<1x8x16x128xbf16, #tpu.memory_space<vmem>>, vector<1x8x16x128xbf16>
    %34 = vector.shape_cast %33 : vector<1x8x16x128xbf16> to vector<8x16x128xbf16>
    %35 = vector.shape_cast %34 : vector<8x16x128xbf16> to vector<128x128xbf16>
    %c0_17 = arith.constant 0 : index
    %c0_18 = arith.constant 0 : index
    %c0_19 = arith.constant 0 : index
    %36 = vector.load %arg13[%c0_17, %c0_18, %c0_19] : memref<3x16x128xbf16, #tpu.memory_space<vmem>>, vector<3x16x128xbf16>
    %37 = vector.shape_cast %36 : vector<3x16x128xbf16> to vector<48x128xbf16>
    %c0_20 = arith.constant 0 : index
    %c0_21 = arith.constant 0 : index
    %c0_22 = arith.constant 0 : index
    %38 = vector.load %arg14[%c0_20, %c0_21, %c0_22] : memref<3x16x128xbf16, #tpu.memory_space<vmem>>, vector<3x16x128xbf16>
    %39 = vector.shape_cast %38 : vector<3x16x128xbf16> to vector<48x128xbf16>
    %40 = tpu.concatenate %37, %35, %39 in 0 : vector<48x128xbf16>, vector<128x128xbf16>, vector<48x128xbf16> -> vector<224x128xbf16>
    %cst = arith.constant 0.000000e+00 : f32
    %41 = arith.truncf %cst : f32 to bf16
    %42 = vector.shape_cast %24 : vector<224x1xi1> to vector<224x1xi1>
    %43 = vector.broadcast %42 : vector<224x1xi1> to vector<224x128xi1>
    %44 = vector.broadcast %41 : bf16 to vector<224x128xbf16>
    %45 = arith.select %43, %40, %44 : vector<224x128xi1>, vector<224x128xbf16>
    %c0_23 = arith.constant 0 : index
    %c0_24 = arith.constant 0 : index
    %46 = vector.load %arg5[%c0_23, %c0_24] : memref<1x128xf32, #tpu.memory_space<vmem>>, vector<1x128xf32>
    %cst_25 = arith.constant 0.000000e+00 : bf16
    %47 = vector.broadcast %cst_25 : bf16 to vector<16x128xbf16>
    %48 = vector.extract_strided_slice %45 {offsets = [0, 0], sizes = [208, 128], strides = [1, 1]} : vector<224x128xbf16> to vector<208x128xbf16>
    %49 = tpu.concatenate %47, %48 in 0 : vector<16x128xbf16>, vector<208x128xbf16> -> vector<224x128xbf16>
    %cst_26 = arith.constant 0.000000e+00 : bf16
    %50 = vector.broadcast %cst_26 : bf16 to vector<16x128xbf16>
    %51 = vector.extract_strided_slice %45 {offsets = [16, 0], sizes = [208, 128], strides = [1, 1]} : vector<224x128xbf16> to vector<208x128xbf16>
    %52 = tpu.concatenate %51, %50 in 0 : vector<208x128xbf16>, vector<16x128xbf16> -> vector<224x128xbf16>
    %53 = tpu.concatenate %49, %45, %52 in 1 : vector<224x128xbf16>, vector<224x128xbf16>, vector<224x128xbf16> -> vector<224x384xbf16>
    %c0_27 = arith.constant 0 : index
    %c0_28 = arith.constant 0 : index
    %54 = vector.load %arg4[%c0_27, %c0_28] : memref<384x128xbf16, #tpu.memory_space<vmem>>, vector<384x128xbf16>
    %cst_29 = arith.constant dense<0.000000e+00> : vector<224x128xf32>
    %55 = tpu.matmul %53, %54, %cst_29 {dimension_numbers = #tpu.dot_dimension_numbers<[1], [0], [0], [1], [0, 0, 1, 1], [], []>} : vector<224x384xbf16>, vector<384x128xbf16>, vector<224x128xf32> -> vector<224x128xf32>
    %56 = vector.broadcast %46 : vector<1x128xf32> to vector<224x128xf32>
    %57 = arith.addf %55, %56 : vector<224x128xf32>
    %cst_30 = arith.constant 0.000000e+00 : f32
    %58 = vector.broadcast %cst_30 : f32 to vector<224x128xf32>
    %59 = arith.maximumf %57, %58 : vector<224x128xf32>
    %c0_31 = arith.constant 0 : index
    %c0_32 = arith.constant 0 : index
    %60 = vector.load %arg7[%c0_31, %c0_32] : memref<1x128xf32, #tpu.memory_space<vmem>>, vector<1x128xf32>
    %61 = arith.truncf %59 : vector<224x128xf32> to vector<224x128xbf16>
    %c1_i32_33 = arith.constant 1 : i32
    %62 = vector.broadcast %c1_i32_33 : i32 to vector<224x1xi32>
    %63 = arith.cmpi sge, %14, %62 : vector<224x1xi32>
    %cst_34 = arith.constant 0.000000e+00 : bf16
    %64 = vector.broadcast %cst_34 : bf16 to vector<1x128xbf16>
    %65 = vector.extract_strided_slice %61 {offsets = [0, 0], sizes = [223, 128], strides = [1, 1]} : vector<224x128xbf16> to vector<223x128xbf16>
    %66 = tpu.concatenate %64, %65 in 0 : vector<1x128xbf16>, vector<223x128xbf16> -> vector<224x128xbf16>
    %cst_35 = arith.constant 0.000000e+00 : f32
    %67 = arith.truncf %cst_35 : f32 to bf16
    %68 = vector.shape_cast %63 : vector<224x1xi1> to vector<224x1xi1>
    %69 = vector.broadcast %68 : vector<224x1xi1> to vector<224x128xi1>
    %70 = vector.broadcast %67 : bf16 to vector<224x128xbf16>
    %71 = arith.select %69, %66, %70 : vector<224x128xi1>, vector<224x128xbf16>
    %c15_i32 = arith.constant 15 : i32
    %72 = vector.broadcast %c15_i32 : i32 to vector<224x1xi32>
    %73 = arith.cmpi slt, %14, %72 : vector<224x1xi32>
    %cst_36 = arith.constant 0.000000e+00 : bf16
    %74 = vector.broadcast %cst_36 : bf16 to vector<1x128xbf16>
    %75 = vector.extract_strided_slice %61 {offsets = [1, 0], sizes = [223, 128], strides = [1, 1]} : vector<224x128xbf16> to vector<223x128xbf16>
    %76 = tpu.concatenate %75, %74 in 0 : vector<223x128xbf16>, vector<1x128xbf16> -> vector<224x128xbf16>
    %cst_37 = arith.constant 0.000000e+00 : f32
    %77 = arith.truncf %cst_37 : f32 to bf16
    %78 = vector.shape_cast %73 : vector<224x1xi1> to vector<224x1xi1>
    %79 = vector.broadcast %78 : vector<224x1xi1> to vector<224x128xi1>
    %80 = vector.broadcast %77 : bf16 to vector<224x128xbf16>
    %81 = arith.select %79, %76, %80 : vector<224x128xi1>, vector<224x128xbf16>
    %82 = tpu.concatenate %71, %61, %81 in 1 : vector<224x128xbf16>, vector<224x128xbf16>, vector<224x128xbf16> -> vector<224x384xbf16>
    %c0_38 = arith.constant 0 : index
    %c0_39 = arith.constant 0 : index
    %83 = vector.load %arg6[%c0_38, %c0_39] : memref<384x128xbf16, #tpu.memory_space<vmem>>, vector<384x128xbf16>
    %cst_40 = arith.constant dense<0.000000e+00> : vector<224x128xf32>
    %84 = tpu.matmul %82, %83, %cst_40 {dimension_numbers = #tpu.dot_dimension_numbers<[1], [0], [0], [1], [0, 0, 1, 1], [], []>} : vector<224x384xbf16>, vector<384x128xbf16>, vector<224x128xf32> -> vector<224x128xf32>
    %85 = vector.broadcast %60 : vector<1x128xf32> to vector<224x128xf32>
    %86 = arith.addf %84, %85 : vector<224x128xf32>
    %cst_41 = arith.constant 0.000000e+00 : f32
    %87 = vector.broadcast %cst_41 : f32 to vector<224x128xf32>
    %88 = arith.maximumf %86, %87 : vector<224x128xf32>
    %cst_42 = arith.constant 0.000000e+00 : f32
    %89 = vector.shape_cast %24 : vector<224x1xi1> to vector<224x1xi1>
    %90 = vector.broadcast %89 : vector<224x1xi1> to vector<224x128xi1>
    %91 = vector.broadcast %cst_42 : f32 to vector<224x128xf32>
    %92 = arith.select %90, %88, %91 : vector<224x128xi1>, vector<224x128xf32>
    %c0_43 = arith.constant 0 : index
    %c0_44 = arith.constant 0 : index
    %93 = vector.load %arg9[%c0_43, %c0_44] : memref<1x128xf32, #tpu.memory_space<vmem>>, vector<1x128xf32>
    %94 = arith.truncf %92 : vector<224x128xf32> to vector<224x128xbf16>
    %cst_45 = arith.constant 0.000000e+00 : bf16
    %95 = vector.broadcast %cst_45 : bf16 to vector<32x128xbf16>
    %96 = vector.extract_strided_slice %94 {offsets = [0, 0], sizes = [192, 128], strides = [1, 1]} : vector<224x128xbf16> to vector<192x128xbf16>
    %97 = tpu.concatenate %95, %96 in 0 : vector<32x128xbf16>, vector<192x128xbf16> -> vector<224x128xbf16>
    %cst_46 = arith.constant 0.000000e+00 : bf16
    %98 = vector.broadcast %cst_46 : bf16 to vector<32x128xbf16>
    %99 = vector.extract_strided_slice %94 {offsets = [32, 0], sizes = [192, 128], strides = [1, 1]} : vector<224x128xbf16> to vector<192x128xbf16>
    %100 = tpu.concatenate %99, %98 in 0 : vector<192x128xbf16>, vector<32x128xbf16> -> vector<224x128xbf16>
    %101 = tpu.concatenate %97, %94, %100 in 1 : vector<224x128xbf16>, vector<224x128xbf16>, vector<224x128xbf16> -> vector<224x384xbf16>
    %c0_47 = arith.constant 0 : index
    %c0_48 = arith.constant 0 : index
    %102 = vector.load %arg8[%c0_47, %c0_48] : memref<384x128xbf16, #tpu.memory_space<vmem>>, vector<384x128xbf16>
    %cst_49 = arith.constant dense<0.000000e+00> : vector<224x128xf32>
    %103 = tpu.matmul %101, %102, %cst_49 {dimension_numbers = #tpu.dot_dimension_numbers<[1], [0], [0], [1], [0, 0, 1, 1], [], []>} : vector<224x384xbf16>, vector<384x128xbf16>, vector<224x128xf32> -> vector<224x128xf32>
    %104 = vector.broadcast %93 : vector<1x128xf32> to vector<224x128xf32>
    %105 = arith.addf %103, %104 : vector<224x128xf32>
    %cst_50 = arith.constant 0.000000e+00 : f32
    %106 = vector.broadcast %cst_50 : f32 to vector<224x128xf32>
    %107 = arith.maximumf %105, %106 : vector<224x128xf32>
    %108 = vector.extract_strided_slice %107 {offsets = [48, 0], sizes = [128, 128], strides = [1, 1]} : vector<224x128xf32> to vector<128x128xf32>
    %109 = vector.extract_strided_slice %14 {offsets = [48, 0], sizes = [128, 1], strides = [1, 1]} : vector<224x1xi32> to vector<128x1xi32>
    %c0_51 = arith.constant 0 : index
    %c0_52 = arith.constant 0 : index
    %110 = vector.load %arg11[%c0_51, %c0_52] : memref<1x128xf32, #tpu.memory_space<vmem>>, vector<1x128xf32>
    %111 = arith.truncf %108 : vector<128x128xf32> to vector<128x128xbf16>
    %c2_i32 = arith.constant 2 : i32
    %112 = vector.broadcast %c2_i32 : i32 to vector<128x1xi32>
    %113 = arith.cmpi sge, %109, %112 : vector<128x1xi32>
    %cst_53 = arith.constant 0.000000e+00 : bf16
    %114 = vector.broadcast %cst_53 : bf16 to vector<2x128xbf16>
    %115 = vector.extract_strided_slice %111 {offsets = [0, 0], sizes = [126, 128], strides = [1, 1]} : vector<128x128xbf16> to vector<126x128xbf16>
    %116 = tpu.concatenate %114, %115 in 0 : vector<2x128xbf16>, vector<126x128xbf16> -> vector<128x128xbf16>
    %cst_54 = arith.constant 0.000000e+00 : f32
    %117 = arith.truncf %cst_54 : f32 to bf16
    %118 = vector.shape_cast %113 : vector<128x1xi1> to vector<128x1xi1>
    %119 = vector.broadcast %118 : vector<128x1xi1> to vector<128x128xi1>
    %120 = vector.broadcast %117 : bf16 to vector<128x128xbf16>
    %121 = arith.select %119, %116, %120 : vector<128x128xi1>, vector<128x128xbf16>
    %c14_i32 = arith.constant 14 : i32
    %122 = vector.broadcast %c14_i32 : i32 to vector<128x1xi32>
    %123 = arith.cmpi slt, %109, %122 : vector<128x1xi32>
    %cst_55 = arith.constant 0.000000e+00 : bf16
    %124 = vector.broadcast %cst_55 : bf16 to vector<2x128xbf16>
    %125 = vector.extract_strided_slice %111 {offsets = [2, 0], sizes = [126, 128], strides = [1, 1]} : vector<128x128xbf16> to vector<126x128xbf16>
    %126 = tpu.concatenate %125, %124 in 0 : vector<126x128xbf16>, vector<2x128xbf16> -> vector<128x128xbf16>
    %cst_56 = arith.constant 0.000000e+00 : f32
    %127 = arith.truncf %cst_56 : f32 to bf16
    %128 = vector.shape_cast %123 : vector<128x1xi1> to vector<128x1xi1>
    %129 = vector.broadcast %128 : vector<128x1xi1> to vector<128x128xi1>
    %130 = vector.broadcast %127 : bf16 to vector<128x128xbf16>
    %131 = arith.select %129, %126, %130 : vector<128x128xi1>, vector<128x128xbf16>
    %132 = tpu.concatenate %121, %111, %131 in 1 : vector<128x128xbf16>, vector<128x128xbf16>, vector<128x128xbf16> -> vector<128x384xbf16>
    %c0_57 = arith.constant 0 : index
    %c0_58 = arith.constant 0 : index
    %133 = vector.load %arg10[%c0_57, %c0_58] : memref<384x128xbf16, #tpu.memory_space<vmem>>, vector<384x128xbf16>
    %cst_59 = arith.constant dense<0.000000e+00> : vector<128x128xf32>
    %134 = tpu.matmul %132, %133, %cst_59 {dimension_numbers = #tpu.dot_dimension_numbers<[1], [0], [0], [1], [0, 0, 1, 1], [], []>} : vector<128x384xbf16>, vector<384x128xbf16>, vector<128x128xf32> -> vector<128x128xf32>
    %135 = vector.broadcast %110 : vector<1x128xf32> to vector<128x128xf32>
    %136 = arith.addf %134, %135 : vector<128x128xf32>
    %137 = arith.extf %35 : vector<128x128xbf16> to vector<128x128xf32>
    %138 = arith.addf %136, %137 : vector<128x128xf32>
    %cst_60 = arith.constant 0.000000e+00 : f32
    %139 = vector.broadcast %cst_60 : f32 to vector<128x128xf32>
    %140 = arith.maximumf %138, %139 : vector<128x128xf32>
    %141 = vector.shape_cast %140 : vector<128x128xf32> to vector<8x16x128xf32>
    %142 = arith.truncf %141 : vector<8x16x128xf32> to vector<8x16x128xbf16>
    %c0_61 = arith.constant 0 : index
    %c0_62 = arith.constant 0 : index
    %c0_63 = arith.constant 0 : index
    %c0_64 = arith.constant 0 : index
    %143 = vector.load %arg12[%c0_61, %c0_62, %c0_63, %c0_64] : memref<1x8x16x128xbf16, #tpu.memory_space<vmem>>, vector<1x8x16x128xbf16>
    %144 = vector.shape_cast %143 : vector<1x8x16x128xbf16> to vector<8x16x128xbf16>
    %145 = vector.shape_cast %142 : vector<8x16x128xbf16> to vector<1x8x16x128xbf16>
    tpu.vector_store %arg12[%c0_61, %c0_62, %c0_63, %c0_64], %145 {strides = array<i32>} : memref<1x8x16x128xbf16, #tpu.memory_space<vmem>>, vector<1x8x16x128xbf16>,
    return
  }
  func.func @transform_0(%arg0: i32, %arg1: i32) -> (i32, i32, i32, i32) {
    %c0_i32 = arith.constant 0 : i32
    %c0_i32_0 = arith.constant 0 : i32
    %c0_i32_1 = arith.constant 0 : i32
    return %arg0, %arg1, %c0_i32, %c0_i32_0 : i32, i32, i32, i32
  }
  func.func @transform_2(%arg0: i32, %arg1: i32) -> (i32, i32) {
    %c0_i32 = arith.constant 0 : i32
    %c0_i32_0 = arith.constant 0 : i32
    %c0_i32_1 = arith.constant 0 : i32
    return %c0_i32, %c0_i32_0 : i32, i32
  }
  func.func @transform_3(%arg0: i32, %arg1: i32) -> (i32, i32) {
    %c0_i32 = arith.constant 0 : i32
    %c0_i32_0 = arith.constant 0 : i32
    %c0_i32_1 = arith.constant 0 : i32
    return %c0_i32, %c0_i32_0 : i32, i32
  }
  func.func @transform_4(%arg0: i32, %arg1: i32) -> (i32, i32) {
    %c0_i32 = arith.constant 0 : i32
    %c0_i32_0 = arith.constant 0 : i32
    %c0_i32_1 = arith.constant 0 : i32
    return %c0_i32, %c0_i32_0 : i32, i32
  }
  func.func @transform_5(%arg0: i32, %arg1: i32) -> (i32, i32) {
    %c0_i32 = arith.constant 0 : i32
    %c0_i32_0 = arith.constant 0 : i32
    %c0_i32_1 = arith.constant 0 : i32
    return %c0_i32, %c0_i32_0 : i32, i32
  }
  func.func @transform_6(%arg0: i32, %arg1: i32) -> (i32, i32) {
    %c0_i32 = arith.constant 0 : i32
    %c0_i32_0 = arith.constant 0 : i32
    %c0_i32_1 = arith.constant 0 : i32
    return %c0_i32, %c0_i32_0 : i32, i32
  }
  func.func @transform_7(%arg0: i32, %arg1: i32) -> (i32, i32) {
    %c0_i32 = arith.constant 0 : i32
    %c0_i32_0 = arith.constant 0 : i32
    %c0_i32_1 = arith.constant 0 : i32
    return %c0_i32, %c0_i32_0 : i32, i32
  }
  func.func @transform_8(%arg0: i32, %arg1: i32) -> (i32, i32) {
    %c0_i32 = arith.constant 0 : i32
    %c0_i32_0 = arith.constant 0 : i32
    %c0_i32_1 = arith.constant 0 : i32
    return %c0_i32, %c0_i32_0 : i32, i32
  }
  func.func @transform_9(%arg0: i32, %arg1: i32) -> (i32, i32) {
    %c0_i32 = arith.constant 0 : i32
    %c0_i32_0 = arith.constant 0 : i32
    %c0_i32_1 = arith.constant 0 : i32
    return %c0_i32, %c0_i32_0 : i32, i32
  }
  func.func @transform_10(%arg0: i32, %arg1: i32) -> (i32, i32, i32, i32) {
    %c0_i32 = arith.constant 0 : i32
    %c0_i32_0 = arith.constant 0 : i32
    %c0_i32_1 = arith.constant 0 : i32
    return %arg0, %arg1, %c0_i32, %c0_i32_0 : i32, i32, i32, i32
  }
}

</mosaic_0001>

<bundles_post_ra>
// kernel: nonbottleneck1d.1
= control target key start
LH: loop header
LB: loop body
LE: loop exit
PB: predicated region body
PF: predicated region fallthrough
CT: control target
= control target key end

     0   :  { %s6690_s0 = inlined_call_operand.hbm [shape: bf16[2,16,16,128], index: 0, kind: input, shape index: {}, may-alias: {0,1}]   ;;  %s6691_s1 = inlined_call_operand.hbm [shape: bf16[2,16,16,128], index: 1, kind: input, shape index: {}, may-alias: {0,1}]   ;;  %s6692_s2 = inlined_call_operand.hbm [shape: bf16[384,128], index: 2, kind: input, shape index: {}]   ;;  %s6693_s3 = inlined_call_operand.hbm [shape: f32[1,128], index: 3, kind: input, shape index: {}]   ;;  %s6694_s4 = inlined_call_operand.hbm [shape: bf16[384,128], index: 4, kind: input, shape index: {}]   ;;  %s6695_s5 = inlined_call_operand.hbm [shape: f32[1,128], index: 5, kind: input, shape index: {}]   ;;  %s6696_s6 = inlined_call_operand.hbm [shape: bf16[384,128], index: 6, kind: input, shape index: {}]   ;;  %s6697_s7 = inlined_call_operand.hbm [shape: f32[1,128], index: 7, kind: input, shape index: {}]   ;;  %s6698_s8 = inlined_call_operand.hbm [shape: bf16[384,128], index: 8, kind: input, shape index: {}]   ;;  %s6699_s9 = inlined_call_operand.hbm [shape: f32[1,128], index: 9, kind: input, shape index: {}]   ;;  %s6700_s10 = inlined_call_operand.hbm [shape: bf16[2,16,16,128], index: 10, kind: output, shape index: {}]  }
   0x1   :  { %6732 = sst [smem:[#allocation38_spill]] %s6690_s0 }
   0x2   :  { %6733 = sst [smem:[#allocation39_spill]] %s6691_s1 }
   0x3   :  { %6734 = sst [smem:[#allocation40_spill]] %s6692_s2 }
   0x4   :  { %6735 = sst [smem:[#allocation41_spill]] %s6693_s3 }
   0x5   :  { %6736 = sst [smem:[#allocation42_spill]] %s6694_s4 }
   0x6   :  { %6737 = sst [smem:[#allocation43_spill]] %s6695_s5 }
   0x7   :  { %6738 = sst [smem:[#allocation44_spill]] %s6696_s6 }
   0x8   :  { %6739 = sst [smem:[#allocation45_spill]] %s6697_s7 }
   0x9   :  { %6740 = sst [smem:[#allocation46_spill]] %s6698_s8 }
   0xa   :  { %6741 = sst [smem:[#allocation47_spill]] %s6699_s9 }
   0xb   :  { %6742 = sst [smem:[#allocation48_spill]] %s6700_s10 }
   0xc   :  { %15 = vsyncpa [#allocation6], 0 }
   0xd   :  { %17 = vsyncpa [#allocation6 + $0x1], 0 }
   0xe   :  { %18 = vsyncpa [#allocation9], 0 }
   0xf   :  { %19 = vsyncpa [#allocation12], 0 }
  0x10   :  { %20 = vsyncpa [#allocation15], 0 }
  0x11   :  { %21 = vsyncpa [#allocation18], 0 }
  0x12   :  { %22 = vsyncpa [#allocation7], 0 }
  0x13   :  { %24 = vsyncpa [#allocation7 + $0x1], 0  ;;  %s5284_s13 = smov 0   ;;  %s5286_s14 = smov 0  }
  0x14   :  { %s5288_s15 = smov 0   ;;  %s5290_s16 = smov 0  }
  0x15   :  { %s5292_s17 = smov 0   ;;  %s5294_s18 = smov 0  }
  0x16   :  { %s5296_s19 = smov 0   ;;  %s5298_s20 = smov 0  }
  0x17 LB: > { %6743 = sst [smem:[#allocation35_spill]] %s5193_s16  ;;  %s6701_s21 = sadd.s32 4294967295, %s5209_s20   ;;  %s5209_s20 = sphi %s5298_s20, %s30_s20   ;;  %s5205_s19 = sphi %s5296_s19, %s6900_s19   ;;  %s5201_s18 = sphi %s5294_s18, %s6899_s18   ;;  %s5197_s17 = sphi %s5292_s17, %s6898_s17   ;;  %s5193_s16 = sphi %s5290_s16, %s6897_s16   ;;  %s5189_s15 = sphi %s5288_s15, %s6896_s15   ;;  %s5185_s14 = sphi %s5286_s14, %s6895_s14   ;;  %s5181_s13 = sphi %s5284_s13, %s6894_s13  }
  0x18   : > { %6744 = sst [smem:[#allocation36_spill]] %s5197_s17  ;;  %p3429_p0 = scmp.ge.s32.totalorder %s5209_s20, 1 }
  0x19   : > { %p5328_p1 = scmp.eq.s32.totalorder %s6701_s21, 0  ;;  %p271_p2 = scmp.lt.s32.totalorder %s5209_s20, 5 }
  0x1a   : > { %s5211_s24 = smov [#allocation8]   ;;  %s5212_s27 = smov [#allocation11]  }
  0x1b   : > { %s6745_s22 = scalar_select %p5328_p1, 1, 0 }
  0x1c   : > { %p5333_p3 = pnand %p3429_p0, %p271_p2  ;;  %s283_s25 = sshll.u32 %s5211_s24, 4  ;;  %s5337_s25 = int_to_ptr.vmem [resolvable:$true] %s283_s25 }
  0x1d   : > { %s307_s28 = sshll.u32 %s5212_s27, 4  ;;  %s5213_s29 = smov [#allocation14]   ;;  %s5347_s28 = int_to_ptr.vmem [resolvable:$true] %s307_s28 }
  0x1e   : > { %s6746_s23 = scalar_select %p5333_p3, 1, 0 }
  0x1f   : > { %p4538_p4 = pneg %p5333_p3  ;;  %s5349_s30 = sshll.u32 %s5213_s29, 4  ;;  %s332_s30 = int_to_ptr.vmem [resolvable:$true] %s5349_s30 }
  0x20   : > { %6747 = sst [smem:[#allocation37_spill]] %s6746_s23  ;;  %s6749_s2 = sld [smem:[#allocation40_spill]] }
  0x21   : > { %p5343_p5 = pnand %p4538_p4, %p5328_p1 }
  0x23   : > { %p5359_p7 = pneg %p5343_p5 }
  0x26   : > { %s4789_s24 = scalar_lea.hbm %s6749_s2, 3072 }
  0x27   : > { %p4790_p6 = scmp.ne.s32.totalorder %s6749_s2, %s4789_s24  ;;  %p4796_p10 = scmp.lt.u32.totalorder %s4789_s24, %s6749_s2 }
  0x29   : > { %p4792_p8 = pnand %p5359_p7, %p4790_p6 }
  0x2b   : > { %p4793_p9 = pneg %p4792_p8 }
  0x2d   : > { %p4798_p11 = pnand %p4796_p10, %p4793_p9 }
  0x2f   : > { %4801 = shalt.err (!%p4798_p11)
}
  0x30   : > { %s4802_s10 = scalar_lea.vmem %s5337_s25, 3072  ;;  %p4810_p2 = scmp.lt.s32.totalorder %s5337_s25, %s5337_s25 }
  0x31   : > { %p4803_p12 = scmp.ne.s32.totalorder %s5337_s25, %s4802_s10  ;;  %p4811_p4 = scmp.lt.s32.totalorder %s4802_s10, %s4802_s10 }
  0x33   : > { %p4805_p13 = pnand %p4803_p12, %p5359_p7  ;;  %p4812_p6 = por %p4811_p4, %p4810_p2 }
  0x35   : > { %p4806_p0 = pneg %p4805_p13 }
  0x37   : > { %p4813_p8 = pnand %p4812_p6, %p4806_p0 }
  0x39   : > { %4816 = shalt.err (!%p4813_p8)
}
  0x3a   : > { %s6710_s21 = smov 64   ;;  %s6711_s11 = smov 4  }
  0x3b   : > { %4541 = dma.hbm_to_vmem [thread:$0]  (!%p5343_p5), %s6749_s2, 3072, %s5337_s25, [#allocation9], %s6710_s21, %s6710_s21, %s6711_s11  }
  0x3c   : > { %s6751_s4 = sld [smem:[#allocation42_spill]] }
  0x42   : > { %s4817_s10 = scalar_lea.hbm %s6751_s4, 3072 }
  0x43   : > { %p4818_p9 = scmp.ne.s32.totalorder %s6751_s4, %s4817_s10  ;;  %p4824_p12 = scmp.lt.u32.totalorder %s4817_s10, %s6751_s4 }
  0x45   : > { %p4820_p10 = pnand %p4818_p9, %p5359_p7 }
  0x47   : > { %p4821_p11 = pneg %p4820_p10 }
  0x49   : > { %p4826_p13 = pnand %p4824_p12, %p4821_p11 }
  0x4b   : > { %4829 = shalt.err (!%p4826_p13)
}
  0x4c   : > { %s4830_s25 = scalar_lea.vmem %s5347_s28, 3072  ;;  %p4838_p6 = scmp.lt.s32.totalorder %s5347_s28, %s5347_s28 }
  0x4d   : > { %p4831_p0 = scmp.ne.s32.totalorder %s5347_s28, %s4830_s25  ;;  %p4839_p8 = scmp.lt.s32.totalorder %s4830_s25, %s4830_s25 }
  0x4f   : > { %p4833_p2 = pnand %p4831_p0, %p5359_p7  ;;  %p4840_p9 = por %p4839_p8, %p4838_p6 }
  0x51   : > { %p4834_p4 = pneg %p4833_p2 }
  0x53   : > { %p4841_p10 = pnand %p4840_p9, %p4834_p4 }
  0x55   : > { %4844 = shalt.err (!%p4841_p10)
}
  0x56   : > { %4547 = dma.hbm_to_vmem [thread:$0]  (!%p5343_p5), %s6751_s4, 3072, %s5347_s28, [#allocation12], %s6710_s21, %s6710_s21, %s6711_s11  }
  0x57   : > { %s6752_s6 = sld [smem:[#allocation44_spill]] }
  0x5d   : > { %s4845_s12 = scalar_lea.hbm %s6752_s6, 3072 }
  0x5e   : > { %p4846_p11 = scmp.ne.s32.totalorder %s6752_s6, %s4845_s12  ;;  %p4852_p0 = scmp.lt.u32.totalorder %s4845_s12, %s6752_s6 }
  0x60   : > { %p4848_p12 = pnand %p4846_p11, %p5359_p7 }
  0x62   : > { %p4849_p13 = pneg %p4848_p12 }
  0x64   : > { %p4854_p2 = pnand %p4852_p0, %p4849_p13 }
  0x66   : > { %4857 = shalt.err (!%p4854_p2)
}
  0x67   : > { %s4858_s25 = scalar_lea.vmem %s332_s30, 3072  ;;  %p4866_p9 = scmp.lt.s32.totalorder %s332_s30, %s332_s30 }
  0x68   : > { %p4859_p4 = scmp.ne.s32.totalorder %s332_s30, %s4858_s25  ;;  %p4867_p10 = scmp.lt.s32.totalorder %s4858_s25, %s4858_s25 }
  0x6a   : > { %p4861_p6 = pnand %p4859_p4, %p5359_p7  ;;  %p4868_p3 = por %p4867_p10, %p4866_p9 }
  0x6c   : > { %p4862_p8 = pneg %p4861_p6 }
  0x6e   : > { %p4869_p1 = pnand %p4868_p3, %p4862_p8 }
  0x70   : > { %4872 = shalt.err (!%p4869_p1)
}
  0x71   : > { %4553 = dma.hbm_to_vmem [thread:$0]  (!%p5343_p5), %s6752_s6, 3072, %s332_s30, [#allocation15], %s6710_s21, %s6710_s21, %s6711_s11  }
  0x72   : > { %s5216_s16 = smov [#allocation17]   ;;  %s5217_s23 = smov [#allocation10]  }
  0x73   : > { %s355_s17 = sshll.u32 %s5216_s16, 4  ;;  %s297_s12 = sshll.u32 %s5217_s23, 4  ;;  %s356_s17 = int_to_ptr.vmem [resolvable:$true] %s355_s17  ;;  %s298_s12 = int_to_ptr.vmem [resolvable:$true] %s297_s12 }
  0x74   : > { %s6753_s8 = sld [smem:[#allocation46_spill]] }
  0x7a   : > { %s4873_s29 = scalar_lea.hbm %s6753_s8, 3072 }
  0x7b   : > { %p4874_p1 = scmp.ne.s32.totalorder %s6753_s8, %s4873_s29  ;;  %p4880_p12 = scmp.lt.u32.totalorder %s4873_s29, %s6753_s8 }
  0x7d   : > { %p4876_p3 = pnand %p4874_p1, %p5359_p7 }
  0x7f   : > { %p4877_p11 = pneg %p4876_p3 }
  0x81   : > { %p4882_p13 = pnand %p4880_p12, %p4877_p11 }
  0x83   : > { %4885 = shalt.err (!%p4882_p13)
}
  0x84   : > { %s4886_s30 = scalar_lea.vmem %s356_s17, 3072  ;;  %p4894_p6 = scmp.lt.s32.totalorder %s356_s17, %s356_s17 }
  0x85   : > { %p4887_p0 = scmp.ne.s32.totalorder %s356_s17, %s4886_s30  ;;  %p4895_p8 = scmp.lt.s32.totalorder %s4886_s30, %s4886_s30 }
  0x87   : > { %p4889_p2 = pnand %p4887_p0, %p5359_p7  ;;  %p4896_p9 = por %p4895_p8, %p4894_p6 }
  0x89   : > { %p4890_p4 = pneg %p4889_p2 }
  0x8b   : > { %p4897_p10 = pnand %p4896_p9, %p4890_p4 }
  0x8d   : > { %4900 = shalt.err (!%p4897_p10)
}
  0x8e   : > { %4559 = dma.hbm_to_vmem [thread:$0]  (!%p5343_p5), %s6753_s8, 3072, %s356_s17, [#allocation18], %s6710_s21, %s6710_s21, %s6711_s11  }
  0x8f   : > { %s6754_s3 = sld [smem:[#allocation41_spill]] }
  0x95   : > { %s4901_s24 = scalar_lea.hbm %s6754_s3, 16 }
  0x96   : > { %p4902_p1 = scmp.ne.s32.totalorder %s6754_s3, %s4901_s24  ;;  %p4908_p12 = scmp.lt.u32.totalorder %s4901_s24, %s6754_s3 }
  0x98   : > { %p4904_p3 = pnand %p4902_p1, %p5359_p7 }
  0x9a   : > { %p4905_p11 = pneg %p4904_p3 }
  0x9c   : > { %p4910_p13 = pnand %p4908_p12, %p4905_p11 }
  0x9e   : > { %4913 = shalt.err (!%p4910_p13)
}
  0x9f   : > { %s4914_s28 = scalar_lea.vmem %s298_s12, 16  ;;  %s4921_s17 = scalar_lea.vmem %s298_s12, 32 }
  0xa0   : > { %p4915_p0 = scmp.ne.s32.totalorder %s298_s12, %s4914_s28  ;;  %p4922_p6 = scmp.lt.s32.totalorder %s298_s12, %s298_s12 }
  0xa1   : > { %p4923_p8 = scmp.lt.s32.totalorder %s4921_s17, %s4914_s28 }
  0xa2   : > { %p4917_p2 = pnand %p4915_p0, %p5359_p7 }
  0xa3   : > { %p4924_p9 = por %p4923_p8, %p4922_p6 }
  0xa4   : > { %p4918_p4 = pneg %p4917_p2 }
  0xa6   : > { %p4925_p10 = pnand %p4924_p9, %p4918_p4 }
  0xa8   : > { %4928 = shalt.err (!%p4925_p10)
}
  0xa9   : > { %4544 = dma.hbm_to_vmem [thread:$0]  (!%p5343_p5), %s6754_s3, 16, %s298_s12, [#allocation9]  }
  0xaa   : > { %s5218_s0 = smov [#allocation13]   ;;  %s5219_s23 = smov [#allocation16]  }
  0xab   : > { %s321_s16 = sshll.u32 %s5218_s0, 4  ;;  %s345_s24 = sshll.u32 %s5219_s23, 4  ;;  %s322_s16 = int_to_ptr.vmem [resolvable:$true] %s321_s16  ;;  %s346_s24 = int_to_ptr.vmem [resolvable:$true] %s345_s24 }
  0xac   : > { %s6755_s5 = sld [smem:[#allocation43_spill]] }
  0xb2   : > { %s4929_s10 = scalar_lea.hbm %s6755_s5, 16 }
  0xb3   : > { %p4930_p1 = scmp.ne.s32.totalorder %s6755_s5, %s4929_s10  ;;  %p4936_p12 = scmp.lt.u32.totalorder %s4929_s10, %s6755_s5 }
  0xb5   : > { %p4932_p3 = pnand %p4930_p1, %p5359_p7 }
  0xb7   : > { %p4933_p11 = pneg %p4932_p3 }
  0xb9   : > { %p4938_p13 = pnand %p4936_p12, %p4933_p11 }
  0xbb   : > { %4941 = shalt.err (!%p4938_p13)
}
  0xbc   : > { %s4942_s12 = scalar_lea.vmem %s322_s16, 16  ;;  %s4949_s2 = scalar_lea.vmem %s322_s16, 32 }
  0xbd   : > { %p4943_p0 = scmp.ne.s32.totalorder %s322_s16, %s4942_s12  ;;  %p4950_p6 = scmp.lt.s32.totalorder %s322_s16, %s322_s16 }
  0xbe   : > { %p4951_p8 = scmp.lt.s32.totalorder %s4949_s2, %s4942_s12 }
  0xbf   : > { %p4945_p2 = pnand %p4943_p0, %p5359_p7 }
  0xc0   : > { %p4952_p9 = por %p4951_p8, %p4950_p6 }
  0xc1   : > { %p4946_p4 = pneg %p4945_p2 }
  0xc3   : > { %p4953_p10 = pnand %p4952_p9, %p4946_p4 }
  0xc5   : > { %4956 = shalt.err (!%p4953_p10)
}
  0xc6   : > { %4550 = dma.hbm_to_vmem [thread:$0]  (!%p5343_p5), %s6755_s5, 16, %s322_s16, [#allocation12]  }
  0xc7   : > { %s6756_s7 = sld [smem:[#allocation45_spill]] }
  0xcd   : > { %s4957_s10 = scalar_lea.hbm %s6756_s7, 16 }
  0xce   : > { %p4958_p1 = scmp.ne.s32.totalorder %s6756_s7, %s4957_s10  ;;  %p4964_p12 = scmp.lt.u32.totalorder %s4957_s10, %s6756_s7 }
  0xd0   : > { %p4960_p3 = pnand %p4958_p1, %p5359_p7 }
  0xd2   : > { %p4961_p11 = pneg %p4960_p3 }
  0xd4   : > { %p4966_p13 = pnand %p4964_p12, %p4961_p11 }
  0xd6   : > { %4969 = shalt.err (!%p4966_p13)
}
  0xd7   : > { %s4970_s12 = scalar_lea.vmem %s346_s24, 16  ;;  %s4977_s16 = scalar_lea.vmem %s346_s24, 32 }
  0xd8   : > { %p4971_p0 = scmp.ne.s32.totalorder %s346_s24, %s4970_s12  ;;  %p4978_p6 = scmp.lt.s32.totalorder %s346_s24, %s346_s24 }
  0xd9   : > { %p4979_p8 = scmp.lt.s32.totalorder %s4977_s16, %s4970_s12 }
  0xda   : > { %p4973_p2 = pnand %p4971_p0, %p5359_p7 }
  0xdb   : > { %p4980_p9 = por %p4979_p8, %p4978_p6 }
  0xdc   : > { %p4974_p4 = pneg %p4973_p2 }
  0xde   : > { %p4981_p10 = pnand %p4980_p9, %p4974_p4 }
  0xe0   : > { %4984 = shalt.err (!%p4981_p10)
}
  0xe1   : > { %4556 = dma.hbm_to_vmem [thread:$0]  (!%p5343_p5), %s6756_s7, 16, %s346_s24, [#allocation15]  }
  0xe2   : > { %s5220_s23 = smov [#allocation19]   ;;  %s6757_s9 = sld [smem:[#allocation47_spill]] }
  0xe3   : > { %s369_s27 = sshll.u32 %s5220_s23, 4  ;;  %s370_s27 = int_to_ptr.vmem [resolvable:$true] %s369_s27 }
  0xe8   : > { %s4985_s25 = scalar_lea.hbm %s6757_s9, 16 }
  0xe9   : > { %p4986_p1 = scmp.ne.s32.totalorder %s6757_s9, %s4985_s25  ;;  %p4992_p12 = scmp.lt.u32.totalorder %s4985_s25, %s6757_s9 }
  0xeb   : > { %p4988_p3 = pnand %p4986_p1, %p5359_p7 }
  0xed   : > { %p4989_p11 = pneg %p4988_p3 }
  0xef   : > { %p4994_p13 = pnand %p4992_p12, %p4989_p11 }
  0xf1   : > { %4997 = shalt.err (!%p4994_p13)
}
  0xf2   : > { %s4998_s24 = scalar_lea.vmem %s370_s27, 16  ;;  %s5005_s16 = scalar_lea.vmem %s370_s27, 32 }
  0xf3   : > { %p4999_p0 = scmp.ne.s32.totalorder %s370_s27, %s4998_s24  ;;  %p5006_p6 = scmp.lt.s32.totalorder %s370_s27, %s370_s27 }
  0xf4   : > { %p5007_p8 = scmp.lt.s32.totalorder %s5005_s16, %s4998_s24 }
  0xf5   : > { %p5001_p2 = pnand %p4999_p0, %p5359_p7 }
  0xf6   : > { %p5008_p9 = por %p5007_p8, %p5006_p6 }
  0xf7   : > { %p5002_p4 = pneg %p5001_p2 }
  0xf9   : > { %p5009_p10 = pnand %p5008_p9, %p5002_p4 }
  0xfb   : > { %5012 = shalt.err (!%p5009_p10)
}
  0xfc   : > { %4562 = dma.hbm_to_vmem [thread:$0]  (!%p5343_p5), %s6757_s9, 16, %s370_s27, [#allocation18]  }
  0xfd   : > { %s3428_s1 = sadd.s32 4294967294, %s5209_s20   ;;  %s39_s23 = sadd.s32 1, %s5201_s18 }
  0xfe   : > { %p40_p7 = scmp.ge.s32.totalorder %s39_s23, 2  ;;  %s42_s26 = sadd.s32 1, %s5205_s19 }
  0xff   : > { %s51_s29 = sadd.s32 1, %s5189_s15  ;;  %p58_p1 = scmp.ne.s32.totalorder %s5189_s15, %s5185_s14 }
 0x100   : > { %s6902_s23 = smov (%p40_p7, %s39_s23), 0  ;;  %s6904_s26 = smov (!%p40_p7, %s42_s26), %s5205_s19 }
 0x101   : > { %s47_s10 = ssub.s32 %s5201_s18, %s6902_s23  ;;  %p59_p3 = scmp.eq.s32.totalorder %s5209_s20, 0 }
 0x102   : > { %p44_p11 = scmp.ge.s32.totalorder %s6904_s26, 2  ;;  %p64_p5 = scmp.ne.s32.totalorder %s5185_s14, %s5181_s13 }
 0x103   : > { %p5538_p12 = por %p59_p3, %p58_p1  ;;  %s6759_s25 = sadd.s32 4294967295, %s5209_s20  }
 0x104   : > { %p258_p13 = scmp.eq.s32.totalorder %s6759_s25, 3  ;;  %s6906_s26 = smov (%p44_p11, %s6904_s26), 0 }
 0x105   : > { %p6760_p0 = scmp.ne.s32.totalorder %s6745_s22, 0  ;;  %s46_s30 = ssub.s32 %s5205_s19, %s6906_s26 }
 0x106   : > { %p5552_p4 = por %p258_p13, %p58_p1  ;;  %p264_p6 = scmp.eq.s32.totalorder %s3428_s1, 3 }
 0x107   : > { %p5548_p2 = por %p6760_p0, %p64_p5  ;;  %s48_s12 = sor.u32 %s47_s10, %s46_s30 }
 0x108   : > { %s6762_s17 = scalar_select %p5552_p4, 1, 0 }
 0x109   : > { %p4579_p8 = scmp.lt.s32.totalorder %s5209_s20, 4  ;;  %p49_p9 = scmp.eq.s32.totalorder %s48_s12, 0 }
 0x10a   : > { %p5559_p10 = por %p264_p6, %p64_p5  ;;  %s380_s16 = sand.u32 1, %s5189_s15  }
 0x10b   : > { %s3811_s2 = sshll.u32 %s5201_s18, 4  ;;  %s3439_s25 = sshll.u32 %s380_s16, 6 }
 0x10c   : > { %s6763_s24 = scalar_select %p5559_p10, 1, 0 }
 0x10d   : > { %s5566_s0 = scalar_select %p49_p9, %s5189_s15, %s51_s29  }
 0x10e   : > { %s3442_s21 = sshll.u32 %s5205_s19, 5  ;;  %s384_s3 = scalar_lea.vmem [#allocation5], %s3439_s25 }
 0x10f   : > { %s391_s11 = sadd.s32 %s3811_s2, %s3442_s21  ;;  %s394_s4 = sshll.u32 %s384_s3, 4  ;;  %s5569_s4 = int_to_ptr.vmem [resolvable:$true] %s394_s4 }
 0x110   : > { %s3443_s5 = sshll.u32 %s391_s11, 6  ;;  %s6764_s30 = sld [smem:[#allocation38_spill]] }
 0x111   : > { %p5580_p7 = pnand %p4579_p8, %p5538_p12  ;;  %s5584_s3 = scalar_lea.sflag [#allocation6], %s380_s16 }
 0x113   : > { %p5015_p3 = pneg %p5580_p7 }
 0x116   : > { %s5574_s12 = scalar_lea.hbm %s6764_s30, %s3443_s5  ;;  %s5018_s27 = scalar_lea.hbm %s6764_s30, 4096 }
 0x117   : > { %s5013_s21 = scalar_lea.hbm %s5574_s12, 1024  ;;  %p5019_p12 = scmp.lt.u32.totalorder %s5574_s12, %s6764_s30 }
 0x118   : > { %p5014_p1 = scmp.ne.s32.totalorder %s5574_s12, %s5013_s21  ;;  %p5020_p13 = scmp.lt.u32.totalorder %s5018_s27, %s5013_s21 }
 0x119   : > { %p5022_p6 = scmp.lt.u32.totalorder %s5013_s21, %s5574_s12 }
 0x11a   : > { %p5016_p11 = pnand %p5015_p3, %p5014_p1  ;;  %p5021_p0 = por %p5020_p13, %p5019_p12 }
 0x11c   : > { %p5017_p5 = pneg %p5016_p11  ;;  %p5023_p8 = por %p5022_p6, %p5021_p0 }
 0x11e   : > { %p5024_p9 = pnand %p5023_p8, %p5017_p5 }
 0x120   : > { %5027 = shalt.err (!%p5024_p9)
}
 0x121   : > { %s5028_s16 = scalar_lea.vmem %s5569_s4, 1024  ;;  %s5221_s1 = smov [#allocation5]  }
 0x122   : > { %p5029_p1 = scmp.ne.s32.totalorder %s5569_s4, %s5028_s16  ;;  %s5033_s10 = sshll.u32 %s5221_s1, 4  ;;  %s5034_s10 = int_to_ptr.vmem [resolvable:$false] %s5033_s10 }
 0x123   : > { %s5035_s5 = scalar_lea.vmem %s5034_s10, 2048  ;;  %p5036_p4 = scmp.lt.s32.totalorder %s5569_s4, %s5034_s10 }
 0x124   : > { %p5031_p11 = pnand %p5029_p1, %p5015_p3  ;;  %p5037_p12 = scmp.lt.s32.totalorder %s5035_s5, %s5028_s16 }
 0x126   : > { %p5032_p10 = pneg %p5031_p11  ;;  %p5038_p13 = por %p5037_p12, %p5036_p4 }
 0x128   : > { %p5039_p0 = pnand %p5038_p13, %p5032_p10 }
 0x12a   : > { %5042 = shalt.err (!%p5039_p0)
}
 0x12b   : > { %s6766_s21 = smov 4   ;;  %s6767_s11 = smov 64  }
 0x12c   : > { %4566 = dma.hbm_to_vmem [thread:$0]  (!%p5580_p7), %s5574_s12, 1024, %s5569_s4, %s5584_s3, %s6767_s11, %s6767_s11, %s6766_s21  }
 0x12d   : > { %s6768_s27 = sld [smem:[#allocation37_spill]] }
 0x133   : > { %p6769_p3 = scmp.ne.s32.totalorder %s6768_s27, 0 }
 0x134   : > { %s5618_s2 = sand.u32 (!%p6769_p3), 1, %s5185_s14  }
 0x135   : > { %406 = sbr.rel (%p6769_p3) target bundleno = 1461 (0x5b5), region = 56  ;;  %s6713_s25 = sshll.u32 (!%p6769_p3), %s5618_s2, 6 }
 0x136   : > { %s409_s16 = scalar_lea.sflag (!%p6769_p3), [#allocation6], %s5618_s2  ;;  %s5624_s29 = scalar_lea.vmem (!%p6769_p3), [#allocation5], %s6713_s25 }
 0x13c   : > { %5152 = dma.done.wait (%p5548_p2), %s409_s16, 1024  }
 0x13d   : > { %5154 = vsyncadd (%p5548_p2), %s409_s16, 4294966272  ;;  %p6770_p4 = scmp.ne.s32.totalorder %s6745_s22, 0 }
 0x13f   : > { %5156 = dma.done.wait (%p6770_p4), [#allocation9], 3088  }
 0x140   : > { %5158 = vsyncadd (%p6770_p4), [#allocation9], 4294964208 }
 0x141   : > { %5160 = dma.done.wait (%p6770_p4), [#allocation12], 3088  }
 0x142   : > { %5162 = vsyncadd (%p6770_p4), [#allocation12], 4294964208 }
 0x143   : > { %5164 = dma.done.wait (%p6770_p4), [#allocation15], 3088  }
 0x144   : > { %5166 = vsyncadd (%p6770_p4), [#allocation15], 4294964208 }
 0x145   : > { %5168 = dma.done.wait (%p6770_p4), [#allocation18], 3088  }
 0x146   : > { %5170 = vsyncadd (%p6770_p4), [#allocation18], 4294964208  ;;  %s6771_s4 = sld [smem:[#allocation35_spill]]  ;;  %s6772_s28 = sld [smem:[#allocation36_spill]]  ;;  %v523_v2 = vlaneseq }
 0x147   : > { %s5222_s10 = smov [#allocation2]  }
 0x148   : > { %s503_s5 = sshll.u32 %s5222_s10, 4  ;;  %v5664_v7 = vshrl.u32 %v523_v2, 7  ;;  %s5655_s5 = int_to_ptr.vmem [resolvable:$true] %s503_s5 }
 0x14c   : > { %s3455_s12 = sshll.u32 %s6771_s4, 3  ;;  %s5648_s1 = sshll.u32 %s6772_s28, 5 }
 0x14d   : > { %s3456_s3 = sadd.s32 4294967293, %s3455_s12  ;;  %s5652_s21 = sadd.s32 8, %s3455_s12 }
 0x14e   : > { %p486_p2 = scmp.gt.s32.totalorder %s3456_s3, 0  ;;  %v5650_v0 = vstv %s3456_s3  ;;  %p489_p10 = scmp.lt.s32.totalorder %s5652_s21, 13 }
 0x14f   : > { %v527_v1 = vadd.s32 1, %v5650_v0  ;;  %v528_v3 = vadd.s32 2, %v5650_v0  ;;  %v529_v4 = vadd.s32 3, %v5650_v0  ;;  %v530_v5 = vadd.s32 4, %v5650_v0  ;;  %s6773_s12 = sld [smem:[#allocation39_spill]] }
 0x150   : > { %s6908_s3 = smov (!%p486_p2, %s3456_s3), 0  ;;  %vm540_vm0 = vcmp.ge.s32.totalorder %v5650_v0, 0  ;;  %v531_v6 = vadd.s32 5, %v5650_v0  ;;  %v532_v8 = vadd.s32 6, %v5650_v0  ;;  %v533_v9 = vadd.s32 7, %v5650_v0 }
 0x151   : > { %s3457_s22 = sshll.u32 %s6908_s3, 1  ;;  %vm541_vm1 = vcmp.ge.s32.totalorder %v527_v1, 0  ;;  %vm542_vm2 = vcmp.ge.s32.totalorder %v528_v3, 0  ;;  %vm554_vm3 = vcmp.lt.s32.totalorder %v5650_v0, 16  ;;  %s5223_s3 = smov [#allocation3]  }
 0x152   : > { %s493_s11 = sadd.s32 %s5648_s1, %s3457_s22  ;;  %s5672_s22 = sshll.u32 %s5223_s3, 4  ;;  %s5730_s22 = int_to_ptr.vmem [resolvable:$true] %s5672_s22 }
 0x153   : > { %s3459_s27 = sshll.u32 %s493_s11, 6 }
 0x155   : > { %s495_s10 = scalar_lea.hbm %s6773_s12, %s3459_s27  ;;  %s5045_s7 = scalar_lea.hbm %s6773_s12, 4096 }
 0x156   : > { %s5043_s11 = scalar_lea.hbm %s495_s10, 384  ;;  %p5046_p5 = scmp.lt.u32.totalorder %s495_s10, %s6773_s12 }
 0x157   : > { %p5044_p7 = scmp.ne.s32.totalorder %s495_s10, %s5043_s11  ;;  %p5047_p6 = scmp.lt.u32.totalorder %s5045_s7, %s5043_s11 }
 0x158   : > { %p5049_p9 = scmp.lt.u32.totalorder %s5043_s11, %s495_s10 }
 0x159   : > { %p5048_p8 = por %p5047_p6, %p5046_p5 }
 0x15b   : > { %p5050_p1 = por %p5049_p9, %p5048_p8 }
 0x15d   : > { %p5051_p11 = pnand %p5050_p1, %p5044_p7 }
 0x15f   : > { %5054 = shalt.err (!%p5051_p11)  }
 0x160   : > { %s5055_s28 = scalar_lea.vmem %s5655_s5, 384  ;;  %p5060_p13 = scmp.lt.s32.totalorder %s5655_s5, %s5655_s5 }
 0x161   : > { %p5056_p12 = scmp.ne.s32.totalorder %s5655_s5, %s5055_s28  ;;  %p5061_p0 = scmp.lt.s32.totalorder %s5055_s28, %s5055_s28 }
 0x163   : > { %p5062_p3 = por %p5061_p0, %p5060_p13 }
 0x165   : > { %p5063_p4 = pnand %p5062_p3, %p5056_p12 }
 0x167   : > { %5066 = shalt.err (!%p5063_p4)  }
 0x168   : > { %506 = dma.hbm_to_vmem [thread:$0]  %s495_s10, 384, %s5655_s5, [#allocation4]  ;;  %vm543_vm4 = vcmp.ge.s32.totalorder %v529_v4, 0  ;;  %vm555_vm5 = vcmp.lt.s32.totalorder %v527_v1, 16  ;;  %vm556_vm6 = vcmp.lt.s32.totalorder %v528_v3, 16  ;;  %vm557_vm7 = vcmp.lt.s32.totalorder %v529_v4, 16  ;;  %vm5693_vm8 = vmand %vm540_vm0, %vm554_vm3 }
 0x169   : > { %v534_v11 = vadd.s32 8, %v5650_v0  ;;  %vm544_vm9 = vcmp.ge.s32.totalorder %v530_v5, 0  ;;  %vm558_vm10 = vcmp.lt.s32.totalorder %v530_v5, 16  ;;  %vm5699_vm11 = vmand %vm541_vm1, %vm555_vm5  ;;  %v6776_v12 = vmov 0  ;;  %s6910_s21 = smov (!%p489_p10, %s5652_s21), 13 }
 0x16a   : > { %v6777_v12 = vsel %vm5699_vm11, 4294967295, %v6776_v12  ;;  %v535_v13 = vadd.s32 9, %v5650_v0  ;;  %vm545_vm12 = vcmp.ge.s32.totalorder %v531_v6, 0  ;;  %vm559_vm13 = vcmp.lt.s32.totalorder %v531_v6, 16  ;;  %vm5708_vm14 = vmand %vm542_vm2, %vm556_vm6  ;;  %s3460_s6 = sshll.u32 %s6910_s21, 1 }
 0x16b   : > { %v6778_v14 = vmov 0  ;;  %v536_v15 = vadd.s32 10, %v5650_v0  ;;  %vm546_vm15 = vcmp.ge.s32.totalorder %v532_v8, 0  ;;  %vm560_vm0 = vcmp.lt.s32.totalorder %v532_v8, 16  ;;  %vm5714_vm1 = vmand %vm543_vm4, %vm557_vm7  ;;  %s508_s8 = sadd.s32 %s3460_s6, %s5648_s1 }
 0x16c   : > { %v6779_v14 = vsel %vm5708_vm14, 4294967295, %v6778_v14  ;;  %v6780_v16 = vmov 0  ;;  %v5719_v17 = vadd.s32 8, %v5664_v7  ;;  %v537_v18 = vadd.s32 11, %v5650_v0  ;;  %vm5724_vm5 = vmand %vm544_vm9, %vm558_vm10  ;;  %s3461_s9 = sshll.u32 %s508_s8, 6 }
 0x16d   : > { %v6781_v16 = vsel %vm5714_vm1, 4294967295, %v6780_v16  ;;  %vm561_vm2 = vcmp.lt.s32.totalorder %v533_v9, 16  ;;  %v6782_v19 = vmov 0  ;;  %v538_v20 = vadd.s32 12, %v5650_v0  ;;  %vm5735_vm7 = vmand %vm545_vm12, %vm559_vm13  ;;  %s510_s21 = scalar_lea.hbm %s6773_s12, %s3461_s9 }
 0x16e   : > { %v6783_v19 = vsel %vm5724_vm5, 4294967295, %v6782_v19  ;;  %v6784_v21 = vmov 0  ;;  %v539_v22 = vadd.s32 13, %v5650_v0  ;;  %vm563_vm10 = vcmp.lt.s32.totalorder %v535_v13, 16  ;;  %vm5742_vm3 = vmand %vm546_vm15, %vm560_vm0  ;;  %s5067_s10 = scalar_lea.hbm %s510_s21, 384  ;;  %p5070_p10 = scmp.lt.u32.totalorder %s510_s21, %s6773_s12 }
 0x16f   : > { %v6785_v21 = vsel %vm5735_vm7, 4294967295, %v6784_v21  ;;  %v6786_v23 = vmov 0  ;;  %vm6788_vm13 = vcmp.ge.s32.totalorder %v533_v9, 0  ;;  %v6789_v24 = vmov 0  ;;  %p5068_p2 = scmp.ne.s32.totalorder %s510_s21, %s5067_s10  ;;  %p5071_p7 = scmp.lt.u32.totalorder %s5045_s7, %s5067_s10 }
 0x170   : > { %v6787_v23 = vsel %vm5742_vm3, 4294967295, %v6786_v23  ;;  %vm5751_vm6 = vmand %vm6788_vm13, %vm561_vm2  ;;  %p5073_p6 = scmp.lt.u32.totalorder %s5067_s10, %s510_s21 }
 0x171   : > { %v6790_v24 = vsel %vm5751_vm6, 4294967295, %v6789_v24  ;;  %p5072_p5 = por %p5071_p7, %p5070_p10 }
 0x173   : > { %p5074_p8 = por %p5073_p6, %p5072_p5 }
 0x175   : > { %p5075_p9 = pnand %p5074_p8, %p5068_p2 }
 0x177   : > { %5078 = shalt.err (!%p5075_p9)  }
 0x178   : > { %s5079_s28 = scalar_lea.vmem %s5730_s22, 384  ;;  %p5084_p11 = scmp.lt.s32.totalorder %s5730_s22, %s5730_s22 }
 0x179   : > { %p5080_p1 = scmp.ne.s32.totalorder %s5730_s22, %s5079_s28  ;;  %p5085_p12 = scmp.lt.s32.totalorder %s5079_s28, %s5079_s28 }
 0x17b   : > { %p5086_p13 = por %p5085_p12, %p5084_p11 }
 0x17d   : > { %p5087_p0 = pnand %p5086_p13, %p5080_p1 }
 0x17f   : > { %5090 = shalt.err (!%p5087_p0)  }
 0x180   : > { %522 = dma.hbm_to_vmem [thread:$0]  %s510_s21, 384, %s5730_s22, [#allocation4 + $0x1]  ;;  %vm551_vm15 = vcmp.ge.s32.totalorder %v537_v18, 0  ;;  %vm565_vm0 = vcmp.lt.s32.totalorder %v537_v18, 16  ;;  %vm6791_vm2 = vcmp.lt.s32.totalorder %v534_v11, 16  ;;  %vm6792_vm13 = vcmp.ge.s32.totalorder %v534_v11, 0 }
 0x181   : > { %vm5769_vm4 = vmand %vm6792_vm13, %vm6791_vm2  ;;  %vm552_vm12 = vcmp.ge.s32.totalorder %v538_v20, 0  ;;  %vm566_vm9 = vcmp.lt.s32.totalorder %v538_v20, 16  ;;  %vm6795_vm6 = vcmp.ge.s32.totalorder %v535_v13, 0  ;;  %vm553_vm7 = vcmp.ge.s32.totalorder %v539_v22, 0  ;;  %s6808_s7 = sshll.u32 %s5618_s2, 6 }
 0x182   : > { %vm5775_vm3 = vmand %vm6795_vm6, %vm563_vm10  ;;  %vm567_vm5 = vcmp.lt.s32.totalorder %v539_v22, 16  ;;  %vm6798_vm1 = vcmp.lt.s32.totalorder %v536_v15, 16  ;;  %vm6799_vm14 = vcmp.ge.s32.totalorder %v536_v15, 0  ;;  %s5799_s22 = scalar_lea.vmem [#allocation20], %s6808_s7 }
 0x183   : > { %vm5781_vm11 = vmand %vm6799_vm14, %vm6798_vm1 }
 0x184   : > { %vm5785_vm2 = vmand %vm551_vm15, %vm565_vm0 }
 0x185   : > { %vm5789_vm13 = vmand %vm552_vm12, %vm566_vm9 }
 0x186   : > { %vm5793_vm6 = vmand %vm553_vm7, %vm567_vm5 }
 0x187   : > { %5171 = dma.done.wait [#allocation4], 384 }
 0x188   : > { %5172 = vsyncadd [#allocation4], 4294966912 }
 0x189   : > { %5173 = dma.done.wait [#allocation4 + $0x1], 384 }
 0x18a   : > { %5174 = vsyncadd [#allocation4 + $0x1], 4294966912  ;;  %v4669_v31 = vld [vmem:[#allocation8 + $0x40] sm:$0xff]   ;;  %v4671_v33 = vld [vmem:[#allocation8 + $0x48] sm:$0xff]   ;;  %vm6811_vm1 = vnez %v6777_v12  ;;  %v6812_v37 = vmov 0  ;;  %v5224_v47 = vmov 0   ;;  %vm6821_vm12 = vnez %v6781_v16 }
 0x18b   : > { %v4670_v32 = vld [vmem:[#allocation8] sm:$0xff]   ;;  %3876 = vmatprep.subr.bf16.mxu0 %v4669_v31  ;;  %vm5804_vm14 = vmpackc.low %vm5693_vm8, %vm5693_vm8  ;;  %v4673_v36 = vld [vmem:[#allocation8 + $0x8] sm:$0xff]   ;;  %vm6814_vm8 = vnez %v6779_v14  ;;  %v6815_v53 = vmov 0  ;;  %v6822_v1 = vmov 0  ;;  %vm6824_vm0 = vnez %v6783_v19  ;;  %s3828_s6 = sshll.u32 %s6771_s4, 4  ;;  %s3238_s4 = sshll.u32 %s5799_s22, 4  ;;  %s6634_s4 = int_to_ptr.vmem [resolvable:$true] %s3238_s4 }
 0x18c   : > { %3877 = vmatpush3.bf16.msra.mxu0 %v4670_v32  ;;  %v4672_v34 = vld [vmem:[#allocation8 + $0x80] sm:$0xff]   ;;  %vm5811_vm5 = vmpackc.low %vm6811_vm1, %vm6811_vm1  ;;  %v4674_v38 = vld [vmem:[#allocation8 + $0x50] sm:$0xff]   ;;  %v701_v48 = vsel %vm5804_vm14, 65537, %v5224_v47  ;;  %v6828_v8 = vmov 0  ;;  %v6831_v9 = vmov 0  ;;  %v6834_v12 = vmov 0  ;;  %s3235_s8 = sadd.s32 %s3828_s6, %s5648_s1 }
 0x18d   : > { %3878 = vmatprep.subr.bf16.mxu0 %v4671_v33  ;;  %v6813_v37 = vsel %vm5811_vm5, 4294967295, %v6812_v37  ;;  %4322 = vmatprep.subr.bf16.mxu1 %v4672_v34  ;;  %v4675_v39 = vld [vmem:[#allocation8 + $0x88] sm:$0xff]   ;;  %v4676_v40 = vld [vmem:[#allocation8 + $0x10] sm:$0xff]   ;;  %v4677_v41 = vld [vmem:[#allocation8 + $0x58] sm:$0xff]   ;;  %v702_v50 = vsel %vm5811_vm5, 65537, %v5224_v47  ;;  %v3470_v52 = vcombine.low %v701_v48, %v701_v48  ;;  %v6848_v26 = vmov 0 }
 0x18e   : > { %4323 = vmatpush3.bf16.msra.mxu1 %v4672_v34  ;;  %v4678_v42 = vld [vmem:[#allocation8 + $0x90] sm:$0xff]   ;;  %v4679_v43 = vld [vmem:[#allocation8 + $0x18] sm:$0xff]   ;;  %v4680_v44 = vld [vmem:[#allocation8 + $0x60] sm:$0xff]   ;;  %v3471_v55 = vcombine.low %v702_v50, %v702_v50  ;;  %s6891_s5 = sld [smem:[#allocation48_spill]]  ;;  %s3222_s1 = scalar_lea.sflag [#allocation7], %s5618_s2 }
 0x18f   : > { %4324 = vmatprep.subr.bf16.mxu1 %v4675_v39  ;;  %v4681_v45 = vld [vmem:[#allocation8 + $0x98] sm:$0xff]   ;;  %v4682_v46 = vld [vmem:[#allocation8 + $0x20] sm:$0xff]   ;;  %v4683_v51 = vld [vmem:[#allocation8 + $0x68] sm:$0xff]   ;;  %vm5828_vm9 = vcmp.ne.s16.totalorder %v3470_v52, 0  ;;  %s5091_s10 = scalar_lea.vmem %s6634_s4, 1024  ;;  %p6892_p4 = scmp.ne.s32.totalorder %s6762_s17, 0 }
 0x190   : > { %3879 = vmatpush3.bf16.msra.mxu0 %v4673_v36  ;;  %v4684_v49 = vld [vmem:[#allocation8 + $0xa0] sm:$0xff]   ;;  %vm5824_vm7 = vmpackc.low %vm6814_vm8, %vm6814_vm8  ;;  %v4685_v54 = vld [vmem:[#allocation8 + $0x28] sm:$0xff]   ;;  %vm5832_vm10 = vcmp.ne.s16.totalorder %v3471_v55, 0  ;;  %vm6827_vm8 = vnez %v6785_v21  ;;  %p5092_p3 = scmp.ne.s32.totalorder %s6634_s4, %s5091_s10  ;;  %s5226_s3 = smov [#allocation20]  }
 0x191   : > { %3880 = vmatprep.subr.bf16.mxu0 %v4674_v38  ;;  %v6816_v53 = vsel %vm5824_vm7, 4294967295, %v6815_v53  ;;  %v4687_v56 = vld [vmem:[#allocation8 + $0xa8] sm:$0xff]   ;;  %v4686_v57 = vld [vmem:[#allocation8 + $0x70] sm:$0xff]   ;;  %v4689_v63 = vld [vmem:[#allocation8 + $0x78] sm:$0xff]   ;;  %v703_v2 = vsel %vm5824_vm7, 65537, %v5224_v47  ;;  %s5095_s11 = sshll.u32 %s5226_s3, 4  ;;  %s5096_s11 = int_to_ptr.vmem [resolvable:$false] %s5095_s11 }
 0x192   : > { %4325 = vmatpush3.bf16.msra.mxu1 %v4675_v39  ;;  %v4688_v58 = vld [vmem:[#allocation8 + $0x30] sm:$0xff]   ;;  %v5841_v0 = vld [vmem:[#allocation2 + $0x8] sm:$0xff]  ;;  %vm5846_vm15 = vmpackc.low %vm6821_vm12, %vm6821_vm12  ;;  %v3472_v10 = vcombine.low %v703_v2, %v703_v2  ;;  %p5093_p2 = pnand %p5092_p3, %p6892_p4  ;;  %s5097_s27 = scalar_lea.vmem %s5096_s11, 2048 }
 0x193   : > { %4326 = vmatprep.subr.bf16.mxu1 %v4678_v42  ;;  %v4690_v60 = vld [vmem:[#allocation8 + $0xb0] sm:$0xff]   ;;  %v6823_v1 = vsel %vm5846_vm15, 4294967295, %v6822_v1  ;;  %4338 = vmatprep.mubr.msk.bf16.mxu1 %vm5832_vm10, %v5841_v0  ;;  %vm5859_vm1 = vmpackc.low %vm6824_vm0, %vm6824_vm0  ;;  %v4691_v4 = vld [vmem:[#allocation8 + $0x38] sm:$0xff]   ;;  %v704_v6 = vsel %vm5846_vm15, 65537, %v5224_v47  ;;  %vm6830_vm0 = vnez %v6787_v23  ;;  %vm6833_vm15 = vnez %v6790_v24  ;;  %p5098_p7 = scmp.lt.s32.totalorder %s6634_s4, %s5096_s11  ;;  %p5099_p5 = scmp.lt.s32.totalorder %s5097_s27, %s5091_s10 }
 0x194   : > { %3881 = vmatpush3.bf16.msra.mxu0 %v4676_v40  ;;  %v5836_v62 = vld [vmem:[#allocation2] sm:$0xff]  ;;  %v4692_v5 = vld [vmem:[#allocation8 + $0xb8] sm:$0xff]   ;;  %vm5869_vm12 = vmpackc.low %vm6827_vm8, %vm6827_vm8  ;;  %v3473_v13 = vcombine.low %v704_v6, %v704_v6  ;;  %v705_v22 = vsel %vm5859_vm1, 65537, %v5224_v47  ;;  %v6844_v23 = vmov 0  ;;  %p5094_p10 = pneg %p5093_p2 }
 0x195   : > { %3882 = vmatprep.subr.bf16.mxu0 %v4677_v41  ;;  %3509 = vmatprep.mubr.msk.bf16.mxu0 %vm5828_vm9, %v5836_v62  ;;  %v6829_v8 = vsel %vm5869_vm12, 4294967295, %v6828_v8  ;;  %vm5876_vm7 = vmpackc.low %vm6830_vm0, %vm6830_vm0  ;;  %v5881_v11 = vld [vmem:[%s5624_s29] sm:$0xff]   ;;  %v4702_v20 = vld [vmem:[#allocation11 + $0x88] sm:$0xff]   ;;  %v706_v25 = vsel %vm5869_vm12, 65537, %v5224_v47  ;;  %v3474_v29 = vcombine.low %v705_v22, %v705_v22  ;;  %p5100_p6 = por %p5099_p5, %p5098_p7 }
 0x196   : > { %4327 = vmatpush3.bf16.msra.mxu1 %v4678_v42  ;;  %v6832_v9 = vsel %vm5876_vm7, 4294967295, %v6831_v9  ;;  %vm5886_vm5 = vmpackc.low %vm6833_vm15, %vm6833_vm15  ;;  %v4701_v16 = vld [vmem:[#allocation11 + $0x80] sm:$0xff]   ;;  %v4703_v27 = vld [vmem:[#allocation11 + $0x90] sm:$0xff]   ;;  %v707_v31 = vsel %vm5876_vm7, 65537, %v5224_v47  ;;  %v3475_v39 = vcombine.low %v706_v25, %v706_v25 }
 0x197   : > { %4328 = vmatprep.subr.bf16.mxu1 %v4681_v45  ;;  %v6835_v12 = vsel %vm5886_vm5, 4294967295, %v6834_v12  ;;  %vm5893_vm8 = vmpackc.low %vm5769_vm4, %vm5769_vm4  ;;  %v5904_v18 = vld [vmem:[#allocation2 + $0x10] sm:$0xff]  ;;  %vm5913_vm4 = vcmp.ne.s16.totalorder %v3472_v10, 0  ;;  %v5949_v33 = vld [vmem:[%s5624_s29 + $0x8] sm:$0xff]   ;;  %v708_v34 = vsel %vm5886_vm5, 65537, %v5224_v47  ;;  %v3476_v41 = vcombine.low %v707_v31, %v707_v31  ;;  %p5101_p8 = pnand %p5100_p6, %p5094_p10 }
 0x198   : > { %3883 = vmatpush3.bf16.msra.mxu0 %v4679_v43  ;;  %vm5900_vm0 = vmpackc.low %vm5775_vm3, %vm5775_vm3  ;;  %v4704_v28 = vld [vmem:[#allocation11 + $0x40] sm:$0xff]   ;;  %v4706_v36 = vld [vmem:[#allocation11 + $0x48] sm:$0xff]   ;;  %v3477_v42 = vcombine.low %v708_v34, %v708_v34  ;;  %vm5967_vm5 = vcmp.ne.s16.totalorder %v3475_v39, 0  ;;  %v709_v48 = vsel %vm5893_vm8, 65537, %v5224_v47 }
 0x199   : > { %3884 = vmatprep.subr.bf16.mxu0 %v4680_v44  ;;  %vm5909_vm15 = vmpackc.low %vm5781_vm11, %vm5781_vm11  ;;  %vm5928_vm11 = vcmp.ne.s16.totalorder %v3473_v13, 0  ;;  %v4705_v32 = vld [vmem:[#allocation11] sm:$0xff]   ;;  %v5958_v38 = vld [vmem:[%s5624_s29 + $0x10] sm:$0xff]   ;;  %vm5984_vm12 = vcmp.ne.s16.totalorder %v3476_v41, 0 }
 0x19a   : > { %4329 = vmatpush3.bf16.msra.mxu1 %v4681_v45  ;;  %vm5923_vm3 = vmpackc.low %vm5785_vm2, %vm5785_vm2  ;;  %v4707_v40 = vld [vmem:[#allocation11 + $0x8] sm:$0xff]   ;;  %v4708_v43 = vld [vmem:[#allocation11 + $0x98] sm:$0xff]  }
 0x19b   : > { %4330 = vmatprep.subr.bf16.mxu1 %v4684_v49  ;;  %v6845_v23 = vsel %vm5923_vm3, 4294967295, %v6844_v23  ;;  %vm5938_vm2 = vmpackc.low %vm5789_vm13, %vm5789_vm13  ;;  %vm5963_vm13 = vcmp.ne.s16.totalorder %v3474_v29, 0  ;;  %v4709_v45 = vld [vmem:[#allocation11 + $0x50] sm:$0xff]   ;;  %v4711_v55 = vld [vmem:[#allocation11 + $0x58] sm:$0xff]  }
 0x19c   : > { %3885 = vmatpush3.bf16.msra.mxu0 %v4682_v46  ;;  %v6849_v26 = vsel %vm5938_vm2, 4294967295, %v6848_v26  ;;  %vm5977_vm7 = vmpackc.low %vm5793_vm6, %vm5793_vm6  ;;  %v4710_v30 = vld [vmem:[#allocation11 + $0x10] sm:$0xff]   ;;  %vm5994_vm6 = vcmp.ne.s16.totalorder %v3477_v42, 0  ;;  %v597_v59 = vld [vmem:[%s5624_s29 + $0x20] sm:$0xff]  }
 0x19d   : > { %3886 = vmatprep.subr.bf16.mxu0 %v4683_v51  ;;  %v710_v51 = vsel %vm5900_vm0, 65537, %v5224_v47  ;;  %v714_v2 = vsel %vm5977_vm7, 65537, %v5224_v47  ;;  %v4715_v6 = vld [vmem:[#allocation11 + $0x20] sm:$0xff]   ;;  %v601_v61 = vld [vmem:[%s5624_s29 + $0x30] sm:$0xff]   ;;  %v4721_v39 = vld [vmem:[#allocation11 + $0x78] sm:$0xff]  }
 0x19e   : > { %4331 = vmatpush3.bf16.msra.mxu1 %v4684_v49  ;;  %v6854_v49 = vmov 0  ;;  %v3483_v21 = vcombine.low %v714_v2, %v714_v2  ;;  %v609_v24 = vld [vmem:[#allocation3 + $0x8] sm:$0xff]  ;;  %v4724_v42 = vld [vmem:[#allocation11 + $0xb8] sm:$0xff]   ;;  %v4728_v44 = vld [vmem:[#allocation14 + $0x40] sm:$0xff]  }
 0x19f   : > { %4332 = vmatprep.subr.bf16.mxu1 %v4687_v56  ;;  %v6855_v49 = vsel %vm5977_vm7, 4294967295, %v6854_v49  ;;  %v4717_v29 = vld [vmem:[#allocation11 + $0x28] sm:$0xff]   ;;  %v4723_v41 = vld [vmem:[#allocation11 + $0xb0] sm:$0xff]  }
 0x1a0   : > { %3887 = vmatpush3.bf16.msra.mxu0 %v4685_v54  ;;  %v711_v54 = vsel %vm5909_vm15, 65537, %v5224_v47  ;;  %v4718_v34 = vld [vmem:[#allocation11 + $0xa8] sm:$0xff]   ;;  %v6453_v15 = vld [vmem:[#allocation17 + $0x90] sm:$0xff]  }
 0x1a1   : > { %3888 = vmatprep.subr.bf16.mxu0 %v4686_v57  ;;  %v712_v57 = vsel %vm5923_vm3, 65537, %v5224_v47  ;;  %vm6067_vm3 = vcmp.ne.s16.totalorder %v3483_v21, 0  ;;  %v4760_v19 = vld [vmem:[#allocation17 + $0x60] sm:$0xff]  }
 0x1a2   : > { %4333 = vmatpush3.bf16.msra.mxu1 %v4687_v56  ;;  %v595_v56 = vld [vmem:[%s5624_s29 + $0x18] sm:$0xff]  }
 0x1a3   : > { %4334 = vmatprep.subr.bf16.mxu1 %v4690_v60 }
 0x1a4   : > { %3889 = vmatpush3.bf16.msra.mxu0 %v4688_v58  ;;  %v4713_v58 = vld [vmem:[#allocation11 + $0xa0] sm:$0xff]  }
 0x1a5   : > { %3890 = vmatprep.subr.bf16.mxu0 %v4689_v63  ;;  %v3478_v63 = vcombine.low %v709_v48, %v709_v48  ;;  %v6119_v48 = vld [vmem:[#allocation10] ss:$0 sm:$0xff] }
 0x1a6   : > { %4335 = vmatpush3.bf16.msra.mxu1 %v4690_v60  ;;  %v713_v60 = vsel %vm5938_vm2, 65537, %v5224_v47 }
 0x1a7   : > { %4336 = vmatprep.subr.bf16.mxu1 %v4692_v5 }
 0x1a8   : > { %3891 = vmatpush3.bf16.msra.mxu0 %v4691_v4  ;;  %v4714_v4 = vld [vmem:[#allocation11 + $0x60] sm:$0xff]  }
 0x1a9   : > { %4366 = vmatprep.subr.bf16.mxu0 %v4701_v16 }
 0x1aa   : > { %4337 = vmatpush3.bf16.msra.mxu1 %v4692_v5  ;;  %v3479_v5 = vcombine.low %v710_v51, %v710_v51 }
 0x1ab   : > { %1003 = vmatmul.mubr.bf16.vlgmr.msra.gmra.mrb[0].mxu0 %v5224_v47  ;;  %3998 = vmatprep.subr.bf16.mxu1 %v4704_v28  ;;  %v608_v28 = vld [vmem:[#allocation3] sm:$0xff] }
 0x1ac   : > { %3510 = vmatprep.mubr.msk.bf16.mxu0 %vm5832_vm10, %v5841_v0  ;;  %4367 = vmatpush3.bf16.msra.mxu0 %v4701_v16  ;;  %vm6028_vm7 = vcmp.ne.s16.totalorder %v3479_v5, 0  ;;  %v599_v16 = vld [vmem:[%s5624_s29 + $0x28] sm:$0xff]  }
 0x1ad   : > { %4368 = vmatprep.subr.bf16.mxu0 %v4702_v20  ;;  %4339 = vmatmul.mubr.msk.bf16.vlgmr.msra.gmra.mrb[0].mxu1 %vm5913_vm4, %v5904_v18 }
 0x1ae   : > { %4342 = vmatprep.mubr.msk.bf16.mxu1 %vm5928_vm11, %v5881_v11  ;;  %3999 = vmatpush3.bf16.msra.mxu1 %v4705_v32 }
 0x1af   : > { %4000 = vmatprep.subr.bf16.mxu1 %v4706_v36  ;;  %v4719_v36 = vld [vmem:[#allocation11 + $0x70] sm:$0xff]  }
 0x1b0   : > { %4369 = vmatpush3.bf16.msra.mxu0 %v4702_v20  ;;  %v3481_v20 = vcombine.low %v712_v57, %v712_v57 }
 0x1b1   : > { %4370 = vmatprep.subr.bf16.mxu0 %v4703_v27 }
 0x1b2   : > { %4001 = vmatpush3.bf16.msra.mxu1 %v4707_v40  ;;  %vm6048_vm2 = vcmp.ne.s16.totalorder %v3481_v20, 0  ;;  %v4722_v40 = vld [vmem:[#allocation11 + $0x38] sm:$0xff]  }
 0x1b3   : > { %3511 = vmatmul.mubr.msk.bf16.gmra.mrb[4].mxu0 %vm5828_vm9, %v5836_v62  ;;  %4002 = vmatprep.subr.bf16.mxu1 %v4709_v45  ;;  %v4712_v62 = vld [vmem:[#allocation11 + $0x18] sm:$0xff]   ;;  %vm6021_vm9 = vcmp.ne.s16.totalorder %v3478_v63, 0 }
 0x1b4   : > { %3512 = vmatprep.mubr.msk.bf16.mxu0 %vm5913_vm4, %v5904_v18  ;;  %4371 = vmatpush3.bf16.msra.mxu0 %v4703_v27  ;;  %v603_v27 = vld [vmem:[%s5624_s29 + $0x38] sm:$0xff]  }
 0x1b5   : > { %4372 = vmatprep.subr.bf16.mxu0 %v4708_v43  ;;  %4343 = vmatmul.mubr.msk.bf16.gmra.mrb[4].mxu1 %vm5963_vm13, %v5949_v33 }
 0x1b6   : > { %4346 = vmatprep.mubr.msk.bf16.mxu1 %vm5967_vm5, %v5958_v38  ;;  %4003 = vmatpush3.bf16.msra.mxu1 %v4710_v30 }
 0x1b7   : > { %4004 = vmatprep.subr.bf16.mxu1 %v4711_v55 }
 0x1b8   : > { %4373 = vmatpush3.bf16.msra.mxu0 %v4708_v43  ;;  %v6116_v43 = vld [vmem:[#allocation14 + $0x80] sm:$0xff]  }
 0x1b9   : > { %4374 = vmatprep.subr.bf16.mxu0 %v4713_v58 }
 0x1ba   : > { %4005 = vmatpush3.bf16.msra.mxu1 %v4712_v62 }
 0x1bb   : > { %3513 = vmatmul.mubr.msk.bf16.gmra.mrb[8].mxu0 %vm5832_vm10, %v5841_v0  ;;  %4006 = vmatprep.subr.bf16.mxu1 %v4714_v4  ;;  %v3480_v0 = vcombine.low %v711_v54, %v711_v54 }
 0x1bc   : > { %3514 = vmatprep.mubr.msk.bf16.mxu0 %vm5928_vm11, %v5881_v11  ;;  %4375 = vmatpush3.bf16.msra.mxu0 %v4713_v58 }
 0x1bd   : > { %4347 = vmatmul.mubr.msk.bf16.gmra.mrb[8].mxu1 %vm5984_vm12, %v595_v56  ;;  %vm6041_vm10 = vcmp.ne.s16.totalorder %v3480_v0, 0  ;;  %4376 = vmatprep.subr.bf16.mxu0 %v4718_v34 }
 0x1be   : > { %4350 = vmatprep.mubr.msk.bf16.mxu1 %vm5994_vm6, %v597_v59  ;;  %4007 = vmatpush3.bf16.msra.mxu1 %v4715_v6 }
 0x1c0   : > { %4377 = vmatpush3.bf16.msra.mxu0 %v4718_v34 }
 0x1c1   : > { %4378 = vmatprep.subr.bf16.mxu0 %v4723_v41 }
 0x1c3   : > { %3515 = vmatmul.mubr.msk.bf16.gmra.mrb[12].mxu0 %vm5913_vm4, %v5904_v18  ;;  %v3482_v18 = vcombine.low %v713_v60, %v713_v60 }
 0x1c4   : > { %3516 = vmatprep.mubr.msk.bf16.mxu0 %vm5963_vm13, %v5949_v33  ;;  %4379 = vmatpush3.bf16.msra.mxu0 %v4723_v41 }
 0x1c5   : > { %4351 = vmatmul.mubr.msk.bf16.gmra.mrb[12].mxu1 %vm6021_vm9, %v599_v16  ;;  %vm6060_vm4 = vcmp.ne.s16.totalorder %v3482_v18, 0  ;;  %4380 = vmatprep.subr.bf16.mxu0 %v4724_v42 }
 0x1c6   : > { %4354 = vmatprep.mubr.msk.bf16.mxu1 %vm6028_vm7, %v601_v61 }
 0x1c8   : > { %4381 = vmatpush3.bf16.msra.mxu0 %v4724_v42 }
 0x1c9   : > { %4120 = vmatprep.subr.bf16.mxu0 %v4728_v44 }
 0x1cb   : > { %3517 = vmatmul.mubr.msk.bf16.gmra.mrb[16].mxu0 %vm5928_vm11, %v5881_v11  ;;  %v610_v11 = vld [vmem:[#allocation3 + $0x10] sm:$0xff]  ;;  %vm1461_vm11 = vcmp.lt.s32.totalorder %v5719_v17, 15 }
 0x1cc   : > { %3518 = vmatprep.mubr.msk.bf16.mxu0 %vm5967_vm5, %v5958_v38 }
 0x1cd   : > { %4355 = vmatmul.mubr.msk.bf16.gmra.mrb[16].mxu1 %vm6041_vm10, %v603_v27 }
 0x1ce   : > { %4358 = vmatprep.mubr.msk.bf16.mxu1 %vm6048_vm2, %v608_v28 }
 0x1d3   : > { %3519 = vmatmul.mubr.msk.bf16.gmra.mrb[20].mxu0 %vm5963_vm13, %v5949_v33  ;;  %v4716_v33 = vld [vmem:[#allocation11 + $0x68] sm:$0xff]   ;;  %vm1526_vm13 = vmpackc.low %vm1461_vm11, %vm1461_vm11  ;;  %vm6879_vm11 = vnez %v6816_v53 }
 0x1d4   : > { %3520 = vmatprep.mubr.msk.bf16.mxu0 %vm5984_vm12, %v595_v56  ;;  %4008 = vmatprep.subr.bf16.mxu1 %v4716_v33 }
 0x1d5   : > { %4359 = vmatmul.mubr.msk.bf16.gmra.mrb[20].mxu1 %vm6060_vm4, %v609_v24 }
 0x1d6   : > { %4362 = vmatprep.mubr.msk.bf16.mxu1 %vm6067_vm3, %v610_v11  ;;  %4009 = vmatpush3.bf16.msra.mxu1 %v4717_v29 }
 0x1d7   : > { %4010 = vmatprep.subr.bf16.mxu1 %v4719_v36  ;;  %v1528_v36 = vsel %vm1526_vm13, 65537, %v5224_v47  ;;  %vm6882_vm13 = vnez %v6832_v9 }
 0x1db   : > { %3521 = vmatmul.mubr.msk.bf16.gmra.mrb[24].mxu0 %vm5967_vm5, %v5958_v38  ;;  %v4720_v38 = vld [vmem:[#allocation11 + $0x30] sm:$0xff]   ;;  %vm1303_vm5 = vcmp.ge.s32.totalorder %v5664_v7, 1 }
 0x1dc   : > { %3522 = vmatprep.mubr.msk.bf16.mxu0 %vm5994_vm6, %v597_v59  ;;  %4011 = vmatpush3.bf16.msra.mxu1 %v4720_v38 }
 0x1dd   : > { %4363 = vmatmul.mubr.bf16.gmra.mrb[24].mxu1 %v5224_v47  ;;  %4012 = vmatprep.subr.bf16.mxu1 %v4721_v39 }
 0x1e0   : > { %4013 = vmatpush3.bf16.msra.mxu1 %v4722_v40 }
 0x1e1   : > { %4410 = vmatprep.subr.bf16.mxu1 %v6116_v43 }
 0x1e3   : > { %3523 = vmatmul.mubr.msk.bf16.gmra.mrb[28].mxu0 %vm5984_vm12, %v595_v56  ;;  %vm5225_vm12 = vmmov 1  }
 0x1e4   : > { %3524 = vmatprep.mubr.msk.bf16.mxu0 %vm6021_vm9, %v599_v16 }
 0x1eb   : > { %3525 = vmatmul.mubr.msk.bf16.gmra.mrb[32].mxu0 %vm5994_vm6, %v597_v59  ;;  %vm1431_vm6 = vcmask 1040384  }
 0x1ec   : > { %3526 = vmatprep.mubr.msk.bf16.mxu0 %vm6028_vm7, %v601_v61 }
 0x1f3   : > { %3527 = vmatmul.mubr.msk.bf16.gmra.mrb[36].mxu0 %vm6021_vm9, %v599_v16 }
 0x1f4   : > { %3528 = vmatprep.mubr.msk.bf16.mxu0 %vm6041_vm10, %v603_v27 }
 0x1fb   : > { %3529 = vmatmul.mubr.msk.bf16.gmra.mrb[40].mxu0 %vm6028_vm7, %v601_v61  ;;  %vm1438_vm7 = vmpackc.low %vm1303_vm5, %vm1303_vm5 }
 0x1fc   : > { %3530 = vmatprep.mubr.msk.bf16.mxu0 %vm6048_vm2, %v608_v28  ;;  %v1440_v4 = vsel %vm1438_vm7, 65537, %v5224_v47  ;;  %vm1518_vm7 = vcmask 1047552  }
 0x203   : > { %3531 = vmatmul.mubr.msk.bf16.gmra.mrb[44].mxu0 %vm6041_vm10, %v603_v27 }
 0x204   : > { %3532 = vmatprep.mubr.msk.bf16.mxu0 %vm6060_vm4, %v609_v24 }
 0x20b   : > { %3533 = vmatmul.mubr.msk.bf16.gmra.mrb[48].mxu0 %vm6048_vm2, %v608_v28  ;;  %vm1305_vm2 = vsmask.f32 256 }
 0x20c   : > { %3534 = vmatprep.mubr.msk.bf16.mxu0 %vm6067_vm3, %v610_v11  ;;  %vm1439_vm3 = vmpackc.low %vm5225_vm12, %vm5225_vm12 }
 0x20d   : > { %v6126_v5 = vsel %vm1439_vm3, 65537, %v5224_v47  ;;  %vm6139_vm9 = vmand %vm1431_vm6, %vm1305_vm2  ;;  %vm6878_vm3 = vnez %v6813_v37 }
 0x20e   : > { %v3549_v18 = vcombine.low %v1440_v4, %v6126_v5 }
 0x210   : > { %vm6143_vm10 = vcmp.ne.s16.totalorder %v3549_v18, 0 }
 0x213   : > { %3535 = vmatmul.mubr.msk.bf16.gmra.mrb[52].mxu0 %vm6060_vm4, %v609_v24  ;;  %vm1462_vm4 = vsmask.f32 7424 }
 0x214   : > { %vm1519_vm12 = vmand %vm1518_vm7, %vm1462_vm4 }
 0x27e   : > { %v3892_v45 = vpop.f32.mrb[0].mxu0 }
 0x27f   : > { %v3893_v46 = vpop.f32.mrb[1].mxu0 }
 0x280   : > { %v3894_v50 = vadd.f32 %v3893_v46, %v3892_v45  ;;  %v3895_v51 = vpop.f32.mrb[2].mxu0  ;;  %v4340_v52 = vpop.f32.mrb[0].mxu1 }
 0x281   : > { %v3896_v30 = vpop.f32.mrb[3].mxu0  ;;  %v1149_v56 = vpop.f32.mrb[1].mxu1 }
 0x282   : > { %v3897_v54 = vadd.f32 %v3896_v30, %v3895_v51  ;;  %v1005_v55 = vadd.f32 %v3894_v50, %v6119_v48  ;;  %v4341_v57 = vpop.f32.mrb[2].mxu1  ;;  %v3550_v30 = vcombine.low %v6126_v5, %v1528_v36 }
 0x283   : > { %v1152_v60 = vpop.f32.mrb[3].mxu1 }
 0x284   : > { %v1150_v58 = vadd.f32 %v1149_v56, %v1005_v55  ;;  %v1008_v59 = vadd.f32 %v3897_v54, %v6119_v48  ;;  %v4726_v54 = vld [vmem:[#allocation14 + $0x88] sm:$0xff]   ;;  %vm6163_vm5 = vcmp.ne.s16.totalorder %v3550_v30, 0 }
 0x286   : > { %v1153_v62 = vadd.f32 %v1152_v60, %v1008_v59  ;;  %v3898_v63 = vpop.f32.mrb[4].mxu0  ;;  %v1260_v6 = vmax.f32 %v1150_v58, 0.0 }
 0x287   : > { %v3899_v2 = vpop.f32.mrb[5].mxu0 }
 0x288   : > { %v1261_v10 = vmax.f32 %v1153_v62, 0.0  ;;  %v3900_v13 = vadd.f32 %v3899_v2, %v3898_v63  ;;  %v3901_v16 = vpop.f32.mrb[6].mxu0  ;;  %v6129_v0 = vpop.f32.mrb[4].mxu1 }
 0x289   : > { %v3902_v61 = vpop.f32.mrb[7].mxu0  ;;  %v1165_v27 = vpop.f32.mrb[5].mxu1 }
 0x28a   : > { %v1289_v20 = vpack.c.bf16 %v1261_v10, %v1260_v6  ;;  %v1013_v22 = vadd.f32 %v3900_v13, %v6119_v48  ;;  %v3903_v25 = vadd.f32 %v3902_v61, %v3901_v16  ;;  %v6133_v21 = vpop.f32.mrb[6].mxu1  ;;  %v4727_v13 = vld [vmem:[#allocation14 + $0x90] sm:$0xff]  }
 0x28b   : > { %v1168_v24 = vpop.f32.mrb[7].mxu1 }
 0x28c   : > { %v1307_v28 = vshrl.u32 %v1289_v20, 16  ;;  %v1158_v31 = vadd.f32 %v4340_v52, %v1013_v22  ;;  %v1016_v32 = vadd.f32 %v3903_v25, %v6119_v48  ;;  %1777 = vmatprep.mubr.bf16.mxu1 %v1289_v20  ;;  %v1310_v11 = vshll.u32 %v1289_v20, 16 }
 0x28e   : > { %v1309_v33 = vrot.slane %v1307_v28, 7  ;;  %v1161_v29 = vadd.f32 %v4341_v57, %v1016_v32  ;;  %v3904_v34 = vpop.f32.mrb[8].mxu0  ;;  %v1262_v42 = vmax.f32 %v1158_v31, 0.0  ;;  %v1463_v50 = vrot.slane %v1310_v11, 1 }
 0x28f   : > { %v3905_v38 = vpop.f32.mrb[9].mxu0 }
 0x290   : > { %v1312_v41 = vor.u32 %v1310_v11, %v1309_v33  ;;  %v1263_v44 = vmax.f32 %v1161_v29, 0.0  ;;  %v3906_v45 = vadd.f32 %v3905_v38, %v3904_v34  ;;  %v3907_v46 = vpop.f32.mrb[10].mxu0  ;;  %v6148_v52 = vpop.f32.mrb[8].mxu1  ;;  %v1464_v20 = vor.u32 %v1463_v50, %v1307_v28 }
 0x291   : > { %v3908_v51 = vpop.f32.mrb[11].mxu0  ;;  %v6153_v59 = vpop.f32.mrb[9].mxu1 }
 0x292   : > { %v3909_v55 = vadd.f32 %v3908_v51, %v3907_v46  ;;  %v1021_v56 = vadd.f32 %v3906_v45, %v6119_v48  ;;  %v1433_v57 = vsel %vm6139_vm9, 0, %v1312_v41  ;;  %v1290_v58 = vpack.c.bf16 %v1263_v44, %v1262_v42  ;;  %v6157_v60 = vpop.f32.mrb[10].mxu1  ;;  %v4730_v41 = vld [vmem:[#allocation14 + $0x98] sm:$0xff]  }
 0x293   : > { %3576 = vmatmul.mubr.msk.bf16.vlgmr.msra.gmra.mrb[28].mxu1 %vm6143_vm10, %v1433_v57  ;;  %v6160_v6 = vpop.f32.mrb[11].mxu1  ;;  %vm6883_vm9 = vnez %v6835_v12 }
 0x294   : > { %v1166_v62 = vadd.f32 %v1165_v27, %v1021_v56  ;;  %v1314_v63 = vshrl.u32 %v1290_v58, 16  ;;  %v1317_v2 = vshll.u32 %v1290_v58, 16  ;;  %1785 = vmatprep.mubr.bf16.mxu1 %v1290_v58  ;;  %v1024_v4 = vadd.f32 %v3909_v55, %v6119_v48  ;;  %4411 = vmatpush3.bf16.msra.mxu1 %v6116_v43  ;;  %v4729_v58 = vld [vmem:[#allocation14] sm:$0xff]  }
 0x295   : > { %4412 = vmatprep.subr.bf16.mxu1 %v4726_v54 }
 0x296   : > { %v1169_v16 = vadd.f32 %v1168_v24, %v1024_v4  ;;  %v3910_v61 = vpop.f32.mrb[12].mxu0  ;;  %v1465_v22 = vrot.slane %v1317_v2, 1  ;;  %v1316_v25 = vrot.slane %v1314_v63, 7  ;;  %v1264_v18 = vmax.f32 %v1166_v62, 0.0 }
 0x297   : > { %v3911_v27 = vpop.f32.mrb[13].mxu0 }
 0x298   : > { %v1265_v31 = vmax.f32 %v1169_v16, 0.0  ;;  %v3912_v32 = vadd.f32 %v3911_v27, %v3910_v61  ;;  %v3913_v11 = vpop.f32.mrb[14].mxu0  ;;  %v1466_v29 = vsel %vm1462_vm4, %v1464_v20, %v1465_v22  ;;  %4413 = vmatpush3.bf16.msra.mxu1 %v4726_v54  ;;  %v1319_v34 = vor.u32 %v1317_v2, %v1316_v25  ;;  %v6170_v36 = vpop.f32.mrb[12].mxu1 }
 0x299   : > { %v3914_v43 = vpop.f32.mrb[15].mxu0  ;;  %4382 = vmatprep.mubr.msk.bf16.mxu0 %vm6163_vm5, %v1466_v29  ;;  %4414 = vmatprep.subr.bf16.mxu1 %v4727_v13  ;;  %v6173_v39 = vpop.f32.mrb[13].mxu1 }
 0x29a   : > { %v1291_v24 = vpack.c.bf16 %v1265_v31, %v1264_v18  ;;  %v1029_v28 = vadd.f32 %v3912_v32, %v6119_v48  ;;  %v3915_v38 = vadd.f32 %v3914_v43, %v3913_v11  ;;  %v1320_v42 = vsel %vm1305_vm2, %v1309_v33, %v1319_v34  ;;  %v6176_v44 = vpop.f32.mrb[14].mxu1  ;;  %v4732_v11 = vld [vmem:[#allocation14 + $0x8] sm:$0xff]   ;;  %v4733_v43 = vld [vmem:[#allocation14 + $0x50] sm:$0xff]  }
 0x29b   : > { %3577 = vmatmul.mubr.msk.bf16.gmra.mrb[32].mxu1 %vm6143_vm10, %v1320_v42  ;;  %v6182_v30 = vpop.f32.mrb[15].mxu1  ;;  %v1467_v33 = vor.u32 %v1465_v22, %v1314_v63 }
 0x29c   : > { %v1322_v45 = vshrl.u32 %v1291_v24, 16  ;;  %v1325_v46 = vshll.u32 %v1291_v24, 16  ;;  %v1174_v50 = vadd.f32 %v6129_v0, %v1029_v28  ;;  %v1032_v51 = vadd.f32 %v3915_v38, %v6119_v48  ;;  %1793 = vmatprep.mubr.bf16.mxu1 %v1291_v24  ;;  %4415 = vmatpush3.bf16.msra.mxu1 %v4727_v13  ;;  %v4731_v0 = vld [vmem:[#allocation14 + $0x48] sm:$0xff]  }
 0x29d   : > { %4416 = vmatprep.subr.bf16.mxu1 %v4730_v41 }
 0x29e   : > { %v1324_v54 = vrot.slane %v1322_v45, 7  ;;  %v1468_v55 = vrot.slane %v1325_v46, 1  ;;  %v1177_v56 = vadd.f32 %v6133_v21, %v1032_v51  ;;  %v3916_v57 = vpop.f32.mrb[16].mxu0  ;;  %v1266_v62 = vmax.f32 %v1174_v50, 0.0 }
 0x29f   : > { %v3917_v2 = vpop.f32.mrb[17].mxu0 }
 0x2a0   : > { %v1267_v4 = vmax.f32 %v1177_v56, 0.0  ;;  %v3918_v16 = vadd.f32 %v3917_v2, %v3916_v57  ;;  %v3919_v61 = vpop.f32.mrb[18].mxu0  ;;  %v1469_v20 = vsel %vm1462_vm4, %v1467_v33, %v1468_v55  ;;  %v1327_v27 = vor.u32 %v1325_v46, %v1324_v54  ;;  %v6188_v13 = vpop.f32.mrb[16].mxu1  ;;  %4417 = vmatpush3.bf16.msra.mxu1 %v4730_v41  ;;  %v4734_v56 = vld [vmem:[#allocation14 + $0x10] sm:$0xff]  }
 0x2a1   : > { %v3920_v18 = vpop.f32.mrb[19].mxu0  ;;  %4383 = vmatmul.mubr.msk.bf16.vlgmr.msra.gmra.mrb[56].mxu0 %vm6163_vm5, %v1469_v20  ;;  %v6192_v32 = vpop.f32.mrb[17].mxu1  ;;  %v1470_v46 = vor.u32 %v1468_v55, %v1322_v45 }
 0x2a2   : > { %v3921_v21 = vadd.f32 %v3920_v18, %v3919_v61  ;;  %v1037_v63 = vadd.f32 %v3918_v16, %v6119_v48  ;;  %v1328_v22 = vsel %vm1305_vm2, %v1316_v25, %v1327_v27  ;;  %v1292_v31 = vpack.c.bf16 %v1267_v4, %v1266_v62  ;;  %4121 = vmatpush3.bf16.msra.mxu0 %v4729_v58  ;;  %v6194_v29 = vpop.f32.mrb[18].mxu1 }
 0x2a3   : > { %4122 = vmatprep.subr.bf16.mxu0 %v4731_v0  ;;  %3578 = vmatmul.mubr.msk.bf16.gmra.mrb[36].mxu1 %vm6143_vm10, %v1328_v22  ;;  %v6200_v41 = vpop.f32.mrb[19].mxu1 }
 0x2a4   : > { %v1182_v34 = vadd.f32 %v6153_v59, %v1037_v63  ;;  %v1330_v24 = vshrl.u32 %v1292_v31, 16  ;;  %v1333_v28 = vshll.u32 %v1292_v31, 16  ;;  %v1040_v38 = vadd.f32 %v3921_v21, %v6119_v48  ;;  %1801 = vmatprep.mubr.bf16.mxu1 %v1292_v31 }
 0x2a6   : > { %v1185_v25 = vadd.f32 %v6160_v6, %v1040_v38  ;;  %v3922_v42 = vpop.f32.mrb[20].mxu0  ;;  %v1471_v50 = vrot.slane %v1333_v28, 1  ;;  %v1332_v51 = vrot.slane %v1330_v24, 7  ;;  %4123 = vmatpush3.bf16.msra.mxu0 %v4732_v11  ;;  %v1268_v33 = vmax.f32 %v1182_v34, 0.0 }
 0x2a7   : > { %v3923_v59 = vpop.f32.mrb[21].mxu0  ;;  %4124 = vmatprep.subr.bf16.mxu0 %v4733_v43 }
 0x2a8   : > { %v1269_v57 = vmax.f32 %v1185_v25, 0.0  ;;  %v3924_v58 = vadd.f32 %v3923_v59, %v3922_v42  ;;  %v3925_v62 = vpop.f32.mrb[22].mxu0  ;;  %v1472_v2 = vsel %vm1462_vm4, %v1470_v46, %v1471_v50  ;;  %v1335_v0 = vor.u32 %v1333_v28, %v1332_v51  ;;  %v6206_v6 = vpop.f32.mrb[20].mxu1 }
 0x2a9   : > { %v3926_v4 = vpop.f32.mrb[23].mxu0  ;;  %4386 = vmatprep.mubr.msk.bf16.mxu0 %vm6163_vm5, %v1472_v2  ;;  %v6210_v20 = vpop.f32.mrb[21].mxu1  ;;  %v1473_v34 = vor.u32 %v1471_v50, %v1330_v24 }
 0x2aa   : > { %v1293_v45 = vpack.c.bf16 %v1269_v57, %v1268_v33  ;;  %v1045_v55 = vadd.f32 %v3924_v58, %v6119_v48  ;;  %v3927_v16 = vadd.f32 %v3926_v4, %v3925_v62  ;;  %v1336_v61 = vsel %vm1305_vm2, %v1324_v54, %v1335_v0  ;;  %4125 = vmatpush3.bf16.msra.mxu0 %v4734_v56  ;;  %v6212_v27 = vpop.f32.mrb[22].mxu1 }
 0x2ab   : > { %3579 = vmatmul.mubr.msk.bf16.gmra.mrb[40].mxu1 %vm6143_vm10, %v1336_v61  ;;  %v6218_v31 = vpop.f32.mrb[23].mxu1 }
 0x2ac   : > { %v1338_v18 = vshrl.u32 %v1293_v45, 16  ;;  %v1341_v21 = vshll.u32 %v1293_v45, 16  ;;  %v1190_v63 = vadd.f32 %v6148_v52, %v1045_v55  ;;  %v1048_v22 = vadd.f32 %v3927_v16, %v6119_v48  ;;  %1809 = vmatprep.mubr.bf16.mxu1 %v1293_v45 }
 0x2ae   : > { %v1340_v11 = vrot.slane %v1338_v18, 7  ;;  %v1193_v54 = vadd.f32 %v6157_v60, %v1048_v22  ;;  %v3928_v43 = vpop.f32.mrb[24].mxu0  ;;  %v1474_v28 = vrot.slane %v1341_v21, 1  ;;  %v1270_v38 = vmax.f32 %v1190_v63, 0.0 }
 0x2af   : > { %v3929_v25 = vpop.f32.mrb[25].mxu0 }
 0x2b0   : > { %v1271_v42 = vmax.f32 %v1193_v54, 0.0  ;;  %v3930_v46 = vadd.f32 %v3929_v25, %v3928_v43  ;;  %v3931_v56 = vpop.f32.mrb[26].mxu0  ;;  %v1475_v52 = vsel %vm1462_vm4, %v1473_v34, %v1474_v28  ;;  %v1343_v33 = vor.u32 %v1341_v21, %v1340_v11  ;;  %v6224_v57 = vpop.f32.mrb[24].mxu1 }
 0x2b1   : > { %v3932_v59 = vpop.f32.mrb[27].mxu0  ;;  %4387 = vmatmul.mubr.msk.bf16.gmra.mrb[60].mxu0 %vm6163_vm5, %v1475_v52  ;;  %v6228_v62 = vpop.f32.mrb[25].mxu1  ;;  %v1476_v21 = vor.u32 %v1474_v28, %v1338_v18 }
 0x2b2   : > { %v3933_v58 = vadd.f32 %v3932_v59, %v3931_v56  ;;  %v1053_v60 = vadd.f32 %v3930_v46, %v6119_v48  ;;  %v1344_v24 = vsel %vm1305_vm2, %v1332_v51, %v1343_v33  ;;  %v1294_v50 = vpack.c.bf16 %v1271_v42, %v1270_v38  ;;  %v6230_v2 = vpop.f32.mrb[26].mxu1 }
 0x2b3   : > { %3580 = vmatmul.mubr.msk.bf16.gmra.mrb[44].mxu1 %vm6143_vm10, %v1344_v24  ;;  %v6236_v16 = vpop.f32.mrb[27].mxu1 }
 0x2b4   : > { %v1198_v0 = vadd.f32 %v6173_v39, %v1053_v60  ;;  %v1346_v4 = vshrl.u32 %v1294_v50, 16  ;;  %v1349_v45 = vshll.u32 %v1294_v50, 16  ;;  %v1056_v55 = vadd.f32 %v3933_v58, %v6119_v48  ;;  %1817 = vmatprep.mubr.bf16.mxu1 %v1294_v50 }
 0x2b6   : > { %v1201_v61 = vadd.f32 %v6182_v30, %v1056_v55  ;;  %v3934_v51 = vpop.f32.mrb[28].mxu0  ;;  %v1477_v63 = vrot.slane %v1349_v45, 1  ;;  %v1348_v22 = vrot.slane %v1346_v4, 7  ;;  %v1272_v54 = vmax.f32 %v1198_v0, 0.0 }
 0x2b7   : > { %v3935_v43 = vpop.f32.mrb[29].mxu0 }
 0x2b8   : > { %v1273_v34 = vmax.f32 %v1201_v61, 0.0  ;;  %v3936_v39 = vadd.f32 %v3935_v43, %v3934_v51  ;;  %v3937_v38 = vpop.f32.mrb[30].mxu0  ;;  %v1478_v25 = vsel %vm1462_vm4, %v1476_v21, %v1477_v63  ;;  %v1351_v42 = vor.u32 %v1349_v45, %v1348_v22 }
 0x2b9   : > { %v3938_v46 = vpop.f32.mrb[31].mxu0  ;;  %4390 = vmatprep.mubr.msk.bf16.mxu0 %vm6163_vm5, %v1478_v25  ;;  %v1479_v0 = vor.u32 %v1477_v63, %v1346_v4 }
 0x2ba   : > { %v1295_v56 = vpack.c.bf16 %v1273_v34, %v1272_v54  ;;  %v1061_v52 = vadd.f32 %v3936_v39, %v6119_v48  ;;  %v3939_v30 = vadd.f32 %v3938_v46, %v3937_v38  ;;  %v1352_v18 = vsel %vm1305_vm2, %v1340_v11, %v1351_v42 }
 0x2bb   : > { %3581 = vmatmul.mubr.msk.bf16.gmra.mrb[48].mxu1 %vm6143_vm10, %v1352_v18 }
 0x2bc   : > { %v1354_v28 = vshrl.u32 %v1295_v56, 16  ;;  %v1357_v33 = vshll.u32 %v1295_v56, 16  ;;  %v1206_v59 = vadd.f32 %v6170_v36, %v1061_v52  ;;  %v1064_v58 = vadd.f32 %v3939_v30, %v6119_v48  ;;  %1825 = vmatprep.mubr.bf16.mxu1 %v1295_v56 }
 0x2be   : > { %v1356_v60 = vrot.slane %v1354_v28, 7  ;;  %v1209_v24 = vadd.f32 %v6176_v44, %v1064_v58  ;;  %v3940_v50 = vpop.f32.mrb[32].mxu0  ;;  %v1480_v45 = vrot.slane %v1357_v33, 1  ;;  %v1274_v55 = vmax.f32 %v1206_v59, 0.0 }
 0x2bf   : > { %v3941_v61 = vpop.f32.mrb[33].mxu0 }
 0x2c0   : > { %v1275_v51 = vmax.f32 %v1209_v24, 0.0  ;;  %v3942_v11 = vadd.f32 %v3941_v61, %v3940_v50  ;;  %v3943_v21 = vpop.f32.mrb[34].mxu0  ;;  %v1481_v54 = vsel %vm1462_vm4, %v1479_v0, %v1480_v45  ;;  %v1359_v36 = vor.u32 %v1357_v33, %v1356_v60 }
 0x2c1   : > { %v3944_v43 = vpop.f32.mrb[35].mxu0  ;;  %4391 = vmatmul.mubr.msk.bf16.gmra.mrb[64].mxu0 %vm6163_vm5, %v1481_v54  ;;  %v1482_v52 = vor.u32 %v1480_v45, %v1354_v28 }
 0x2c2   : > { %v1069_v34 = vadd.f32 %v3942_v11, %v6119_v48  ;;  %v3945_v39 = vadd.f32 %v3944_v43, %v3943_v21  ;;  %v1360_v44 = vsel %vm1305_vm2, %v1348_v22, %v1359_v36  ;;  %v1296_v38 = vpack.c.bf16 %v1275_v51, %v1274_v55 }
 0x2c3   : > { %3582 = vmatmul.mubr.msk.bf16.gmra.mrb[52].mxu1 %vm6143_vm10, %v1360_v44 }
 0x2c4   : > { %v1214_v4 = vadd.f32 %v6192_v32, %v1069_v34  ;;  %v1072_v63 = vadd.f32 %v3945_v39, %v6119_v48  ;;  %v1362_v25 = vshrl.u32 %v1296_v38, 16  ;;  %v1365_v42 = vshll.u32 %v1296_v38, 16  ;;  %1833 = vmatprep.mubr.bf16.mxu1 %v1296_v38 }
 0x2c6   : > { %v1217_v46 = vadd.f32 %v6200_v41, %v1072_v63  ;;  %v3946_v56 = vpop.f32.mrb[36].mxu0  ;;  %v1483_v30 = vrot.slane %v1365_v42, 1  ;;  %v1364_v18 = vrot.slane %v1362_v25, 7  ;;  %v1276_v33 = vmax.f32 %v1214_v4, 0.0 }
 0x2c7   : > { %v3947_v59 = vpop.f32.mrb[37].mxu0 }
 0x2c8   : > { %v1277_v22 = vmax.f32 %v1217_v46, 0.0  ;;  %v3948_v58 = vadd.f32 %v3947_v59, %v3946_v56  ;;  %v3949_v24 = vpop.f32.mrb[38].mxu0  ;;  %v1484_v32 = vsel %vm1462_vm4, %v1482_v52, %v1483_v30  ;;  %v1367_v50 = vor.u32 %v1365_v42, %v1364_v18 }
 0x2c9   : > { %v3950_v0 = vpop.f32.mrb[39].mxu0  ;;  %4394 = vmatprep.mubr.msk.bf16.mxu0 %vm6163_vm5, %v1484_v32  ;;  %v1485_v34 = vor.u32 %v1483_v30, %v1362_v25 }
 0x2ca   : > { %v1297_v55 = vpack.c.bf16 %v1277_v22, %v1276_v33  ;;  %v1077_v61 = vadd.f32 %v3948_v58, %v6119_v48  ;;  %v3951_v41 = vadd.f32 %v3950_v0, %v3949_v24  ;;  %v1368_v28 = vsel %vm1305_vm2, %v1356_v60, %v1367_v50 }
 0x2cb   : > { %3583 = vmatmul.mubr.msk.bf16.gmra.mrb[56].mxu1 %vm6143_vm10, %v1368_v28 }
 0x2cc   : > { %v1370_v45 = vshrl.u32 %v1297_v55, 16  ;;  %v1373_v51 = vshll.u32 %v1297_v55, 16  ;;  %v1222_v11 = vadd.f32 %v6188_v13, %v1077_v61  ;;  %v1080_v21 = vadd.f32 %v3951_v41, %v6119_v48  ;;  %1841 = vmatprep.mubr.bf16.mxu1 %v1297_v55 }
 0x2ce   : > { %v1372_v54 = vrot.slane %v1370_v45, 7  ;;  %v1225_v36 = vadd.f32 %v6194_v29, %v1080_v21  ;;  %v3952_v43 = vpop.f32.mrb[40].mxu0  ;;  %v1486_v39 = vrot.slane %v1373_v51, 1  ;;  %v1278_v44 = vmax.f32 %v1222_v11, 0.0 }
 0x2cf   : > { %v3953_v38 = vpop.f32.mrb[41].mxu0 }
 0x2d0   : > { %v1279_v4 = vmax.f32 %v1225_v36, 0.0  ;;  %v3954_v60 = vadd.f32 %v3953_v38, %v3952_v43  ;;  %v3955_v63 = vpop.f32.mrb[42].mxu0  ;;  %v1487_v42 = vsel %vm1462_vm4, %v1485_v34, %v1486_v39  ;;  %v1375_v13 = vor.u32 %v1373_v51, %v1372_v54 }
 0x2d1   : > { %v3956_v46 = vpop.f32.mrb[43].mxu0  ;;  %4395 = vmatmul.mubr.msk.bf16.gmra.mrb[68].mxu0 %vm6163_vm5, %v1487_v42  ;;  %v1488_v32 = vor.u32 %v1486_v39, %v1370_v45 }
 0x2d2   : > { %v1085_v56 = vadd.f32 %v3954_v60, %v6119_v48  ;;  %v3957_v52 = vadd.f32 %v3956_v46, %v3955_v63  ;;  %v1376_v29 = vsel %vm1305_vm2, %v1364_v18, %v1375_v13  ;;  %v1298_v33 = vpack.c.bf16 %v1279_v4, %v1278_v44 }
 0x2d3   : > { %3584 = vmatmul.mubr.msk.bf16.gmra.mrb[60].mxu1 %vm6143_vm10, %v1376_v29 }
 0x2d4   : > { %v1230_v25 = vadd.f32 %v6210_v20, %v1085_v56  ;;  %v1088_v30 = vadd.f32 %v3957_v52, %v6119_v48  ;;  %v1378_v59 = vshrl.u32 %v1298_v33, 16  ;;  %v1381_v22 = vshll.u32 %v1298_v33, 16  ;;  %1849 = vmatprep.mubr.bf16.mxu1 %v1298_v33 }
 0x2d6   : > { %v1233_v58 = vadd.f32 %v6218_v31, %v1088_v30  ;;  %v3958_v24 = vpop.f32.mrb[44].mxu0  ;;  %v1489_v50 = vrot.slane %v1381_v22, 1  ;;  %v1380_v0 = vrot.slane %v1378_v59, 7  ;;  %v1280_v55 = vmax.f32 %v1230_v25, 0.0 }
 0x2d7   : > { %v3959_v61 = vpop.f32.mrb[45].mxu0 }
 0x2d8   : > { %v1281_v18 = vmax.f32 %v1233_v58, 0.0  ;;  %v3960_v41 = vadd.f32 %v3959_v61, %v3958_v24  ;;  %v3961_v28 = vpop.f32.mrb[46].mxu0  ;;  %v1490_v20 = vsel %vm1462_vm4, %v1488_v32, %v1489_v50  ;;  %v1383_v51 = vor.u32 %v1381_v22, %v1380_v0 }
 0x2d9   : > { %v3962_v11 = vpop.f32.mrb[47].mxu0  ;;  %4398 = vmatprep.mubr.msk.bf16.mxu0 %vm6163_vm5, %v1490_v20  ;;  %v1491_v63 = vor.u32 %v1489_v50, %v1378_v59 }
 0x2da   : > { %v1299_v21 = vpack.c.bf16 %v1281_v18, %v1280_v55  ;;  %v1093_v36 = vadd.f32 %v3960_v41, %v6119_v48  ;;  %v3963_v31 = vadd.f32 %v3962_v11, %v3961_v28  ;;  %v1384_v45 = vsel %vm1305_vm2, %v1372_v54, %v1383_v51  ;;  %v4735_v28 = vld [vmem:[#allocation14 + $0xa0] sm:$0xff]  }
 0x2db   : > { %3585 = vmatmul.mubr.msk.bf16.gmra.mrb[64].mxu1 %vm6143_vm10, %v1384_v45  ;;  %4418 = vmatprep.subr.bf16.mxu1 %v4735_v28  ;;  %v4737_v45 = vld [vmem:[#allocation14 + $0x18] sm:$0xff]  }
 0x2dc   : > { %v1386_v43 = vshrl.u32 %v1299_v21, 16  ;;  %v1389_v34 = vshll.u32 %v1299_v21, 16  ;;  %v1238_v39 = vadd.f32 %v6206_v6, %v1093_v36  ;;  %v1096_v44 = vadd.f32 %v3963_v31, %v6119_v48  ;;  %1857 = vmatprep.mubr.bf16.mxu1 %v1299_v21  ;;  %v4736_v31 = vld [vmem:[#allocation14 + $0x58] sm:$0xff]   ;;  %4419 = vmatpush3.bf16.msra.mxu1 %v4735_v28 }
 0x2dd   : > { %4126 = vmatprep.subr.bf16.mxu0 %v4736_v31  ;;  %v6324_v31 = vld [vmem:[#allocation17 + $0x80] sm:$0xff]  }
 0x2de   : > { %v1388_v38 = vrot.slane %v1386_v43, 7  ;;  %v1241_v4 = vadd.f32 %v6212_v27, %v1096_v44  ;;  %v3964_v60 = vpop.f32.mrb[48].mxu0  ;;  %v1492_v42 = vrot.slane %v1389_v34, 1  ;;  %v1282_v13 = vmax.f32 %v1238_v39, 0.0  ;;  %4127 = vmatpush3.bf16.msra.mxu0 %v4737_v45  ;;  %v4750_v45 = vld [vmem:[#allocation17 + $0x40] sm:$0xff]  }
 0x2df   : > { %v3965_v46 = vpop.f32.mrb[49].mxu0 }
 0x2e0   : > { %v1283_v56 = vmax.f32 %v1241_v4, 0.0  ;;  %v3966_v54 = vadd.f32 %v3965_v46, %v3964_v60  ;;  %v3967_v52 = vpop.f32.mrb[50].mxu0  ;;  %v1493_v29 = vsel %vm1462_vm4, %v1491_v63, %v1492_v42  ;;  %v1391_v6 = vor.u32 %v1389_v34, %v1388_v38 }
 0x2e1   : > { %v3968_v33 = vpop.f32.mrb[51].mxu0  ;;  %4399 = vmatmul.mubr.msk.bf16.gmra.mrb[72].mxu0 %vm6163_vm5, %v1493_v29  ;;  %v1494_v61 = vor.u32 %v1492_v42, %v1386_v43  ;;  %v4739_v29 = vld [vmem:[#allocation14 + $0x20] sm:$0xff]  }
 0x2e2   : > { %v1101_v25 = vadd.f32 %v3966_v54, %v6119_v48  ;;  %v3969_v30 = vadd.f32 %v3968_v33, %v3967_v52  ;;  %v1392_v27 = vsel %vm1305_vm2, %v1380_v0, %v1391_v6  ;;  %v1300_v22 = vpack.c.bf16 %v1283_v56, %v1282_v13  ;;  %v4738_v52 = vld [vmem:[#allocation14 + $0x60] sm:$0xff]  }
 0x2e3   : > { %3586 = vmatmul.mubr.msk.bf16.gmra.mrb[68].mxu1 %vm6143_vm10, %v1392_v27  ;;  %4128 = vmatprep.subr.bf16.mxu0 %v4738_v52  ;;  %v4741_v27 = vld [vmem:[#allocation14 + $0x28] sm:$0xff]  }
 0x2e4   : > { %v1246_v59 = vadd.f32 %v6228_v62, %v1101_v25  ;;  %v1104_v58 = vadd.f32 %v3969_v30, %v6119_v48  ;;  %v1394_v24 = vshrl.u32 %v1300_v22, 16  ;;  %v1397_v32 = vshll.u32 %v1300_v22, 16  ;;  %1865 = vmatprep.mubr.bf16.mxu1 %v1300_v22  ;;  %4129 = vmatpush3.bf16.msra.mxu0 %v4739_v29  ;;  %v4740_v30 = vld [vmem:[#allocation14 + $0x68] sm:$0xff]  }
 0x2e5   : > { %4130 = vmatprep.subr.bf16.mxu0 %v4740_v30 }
 0x2e6   : > { %v1249_v50 = vadd.f32 %v6236_v16, %v1104_v58  ;;  %v3970_v55 = vpop.f32.mrb[52].mxu0  ;;  %v1495_v18 = vrot.slane %v1397_v32, 1  ;;  %v1396_v41 = vrot.slane %v1394_v24, 7  ;;  %v1284_v20 = vmax.f32 %v1246_v59, 0.0 }
 0x2e7   : > { %v3971_v0 = vpop.f32.mrb[53].mxu0 }
 0x2e8   : > { %v1285_v51 = vmax.f32 %v1249_v50, 0.0  ;;  %v3972_v11 = vadd.f32 %v3971_v0, %v3970_v55  ;;  %v3973_v62 = vpop.f32.mrb[54].mxu0  ;;  %v1496_v21 = vsel %vm1462_vm4, %v1494_v61, %v1495_v18  ;;  %v1399_v36 = vor.u32 %v1397_v32, %v1396_v41  ;;  %4131 = vmatpush3.bf16.msra.mxu0 %v4741_v27  ;;  %v4743_v32 = vld [vmem:[#allocation14 + $0x70] sm:$0xff]   ;;  %v4742_v50 = vld [vmem:[#allocation14 + $0xa8] sm:$0xff]   ;;  %v4745_v0 = vld [vmem:[#allocation14 + $0x78] sm:$0xff]  }
 0x2e9   : > { %v3974_v34 = vpop.f32.mrb[55].mxu0  ;;  %4402 = vmatprep.mubr.msk.bf16.mxu0 %vm6163_vm5, %v1496_v21  ;;  %v1497_v56 = vor.u32 %v1495_v18, %v1394_v24  ;;  %v4744_v55 = vld [vmem:[#allocation14 + $0x30] sm:$0xff]   ;;  %4132 = vmatprep.subr.bf16.mxu0 %v4743_v32 }
 0x2ea   : > { %v1301_v16 = vpack.c.bf16 %v1285_v51, %v1284_v20  ;;  %v1109_v43 = vadd.f32 %v3972_v11, %v6119_v48  ;;  %v3975_v39 = vadd.f32 %v3974_v34, %v3973_v62  ;;  %v1400_v44 = vsel %vm1305_vm2, %v1388_v38, %v1399_v36  ;;  %4420 = vmatprep.subr.bf16.mxu1 %v4742_v50  ;;  %v4746_v51 = vld [vmem:[#allocation14 + $0x38] sm:$0xff]   ;;  %v4747_v11 = vld [vmem:[#allocation14 + $0xb0] sm:$0xff]  }
 0x2eb   : > { %3587 = vmatmul.mubr.msk.bf16.gmra.mrb[72].mxu1 %vm6143_vm10, %v1400_v44  ;;  %v4748_v62 = vld [vmem:[#allocation14 + $0xb8] sm:$0xff]  }
 0x2ec   : > { %v1402_v4 = vshrl.u32 %v1301_v16, 16  ;;  %v1405_v60 = vshll.u32 %v1301_v16, 16  ;;  %v1254_v63 = vadd.f32 %v6224_v57, %v1109_v43  ;;  %v1112_v42 = vadd.f32 %v3975_v39, %v6119_v48  ;;  %1873 = vmatprep.mubr.bf16.mxu1 %v1301_v16  ;;  %4421 = vmatpush3.bf16.msra.mxu1 %v4742_v50 }
 0x2ed   : > { %4133 = vmatpush3.bf16.msra.mxu0 %v4744_v55  ;;  %4422 = vmatprep.subr.bf16.mxu1 %v4747_v11 }
 0x2ee   : > { %v1404_v13 = vrot.slane %v1402_v4, 7  ;;  %v1257_v46 = vadd.f32 %v6230_v2, %v1112_v42  ;;  %v1498_v54 = vrot.slane %v1405_v60, 1  ;;  %v1286_v38 = vmax.f32 %v1254_v63, 0.0  ;;  %4134 = vmatprep.subr.bf16.mxu0 %v4745_v0 }
 0x2f0   : > { %v1287_v6 = vmax.f32 %v1257_v46, 0.0  ;;  %v1499_v33 = vsel %vm1462_vm4, %v1497_v56, %v1498_v54  ;;  %v1407_v25 = vor.u32 %v1405_v60, %v1404_v13  ;;  %v1500_v59 = vor.u32 %v1498_v54, %v1402_v4  ;;  %4423 = vmatpush3.bf16.msra.mxu1 %v4747_v11  ;;  %v6327_v60 = vld [vmem:[#allocation13] ss:$0 sm:$0xff] }
 0x2f1   : > { %4403 = vmatmul.mubr.msk.bf16.gmra.mrb[76].mxu0 %vm6163_vm5, %v1499_v33  ;;  %4424 = vmatprep.subr.bf16.mxu1 %v4748_v62 }
 0x2f2   : > { %v1408_v48 = vsel %vm1305_vm2, %v1396_v41, %v1407_v25  ;;  %v1302_v57 = vpack.c.bf16 %v1287_v6, %v1286_v38  ;;  %4135 = vmatpush3.bf16.msra.mxu0 %v4746_v51 }
 0x2f3   : > { %3588 = vmatmul.mubr.msk.bf16.gmra.mrb[76].mxu1 %vm6143_vm10, %v1408_v48  ;;  %4454 = vmatprep.subr.bf16.mxu0 %v6324_v31 }
 0x2f4   : > { %v1410_v2 = vshrl.u32 %v1302_v57, 16  ;;  %v1413_v22 = vshll.u32 %v1302_v57, 16  ;;  %1881 = vmatprep.mubr.bf16.mxu1 %v1302_v57  ;;  %4425 = vmatpush3.bf16.msra.mxu1 %v4748_v62 }
 0x2f5   : > { %4242 = vmatprep.subr.bf16.mxu1 %v4750_v45 }
 0x2f6   : > { %v1501_v58 = vrot.slane %v1413_v22, 1  ;;  %v1412_v24 = vrot.slane %v1410_v2, 7 }
 0x2f8   : > { %v1502_v61 = vsel %vm1462_vm4, %v1500_v59, %v1501_v58  ;;  %v1415_v18 = vor.u32 %v1413_v22, %v1412_v24  ;;  %v1503_v41 = vor.u32 %v1501_v58, %v1410_v2 }
 0x2f9   : > { %4406 = vmatprep.mubr.msk.bf16.mxu0 %vm6163_vm5, %v1502_v61 }
 0x2fa   : > { %v1416_v28 = vsel %vm1305_vm2, %v1404_v13, %v1415_v18  ;;  %v1520_v20 = vsel %vm1519_vm12, %v1503_v41, 0  ;;  %v6335_v41 = vld [vmem:[#allocation17 + $0x88] sm:$0xff]   ;;  %vm6880_vm2 = vnez %v6823_v1  ;;  %vm2654_vm12 = vcmask 1046528  }
 0x2fb   : > { %4407 = vmatmul.mubr.msk.bf16.gmra.mrb[80].mxu0 %vm6163_vm5, %v1520_v20  ;;  %3589 = vmatmul.mubr.msk.bf16.gmra.mrb[80].mxu1 %vm6143_vm10, %v1416_v28  ;;  %vm6886_vm10 = vnez %v6855_v49  ;;  %v6460_v49 = vld [vmem:[#allocation17 + $0x98] sm:$0xff]   ;;  %vm2653_vm5 = vcmp.lt.s32.totalorder %v5719_v17, 14 }
 0x2fc   : > { %vm2686_vm7 = vmpackc.low %vm2653_vm5, %vm2653_vm5 }
 0x366   : > { %v4014_v21 = vpop.f32.mrb[28].mxu1 }
 0x367   : > { %v4015_v36 = vpop.f32.mrb[29].mxu1 }
 0x368   : > { %v4016_v34 = vadd.f32 %v4015_v36, %v4014_v21  ;;  %v4017_v10 = vpop.f32.mrb[30].mxu1 }
 0x369   : > { %v4018_v16 = vpop.f32.mrb[31].mxu1 }
 0x36a   : > { %v4019_v40 = vadd.f32 %v4018_v16, %v4017_v10  ;;  %v1780_v56 = vadd.f32 %v4016_v34, %v6327_v60 }
 0x36c   : > { %v1783_v33 = vadd.f32 %v4019_v40, %v6327_v60 }
 0x36e   : > { %v4020_v43 = vpop.f32.mrb[32].mxu1 }
 0x36f   : > { %v4021_v39 = vpop.f32.mrb[33].mxu1 }
 0x370   : > { %v4022_v44 = vadd.f32 %v4021_v39, %v4020_v43  ;;  %v4023_v4 = vpop.f32.mrb[34].mxu1 }
 0x371   : > { %v4024_v63 = vpop.f32.mrb[35].mxu1 }
 0x372   : > { %v4025_v42 = vadd.f32 %v4024_v63, %v4023_v4  ;;  %v1788_v13 = vadd.f32 %v4022_v44, %v6327_v60 }
 0x374   : > { %v4384_v46 = vpop.f32.mrb[56].mxu0  ;;  %v1791_v29 = vadd.f32 %v4025_v42, %v6327_v60 }
 0x375   : > { %v1933_v54 = vadd.f32 %v4384_v46, %v1788_v13  ;;  %v1924_v52 = vpop.f32.mrb[57].mxu0 }
 0x376   : > { %v1925_v38 = vadd.f32 %v1924_v52, %v1780_v56  ;;  %v4385_v6 = vpop.f32.mrb[58].mxu0  ;;  %v4026_v25 = vpop.f32.mrb[36].mxu1 }
 0x377   : > { %v1936_v48 = vadd.f32 %v4385_v6, %v1791_v29  ;;  %v1927_v57 = vpop.f32.mrb[59].mxu0  ;;  %v4027_v30 = vpop.f32.mrb[37].mxu1  ;;  %v2037_v2 = vmax.f32 %v1933_v54, 0.0 }
 0x378   : > { %v1928_v27 = vadd.f32 %v1927_v57, %v1783_v33  ;;  %v4028_v59 = vadd.f32 %v4027_v30, %v4026_v25  ;;  %v4029_v58 = vpop.f32.mrb[38].mxu1  ;;  %v2035_v24 = vmax.f32 %v1925_v38, 0.0  ;;  %v4751_v57 = vld [vmem:[#allocation17] sm:$0xff]   ;;  %v4753_v30 = vld [vmem:[#allocation17 + $0x48] sm:$0xff]  }
 0x379   : > { %v2038_v22 = vmax.f32 %v1936_v48, 0.0  ;;  %v4030_v50 = vpop.f32.mrb[39].mxu1 }
 0x37a   : > { %v2036_v32 = vmax.f32 %v1928_v27, 0.0  ;;  %v4031_v61 = vadd.f32 %v4030_v50, %v4029_v58  ;;  %v1796_v45 = vadd.f32 %v4028_v59, %v6327_v60 }
 0x37b   : > { %v6333_v55 = vpack.c.bf16 %v2038_v22, %v2037_v2  ;;  %v4754_v22 = vld [vmem:[#allocation17 + $0x8] sm:$0xff]  }
 0x37c   : > { %v3630_v18 = vpack.c.bf16 %v2036_v32, %v2035_v24  ;;  %v1799_v39 = vadd.f32 %v4031_v61, %v6327_v60 }
 0x37e   : > { %3631 = vmatprep.mubr.msk.bf16.mxu0 %vm5804_vm14, %v3630_v18  ;;  %v4032_v28 = vpop.f32.mrb[40].mxu1 }
 0x37f   : > { %2337 = vmatmul.mubr.bf16.vlgmr.msra.gmra.mrb[84].mxu0 %v5224_v47  ;;  %v4033_v20 = vpop.f32.mrb[41].mxu1 }
 0x380   : > { %3634 = vmatprep.mubr.msk.bf16.mxu0 %vm6878_vm3, %v6333_v55  ;;  %4455 = vmatpush3.bf16.msra.mxu0 %v6324_v31  ;;  %v4034_v0 = vadd.f32 %v4033_v20, %v4032_v28  ;;  %v4035_v51 = vpop.f32.mrb[42].mxu1 }
 0x381   : > { %4456 = vmatprep.subr.bf16.mxu0 %v6335_v41  ;;  %v4036_v11 = vpop.f32.mrb[43].mxu1 }
 0x382   : > { %v4037_v62 = vadd.f32 %v4036_v11, %v4035_v51  ;;  %v1804_v21 = vadd.f32 %v4034_v0, %v6327_v60 }
 0x384   : > { %v4388_v36 = vpop.f32.mrb[60].mxu0  ;;  %4457 = vmatpush3.bf16.msra.mxu0 %v6335_v41  ;;  %v1807_v16 = vadd.f32 %v4037_v62, %v6327_v60 }
 0x385   : > { %v1949_v34 = vadd.f32 %v4388_v36, %v1804_v21  ;;  %v1940_v10 = vpop.f32.mrb[61].mxu0  ;;  %4458 = vmatprep.subr.bf16.mxu0 %v6453_v15 }
 0x386   : > { %v1941_v40 = vadd.f32 %v1940_v10, %v1796_v45  ;;  %v4389_v43 = vpop.f32.mrb[62].mxu0  ;;  %v4038_v44 = vpop.f32.mrb[44].mxu1 }
 0x387   : > { %v1952_v4 = vadd.f32 %v4389_v43, %v1807_v16  ;;  %v1943_v63 = vpop.f32.mrb[63].mxu0  ;;  %2343 = vmatmul.mubr.bf16.gmra.mrb[88].mxu0 %v5224_v47  ;;  %v4039_v42 = vpop.f32.mrb[45].mxu1  ;;  %v2041_v46 = vmax.f32 %v1949_v34, 0.0 }
 0x388   : > { %v1944_v13 = vadd.f32 %v1943_v63, %v1799_v39  ;;  %v4040_v54 = vadd.f32 %v4039_v42, %v4038_v44  ;;  %v4041_v52 = vpop.f32.mrb[46].mxu1  ;;  %v2039_v29 = vmax.f32 %v1941_v40, 0.0  ;;  %4459 = vmatpush3.bf16.msra.mxu0 %v6453_v15 }
 0x389   : > { %v2042_v56 = vmax.f32 %v1952_v4, 0.0  ;;  %v4042_v6 = vpop.f32.mrb[47].mxu1  ;;  %4460 = vmatprep.subr.bf16.mxu0 %v6460_v49 }
 0x38a   : > { %v2040_v38 = vmax.f32 %v1944_v13, 0.0  ;;  %v4043_v25 = vadd.f32 %v4042_v6, %v4041_v52  ;;  %v1812_v61 = vadd.f32 %v4040_v54, %v6327_v60 }
 0x38b   : > { %v6351_v33 = vpack.c.bf16 %v2042_v56, %v2041_v46 }
 0x38c   : > { %v3636_v48 = vpack.c.bf16 %v2040_v38, %v2039_v29  ;;  %v1815_v11 = vadd.f32 %v4043_v25, %v6327_v60  ;;  %4461 = vmatpush3.bf16.msra.mxu0 %v6460_v49 }
 0x38e   : > { %3637 = vmatprep.mubr.msk.bf16.mxu0 %vm6879_vm11, %v3636_v48  ;;  %4426 = vmatprep.mubr.msk.bf16.mxu1 %vm6879_vm11, %v3636_v48  ;;  %v4044_v27 = vpop.f32.mrb[48].mxu1 }
 0x38f   : > { %3640 = vmatmul.mubr.msk.bf16.gmra.mrb[92].mxu0 %vm5804_vm14, %v3630_v18  ;;  %4427 = vmatmul.mubr.msk.bf16.vlgmr.msra.gmra.mrb[84].mxu1 %vm6880_vm2, %v6351_v33  ;;  %v4045_v2 = vpop.f32.mrb[49].mxu1  ;;  %vm6881_vm14 = vnez %v6829_v8 }
 0x390   : > { %3643 = vmatprep.mubr.msk.bf16.mxu0 %vm6880_vm2, %v6351_v33  ;;  %4243 = vmatpush3.bf16.msra.mxu1 %v4751_v57  ;;  %v4046_v59 = vadd.f32 %v4045_v2, %v4044_v27  ;;  %v4047_v58 = vpop.f32.mrb[50].mxu1 }
 0x391   : > { %4244 = vmatprep.subr.bf16.mxu1 %v4753_v30  ;;  %v4048_v24 = vpop.f32.mrb[51].mxu1 }
 0x392   : > { %v4049_v32 = vadd.f32 %v4048_v24, %v4047_v58  ;;  %v1820_v50 = vadd.f32 %v4046_v59, %v6327_v60 }
 0x394   : > { %v4392_v35 = vpop.f32.mrb[64].mxu0  ;;  %4245 = vmatpush3.bf16.msra.mxu1 %v4754_v22  ;;  %v1823_v20 = vadd.f32 %v4049_v32, %v6327_v60 }
 0x395   : > { %v1965_v18 = vadd.f32 %v4392_v35, %v1820_v50  ;;  %v1956_v28 = vpop.f32.mrb[65].mxu0 }
 0x396   : > { %v1957_v0 = vadd.f32 %v1956_v28, %v1812_v61  ;;  %v4393_v51 = vpop.f32.mrb[66].mxu0  ;;  %v4050_v62 = vpop.f32.mrb[52].mxu1 }
 0x397   : > { %v1968_v21 = vadd.f32 %v4393_v51, %v1823_v20  ;;  %v1959_v36 = vpop.f32.mrb[67].mxu0  ;;  %3646 = vmatmul.mubr.msk.bf16.gmra.mrb[96].mxu0 %vm6878_vm3, %v6333_v55  ;;  %v4051_v45 = vpop.f32.mrb[53].mxu1  ;;  %v2045_v10 = vmax.f32 %v1965_v18, 0.0 }
 0x398   : > { %v1960_v34 = vadd.f32 %v1959_v36, %v1815_v11  ;;  %v4052_v40 = vadd.f32 %v4051_v45, %v4050_v62  ;;  %v4053_v43 = vpop.f32.mrb[54].mxu1  ;;  %v2043_v39 = vmax.f32 %v1957_v0, 0.0 }
 0x399   : > { %v2046_v16 = vmax.f32 %v1968_v21, 0.0  ;;  %v4054_v4 = vpop.f32.mrb[55].mxu1 }
 0x39a   : > { %v2044_v44 = vmax.f32 %v1960_v34, 0.0  ;;  %v4055_v42 = vadd.f32 %v4054_v4, %v4053_v43  ;;  %v1828_v6 = vadd.f32 %v4052_v40, %v6327_v60 }
 0x39b   : > { %v3654_v63 = vpack.c.bf16 %v2046_v16, %v2045_v10 }
 0x39c   : > { %v3648_v13 = vpack.c.bf16 %v2044_v44, %v2043_v39  ;;  %v1831_v27 = vadd.f32 %v4055_v42, %v6327_v60 }
 0x39e   : > { %3649 = vmatprep.mubr.msk.bf16.mxu0 %vm5859_vm1, %v3648_v13  ;;  %4430 = vmatprep.mubr.msk.bf16.mxu1 %vm5859_vm1, %v3648_v13  ;;  %v4056_v37 = vpop.f32.mrb[56].mxu1 }
 0x39f   : > { %3652 = vmatmul.mubr.msk.bf16.gmra.mrb[100].mxu0 %vm6879_vm11, %v3636_v48  ;;  %4431 = vmatmul.mubr.msk.bf16.gmra.mrb[88].mxu1 %vm6881_vm14, %v3654_v63  ;;  %v4057_v55 = vpop.f32.mrb[57].mxu1 }
 0x3a0   : > { %3655 = vmatprep.mubr.msk.bf16.mxu0 %vm6881_vm14, %v3654_v63  ;;  %v4058_v46 = vadd.f32 %v4057_v55, %v4056_v37  ;;  %v4059_v56 = vpop.f32.mrb[58].mxu1 }
 0x3a1   : > { %v4060_v54 = vpop.f32.mrb[59].mxu1 }
 0x3a2   : > { %v4061_v52 = vadd.f32 %v4060_v54, %v4059_v56  ;;  %v1836_v29 = vadd.f32 %v4058_v46, %v6327_v60 }
 0x3a4   : > { %v4396_v38 = vpop.f32.mrb[68].mxu0  ;;  %v1839_v53 = vadd.f32 %v4061_v52, %v6327_v60 }
 0x3a5   : > { %v1981_v25 = vadd.f32 %v4396_v38, %v1836_v29  ;;  %v1972_v57 = vpop.f32.mrb[69].mxu0 }
 0x3a6   : > { %v1973_v48 = vadd.f32 %v1972_v57, %v1828_v6  ;;  %v4397_v30 = vpop.f32.mrb[70].mxu0  ;;  %v4062_v2 = vpop.f32.mrb[60].mxu1 }
 0x3a7   : > { %v1984_v22 = vadd.f32 %v4397_v30, %v1839_v53  ;;  %v1975_v59 = vpop.f32.mrb[71].mxu0  ;;  %3658 = vmatmul.mubr.msk.bf16.gmra.mrb[104].mxu0 %vm6880_vm2, %v6351_v33  ;;  %v4063_v58 = vpop.f32.mrb[61].mxu1  ;;  %v2049_v32 = vmax.f32 %v1981_v25, 0.0 }
 0x3a8   : > { %v1976_v24 = vadd.f32 %v1975_v59, %v1831_v27  ;;  %v4064_v35 = vadd.f32 %v4063_v58, %v4062_v2  ;;  %v4065_v61 = vpop.f32.mrb[62].mxu1  ;;  %v2047_v18 = vmax.f32 %v1973_v48, 0.0 }
 0x3a9   : > { %v2050_v50 = vmax.f32 %v1984_v22, 0.0  ;;  %v4066_v20 = vpop.f32.mrb[63].mxu1 }
 0x3aa   : > { %v2048_v28 = vmax.f32 %v1976_v24, 0.0  ;;  %v4067_v51 = vadd.f32 %v4066_v20, %v4065_v61  ;;  %v1844_v16 = vadd.f32 %v4064_v35, %v6327_v60 }
 0x3ab   : > { %v3666_v0 = vpack.c.bf16 %v2050_v50, %v2049_v32 }
 0x3ac   : > { %v3660_v11 = vpack.c.bf16 %v2048_v28, %v2047_v18  ;;  %v1847_v4 = vadd.f32 %v4067_v51, %v6327_v60 }
 0x3ae   : > { %3661 = vmatprep.mubr.msk.bf16.mxu0 %vm6882_vm13, %v3660_v11  ;;  %4434 = vmatprep.mubr.msk.bf16.mxu1 %vm6882_vm13, %v3660_v11  ;;  %v4068_v1 = vpop.f32.mrb[64].mxu1 }
 0x3af   : > { %3664 = vmatmul.mubr.msk.bf16.gmra.mrb[108].mxu0 %vm5859_vm1, %v3648_v13  ;;  %4435 = vmatmul.mubr.msk.bf16.gmra.mrb[92].mxu1 %vm6883_vm9, %v3666_v0  ;;  %v4069_v33 = vpop.f32.mrb[65].mxu1  ;;  %vm6884_vm1 = vnez %v6845_v23  ;;  %v4767_v23 = vld [vmem:[#allocation17 + $0x78] sm:$0xff]  }
 0x3b0   : > { %3667 = vmatprep.mubr.msk.bf16.mxu0 %vm6883_vm9, %v3666_v0  ;;  %v4070_v62 = vadd.f32 %v4069_v33, %v4068_v1  ;;  %v4071_v21 = vpop.f32.mrb[66].mxu1 }
 0x3b1   : > { %v4072_v36 = vpop.f32.mrb[67].mxu1 }
 0x3b2   : > { %v4073_v45 = vadd.f32 %v4072_v36, %v4071_v21  ;;  %v1852_v34 = vadd.f32 %v4070_v62, %v6327_v60 }
 0x3b4   : > { %v4400_v10 = vpop.f32.mrb[72].mxu0  ;;  %v1855_v3 = vadd.f32 %v4073_v45, %v6327_v60 }
 0x3b5   : > { %v1997_v40 = vadd.f32 %v4400_v10, %v1852_v34  ;;  %v1988_v43 = vpop.f32.mrb[73].mxu0 }
 0x3b6   : > { %v1989_v39 = vadd.f32 %v1988_v43, %v1844_v16  ;;  %v4401_v44 = vpop.f32.mrb[74].mxu0  ;;  %v4074_v42 = vpop.f32.mrb[68].mxu1 }
 0x3b7   : > { %v2000_v13 = vadd.f32 %v4401_v44, %v1855_v3  ;;  %v1991_v37 = vpop.f32.mrb[75].mxu0  ;;  %3670 = vmatmul.mubr.msk.bf16.gmra.mrb[112].mxu0 %vm6881_vm14, %v3654_v63  ;;  %v4075_v55 = vpop.f32.mrb[69].mxu1  ;;  %v2053_v56 = vmax.f32 %v1997_v40, 0.0 }
 0x3b8   : > { %v1992_v46 = vadd.f32 %v1991_v37, %v1847_v4  ;;  %v4076_v52 = vadd.f32 %v4075_v55, %v4074_v42  ;;  %v4077_v29 = vpop.f32.mrb[70].mxu1  ;;  %v2051_v38 = vmax.f32 %v1989_v39, 0.0 }
 0x3b9   : > { %v2054_v54 = vmax.f32 %v2000_v13, 0.0  ;;  %v4078_v25 = vpop.f32.mrb[71].mxu1 }
 0x3ba   : > { %v2052_v6 = vmax.f32 %v1992_v46, 0.0  ;;  %v4079_v53 = vadd.f32 %v4078_v25, %v4077_v29  ;;  %v1860_v24 = vadd.f32 %v4076_v52, %v6327_v60 }
 0x3bb   : > { %v6405_v57 = vpack.c.bf16 %v2054_v54, %v2053_v56 }
 0x3bc   : > { %v3672_v48 = vpack.c.bf16 %v2052_v6, %v2051_v38  ;;  %v1863_v18 = vadd.f32 %v4079_v53, %v6327_v60  ;;  %v4755_v6 = vld [vmem:[#allocation17 + $0x50] sm:$0xff]  }
 0x3bd   : > { %4246 = vmatprep.subr.bf16.mxu1 %v4755_v6 }
 0x3be   : > { %3673 = vmatprep.mubr.msk.bf16.mxu0 %vm5893_vm8, %v3672_v48  ;;  %4438 = vmatprep.mubr.msk.bf16.mxu1 %vm5893_vm8, %v3672_v48  ;;  %v4080_v8 = vpop.f32.mrb[72].mxu1 }
 0x3bf   : > { %3676 = vmatmul.mubr.msk.bf16.gmra.mrb[116].mxu0 %vm6882_vm13, %v3660_v11  ;;  %4439 = vmatmul.mubr.msk.bf16.gmra.mrb[96].mxu1 %vm5900_vm0, %v6405_v57  ;;  %v4081_v63 = vpop.f32.mrb[73].mxu1 }
 0x3c0   : > { %3679 = vmatprep.mubr.msk.bf16.mxu0 %vm5900_vm0, %v6405_v57  ;;  %v4082_v30 = vadd.f32 %v4081_v63, %v4080_v8  ;;  %v4083_v27 = vpop.f32.mrb[74].mxu1 }
 0x3c1   : > { %v4084_v2 = vpop.f32.mrb[75].mxu1 }
 0x3c2   : > { %v4085_v22 = vadd.f32 %v4084_v2, %v4083_v27  ;;  %v1868_v59 = vadd.f32 %v4082_v30, %v6327_v60 }
 0x3c4   : > { %v4404_v58 = vpop.f32.mrb[76].mxu0  ;;  %v1871_v50 = vadd.f32 %v4085_v22, %v6327_v60  ;;  %v4763_v22 = vld [vmem:[#allocation17 + $0x68] sm:$0xff]  }
 0x3c5   : > { %v2013_v9 = vadd.f32 %v4404_v58, %v1868_v59  ;;  %v2004_v32 = vpop.f32.mrb[77].mxu0  ;;  %v4764_v59 = vld [vmem:[#allocation17 + $0x28] sm:$0xff]   ;;  %v4765_v58 = vld [vmem:[#allocation17 + $0x70] sm:$0xff]  }
 0x3c6   : > { %v2005_v35 = vadd.f32 %v2004_v32, %v1860_v24  ;;  %v4405_v61 = vpop.f32.mrb[78].mxu0  ;;  %v4086_v28 = vpop.f32.mrb[76].mxu1  ;;  %v4766_v24 = vld [vmem:[#allocation17 + $0x30] sm:$0xff]   ;;  %v6465_v32 = vld [vmem:[#allocation17 + $0xa0] sm:$0xff]  }
 0x3c7   : > { %v2016_v20 = vadd.f32 %v4405_v61, %v1871_v50  ;;  %v2007_v51 = vpop.f32.mrb[79].mxu0  ;;  %3682 = vmatmul.mubr.msk.bf16.gmra.mrb[120].mxu0 %vm6883_vm9, %v3666_v0  ;;  %v4087_v11 = vpop.f32.mrb[77].mxu1  ;;  %v2057_v33 = vmax.f32 %v2013_v9, 0.0  ;;  %v4768_v9 = vld [vmem:[#allocation17 + $0x38] sm:$0xff]   ;;  %4462 = vmatprep.subr.bf16.mxu0 %v6465_v32  ;;  %v6469_v50 = vld [vmem:[#allocation17 + $0xa8] sm:$0xff]  }
 0x3c8   : > { %v2008_v1 = vadd.f32 %v2007_v51, %v1863_v18  ;;  %v4088_v21 = vadd.f32 %v4087_v11, %v4086_v28  ;;  %v4089_v36 = vpop.f32.mrb[78].mxu1  ;;  %v2055_v45 = vmax.f32 %v2005_v35, 0.0  ;;  %4463 = vmatpush3.bf16.msra.mxu0 %v6465_v32  ;;  %v6473_v35 = vld [vmem:[#allocation17 + $0xb0] sm:$0xff]   ;;  %v6477_v61 = vld [vmem:[#allocation17 + $0xb8] sm:$0xff]  }
 0x3c9   : > { %v2058_v62 = vmax.f32 %v2016_v20, 0.0  ;;  %v4090_v10 = vpop.f32.mrb[79].mxu1  ;;  %4464 = vmatprep.subr.bf16.mxu0 %v6469_v50 }
 0x3ca   : > { %v2056_v34 = vmax.f32 %v2008_v1, 0.0  ;;  %v4091_v40 = vadd.f32 %v4090_v10, %v4089_v36  ;;  %v1876_v12 = vadd.f32 %v4088_v21, %v6327_v60 }
 0x3cb   : > { %v3690_v16 = vpack.c.bf16 %v2058_v62, %v2057_v33 }
 0x3cc   : > { %v3684_v43 = vpack.c.bf16 %v2056_v34, %v2055_v45  ;;  %v1879_v13 = vadd.f32 %v4091_v40, %v6327_v60  ;;  %4465 = vmatpush3.bf16.msra.mxu0 %v6469_v50 }
 0x3cd   : > { %4466 = vmatprep.subr.bf16.mxu0 %v6473_v35 }
 0x3ce   : > { %v4408_v3 = vpop.f32.mrb[80].mxu0  ;;  %3685 = vmatprep.mubr.msk.bf16.mxu0 %vm5909_vm15, %v3684_v43  ;;  %4442 = vmatprep.mubr.msk.bf16.mxu1 %vm5909_vm15, %v3684_v43  ;;  %v4092_v0 = vpop.f32.mrb[80].mxu1 }
 0x3cf   : > { %v2020_v39 = vpop.f32.mrb[81].mxu0  ;;  %3688 = vmatmul.mubr.msk.bf16.gmra.mrb[124].mxu0 %vm5893_vm8, %v3672_v48  ;;  %4443 = vmatmul.mubr.msk.bf16.gmra.mrb[100].mxu1 %vm6884_vm1, %v3690_v16  ;;  %v4093_v44 = vpop.f32.mrb[81].mxu1  ;;  %v4756_v48 = vld [vmem:[#allocation17 + $0x10] sm:$0xff]   ;;  %vm6885_vm8 = vnez %v6849_v26  ;;  %v4759_v26 = vld [vmem:[#allocation17 + $0x18] sm:$0xff]  }
 0x3d0   : > { %v2021_v4 = vadd.f32 %v2020_v39, %v1876_v12  ;;  %v4409_v42 = vpop.f32.mrb[82].mxu0  ;;  %3691 = vmatprep.mubr.msk.bf16.mxu0 %vm6884_vm1, %v3690_v16  ;;  %v4094_v37 = vadd.f32 %v4093_v44, %v4092_v0  ;;  %v4095_v55 = vpop.f32.mrb[82].mxu1  ;;  %4247 = vmatpush3.bf16.msra.mxu1 %v4756_v48 }
 0x3d1   : > { %v2023_v46 = vpop.f32.mrb[83].mxu0  ;;  %v4096_v56 = vpop.f32.mrb[83].mxu1  ;;  %4467 = vmatpush3.bf16.msra.mxu0 %v6473_v35 }
 0x3d2   : > { %v2024_v54 = vadd.f32 %v2023_v46, %v1879_v13  ;;  %v1884_v52 = vadd.f32 %v4094_v37, %v6327_v60  ;;  %v4097_v14 = vadd.f32 %v4096_v56, %v4095_v55  ;;  %v2059_v29 = vmax.f32 %v2021_v4, 0.0  ;;  %4468 = vmatprep.subr.bf16.mxu0 %v6477_v61 }
 0x3d4   : > { %v2060_v38 = vmax.f32 %v2024_v54, 0.0  ;;  %v2029_v25 = vadd.f32 %v4408_v3, %v1884_v52  ;;  %v1887_v53 = vadd.f32 %v4097_v14, %v6327_v60  ;;  %v4758_v60 = vld [vmem:[#allocation17 + $0x58] sm:$0xff]  }
 0x3d5   : > { %4248 = vmatprep.subr.bf16.mxu1 %v4758_v60  ;;  %4469 = vmatpush3.bf16.msra.mxu0 %v6477_v61 }
 0x3d6   : > { %v3696_v8 = vpack.c.bf16 %v2060_v38, %v2059_v29  ;;  %v2032_v63 = vadd.f32 %v4409_v42, %v1887_v53  ;;  %v2061_v30 = vmax.f32 %v2029_v25, 0.0  ;;  %4249 = vmatpush3.bf16.msra.mxu1 %v4759_v26  ;;  %v6481_v42 = vld [vmem:[#allocation16] ss:$0 sm:$0xff] }
 0x3d7   : > { %3694 = vmatmul.mubr.msk.bf16.gmra.mrb[128].mxu0 %vm5900_vm0, %v6405_v57  ;;  %4250 = vmatprep.subr.bf16.mxu1 %v4760_v19  ;;  %v4761_v57 = vld [vmem:[#allocation17 + $0x20] sm:$0xff]   ;;  %vm2595_vm0 = vcmp.ge.s32.totalorder %v5664_v7, 2 }
 0x3d8   : > { %3697 = vmatprep.mubr.msk.bf16.mxu0 %vm6885_vm8, %v3696_v8  ;;  %4446 = vmatprep.mubr.msk.bf16.mxu1 %vm6885_vm8, %v3696_v8  ;;  %v2062_v27 = vmax.f32 %v2032_v63, 0.0 }
 0x3da   : > { %v3702_v2 = vpack.c.bf16 %v2062_v27, %v2061_v30  ;;  %4251 = vmatpush3.bf16.msra.mxu1 %v4761_v57 }
 0x3db   : > { %4252 = vmatprep.subr.bf16.mxu1 %v4763_v22 }
 0x3dc   : > { %4447 = vmatmul.mubr.msk.bf16.gmra.mrb[104].mxu1 %vm6886_vm10, %v3702_v2 }
 0x3dd   : > { %4450 = vmatprep.mubr.bf16.mxu1 %v5224_v47 }
 0x3de   : > { %4253 = vmatpush3.bf16.msra.mxu1 %v4764_v59 }
 0x3df   : > { %3700 = vmatmul.mubr.msk.bf16.gmra.mrb[132].mxu0 %vm5909_vm15, %v3684_v43  ;;  %4254 = vmatprep.subr.bf16.mxu1 %v4765_v58  ;;  %vm2636_vm15 = vmpackc.low %vm2595_vm0, %vm2595_vm0 }
 0x3e0   : > { %3703 = vmatprep.mubr.msk.bf16.mxu0 %vm6886_vm10, %v3702_v2  ;;  %v2638_v6 = vsel %vm2636_vm15, 65537, %v5224_v47 }
 0x3e1   : > { %v3743_v30 = vcombine.low %v2638_v6, %v6126_v5 }
 0x3e2   : > { %4255 = vmatpush3.bf16.msra.mxu1 %v4766_v24 }
 0x3e3   : > { %4256 = vmatprep.subr.bf16.mxu1 %v4767_v23  ;;  %vm6492_vm4 = vcmp.ne.s16.totalorder %v3743_v30, 0 }
 0x3e4   : > { %4451 = vmatmul.mubr.bf16.gmra.mrb[108].mxu1 %v5224_v47 }
 0x3e6   : > { %4257 = vmatpush3.bf16.msra.mxu1 %v4768_v9 }
 0x3e7   : > { %3706 = vmatmul.mubr.msk.bf16.gmra.mrb[136].mxu0 %vm6884_vm1, %v3690_v16  ;;  %4486 = vmatprep.subr.bf16.mxu1 %v6324_v31 }
 0x452   : > { %v4136_v18 = vpop.f32.mrb[84].mxu0 }
 0x453   : > { %v4137_v28 = vpop.f32.mrb[85].mxu0 }
 0x454   : > { %v4139_v20 = vpop.f32.mrb[86].mxu0 }
 0x455   : > { %v4140_v51 = vpop.f32.mrb[87].mxu0 }
 0x45a   : > { %v4142_v11 = vpop.f32.mrb[88].mxu0 }
 0x45b   : > { %v4143_v1 = vpop.f32.mrb[89].mxu0 }
 0x45c   : > { %v4145_v33 = vpop.f32.mrb[90].mxu0 }
 0x45d   : > { %v4146_v62 = vpop.f32.mrb[91].mxu0 }
 0x462   : > { %v4148_v21 = vpop.f32.mrb[92].mxu0  ;;  %v4428_v36 = vpop.f32.mrb[84].mxu1 }
 0x463   : > { %v4149_v45 = vpop.f32.mrb[93].mxu0  ;;  %v2471_v34 = vpop.f32.mrb[85].mxu1  ;;  %v2688_v36 = vsel %vm2686_vm7, 65537, %v5224_v47 }
 0x464   : > { %v4151_v10 = vpop.f32.mrb[94].mxu0  ;;  %v4429_v16 = vpop.f32.mrb[86].mxu1 }
 0x465   : > { %v4152_v40 = vpop.f32.mrb[95].mxu0  ;;  %v2473_v43 = vpop.f32.mrb[87].mxu1 }
 0x46a   : > { %v4154_v3 = vpop.f32.mrb[96].mxu0 }
 0x46b   : > { %v4155_v12 = vpop.f32.mrb[97].mxu0 }
 0x46c   : > { %v4156_v0 = vadd.f32 %v4155_v12, %v4154_v3  ;;  %v4157_v39 = vpop.f32.mrb[98].mxu0  ;;  %v3744_v12 = vcombine.low %v6126_v5, %v2688_v36 }
 0x46d   : > { %v4158_v44 = vpop.f32.mrb[99].mxu0 }
 0x46e   : > { %v4159_v4 = vadd.f32 %v4158_v44, %v4157_v39  ;;  %v2357_v13 = vadd.f32 %v4156_v0, %v6481_v42  ;;  %vm6516_vm3 = vcmp.ne.s16.totalorder %v3744_v12, 0 }
 0x470   : > { %v2360_v52 = vadd.f32 %v4159_v4, %v6481_v42 }
 0x472   : > { %v4160_v37 = vpop.f32.mrb[100].mxu0  ;;  %v4432_v55 = vpop.f32.mrb[88].mxu1 }
 0x473   : > { %v2490_v46 = vadd.f32 %v4432_v55, %v2357_v13  ;;  %v4161_v56 = vpop.f32.mrb[101].mxu0  ;;  %v2483_v54 = vpop.f32.mrb[89].mxu1 }
 0x474   : > { %v4162_v14 = vadd.f32 %v4161_v56, %v4160_v37  ;;  %v4163_v29 = vpop.f32.mrb[102].mxu0  ;;  %v4433_v38 = vpop.f32.mrb[90].mxu1 }
 0x475   : > { %v2493_v25 = vadd.f32 %v4433_v38, %v2360_v52  ;;  %v4164_v53 = vpop.f32.mrb[103].mxu0  ;;  %v2485_v48 = vpop.f32.mrb[91].mxu1  ;;  %v2570_v7 = vmax.f32 %v2490_v46, 0.0 }
 0x476   : > { %v4165_v8 = vadd.f32 %v4164_v53, %v4163_v29  ;;  %v2365_v28 = vadd.f32 %v4162_v14, %v6481_v42 }
 0x477   : > { %v2571_v63 = vmax.f32 %v2493_v25, 0.0 }
 0x478   : > { %v2368_v21 = vadd.f32 %v4165_v8, %v6481_v42 }
 0x479   : > { %v6488_v27 = vpack.c.bf16 %v2571_v63, %v2570_v7 }
 0x47a   : > { %v4166_v2 = vpop.f32.mrb[104].mxu0 }
 0x47b   : > { %v2605_v60 = vrot.slane %v6488_v27, 7  ;;  %v4167_v26 = vpop.f32.mrb[105].mxu0  ;;  %2931 = vmatprep.mubr.bf16.mxu1 %v6488_v27  ;;  %v2655_v5 = vrot.slane %v6488_v27, 1 }
 0x47c   : > { %v4168_v57 = vadd.f32 %v4167_v26, %v4166_v2  ;;  %v4169_v22 = vpop.f32.mrb[106].mxu0 }
 0x47d   : > { %v4170_v59 = vpop.f32.mrb[107].mxu0  ;;  %v2630_v58 = vsel %vm1431_vm6, 0, %v2605_v60 }
 0x47e   : > { %v4171_v24 = vadd.f32 %v4170_v59, %v4169_v22  ;;  %3770 = vmatmul.mubr.msk.bf16.vlgmr.msra.gmra.mrb[112].mxu1 %vm6492_vm4, %v2630_v58  ;;  %v2373_v23 = vadd.f32 %v4168_v57, %v6481_v42 }
 0x47f   : > { %4494 = vmatpush3.bf16.msra.mxu1 %v6324_v31 }
 0x480   : > { %4487 = vmatprep.subr.bf16.mxu1 %v6335_v41  ;;  %v2376_v1 = vadd.f32 %v4171_v24, %v6481_v42 }
 0x482   : > { %v4172_v9 = vpop.f32.mrb[108].mxu0  ;;  %v4436_v18 = vpop.f32.mrb[92].mxu1 }
 0x483   : > { %v2506_v20 = vadd.f32 %v4436_v18, %v2373_v23  ;;  %v4173_v51 = vpop.f32.mrb[109].mxu0  ;;  %v2497_v11 = vpop.f32.mrb[93].mxu1  ;;  %4495 = vmatpush3.bf16.msra.mxu1 %v6335_v41 }
 0x484   : > { %v4174_v33 = vadd.f32 %v4173_v51, %v4172_v9  ;;  %v2498_v17 = vadd.f32 %v2497_v11, %v2365_v28  ;;  %v4175_v62 = vpop.f32.mrb[110].mxu0  ;;  %v4437_v31 = vpop.f32.mrb[94].mxu1  ;;  %4488 = vmatprep.subr.bf16.mxu1 %v6453_v15 }
 0x485   : > { %v2509_v45 = vadd.f32 %v4437_v31, %v2376_v1  ;;  %v4176_v34 = vpop.f32.mrb[111].mxu0  ;;  %v2500_v10 = vpop.f32.mrb[95].mxu1  ;;  %v2574_v43 = vmax.f32 %v2506_v20, 0.0 }
 0x486   : > { %v4177_v16 = vadd.f32 %v4176_v34, %v4175_v62  ;;  %v2501_v40 = vadd.f32 %v2500_v10, %v2368_v21  ;;  %v2572_v41 = vmax.f32 %v2498_v17, 0.0  ;;  %v2381_v8 = vadd.f32 %v4174_v33, %v6481_v42 }
 0x487   : > { %v2575_v3 = vmax.f32 %v2509_v45, 0.0  ;;  %4496 = vmatpush3.bf16.msra.mxu1 %v6453_v15 }
 0x488   : > { %v2573_v0 = vmax.f32 %v2501_v40, 0.0  ;;  %4489 = vmatprep.subr.bf16.mxu1 %v6460_v49  ;;  %v2384_v22 = vadd.f32 %v4177_v16, %v6481_v42 }
 0x489   : > { %v6512_v39 = vpack.c.bf16 %v2575_v3, %v2574_v43 }
 0x48a   : > { %v2588_v47 = vpack.c.bf16 %v2573_v0, %v2572_v41  ;;  %v4178_v44 = vpop.f32.mrb[112].mxu0 }
 0x48b   : > { %v2608_v4 = vrot.slane %v6512_v39, 7  ;;  %v2658_v13 = vrot.slane %v6512_v39, 1  ;;  %v4179_v37 = vpop.f32.mrb[113].mxu0  ;;  %4497 = vmatpush3.bf16.msra.mxu1 %v6460_v49 }
 0x48c   : > { %v2606_v15 = vrot.slane %v2588_v47, 7  ;;  %v2656_v46 = vrot.slane %v2588_v47, 1  ;;  %v4180_v56 = vadd.f32 %v4179_v37, %v4178_v44  ;;  %v4181_v54 = vpop.f32.mrb[114].mxu0  ;;  %2939 = vmatprep.mubr.bf16.mxu1 %v2588_v47  ;;  %4490 = vmatprep.subr.bf16.mxu1 %v6465_v32 }
 0x48d   : > { %v4182_v52 = vpop.f32.mrb[115].mxu0 }
 0x48e   : > { %v4183_v14 = vadd.f32 %v4182_v52, %v4181_v54  ;;  %v2607_v29 = vsel %vm1431_vm6, %v2605_v60, %v2606_v15  ;;  %v2657_v38 = vsel %vm2654_vm12, %v2655_v5, %v2656_v46  ;;  %v2659_v6 = vsel %vm2654_vm12, %v2656_v46, %v2658_v13 }
 0x48f   : > { %3771 = vmatmul.mubr.msk.bf16.gmra.mrb[116].mxu1 %vm6492_vm4, %v2607_v29  ;;  %4470 = vmatprep.mubr.msk.bf16.mxu0 %vm6516_vm3, %v2657_v38  ;;  %v2609_v49 = vsel %vm1431_vm6, %v2606_v15, %v2608_v4  ;;  %v2389_v25 = vadd.f32 %v4180_v56, %v6481_v42 }
 0x490   : > { %2947 = vmatprep.mubr.bf16.mxu1 %v6512_v39  ;;  %4471 = vmatmul.mubr.msk.bf16.vlgmr.msra.gmra.mrb[140].mxu0 %vm6516_vm3, %v2659_v6  ;;  %v2392_v27 = vadd.f32 %v4183_v14, %v6481_v42 }
 0x491   : > { %4498 = vmatpush3.bf16.msra.mxu1 %v6465_v32 }
 0x492   : > { %v4184_v53 = vpop.f32.mrb[116].mxu0  ;;  %v4440_v48 = vpop.f32.mrb[96].mxu1  ;;  %4491 = vmatprep.subr.bf16.mxu1 %v6469_v50 }
 0x493   : > { %v2522_v7 = vadd.f32 %v4440_v48, %v2389_v25  ;;  %v4185_v63 = vpop.f32.mrb[117].mxu0  ;;  %v2513_v30 = vpop.f32.mrb[97].mxu1 }
 0x494   : > { %v4186_v2 = vadd.f32 %v4185_v63, %v4184_v53  ;;  %v2514_v60 = vadd.f32 %v2513_v30, %v2381_v8  ;;  %v4187_v26 = vpop.f32.mrb[118].mxu0  ;;  %v4441_v57 = vpop.f32.mrb[98].mxu1 }
 0x495   : > { %v2525_v59 = vadd.f32 %v4441_v57, %v2392_v27  ;;  %v4188_v58 = vpop.f32.mrb[119].mxu0  ;;  %v2516_v32 = vpop.f32.mrb[99].mxu1  ;;  %4499 = vmatpush3.bf16.msra.mxu1 %v6469_v50  ;;  %v2578_v9 = vmax.f32 %v2522_v7, 0.0 }
 0x496   : > { %v4189_v24 = vadd.f32 %v4188_v58, %v4187_v26  ;;  %v2517_v23 = vadd.f32 %v2516_v32, %v2384_v22  ;;  %4492 = vmatprep.subr.bf16.mxu1 %v6473_v35  ;;  %v2576_v28 = vmax.f32 %v2514_v60, 0.0  ;;  %v2397_v12 = vadd.f32 %v4186_v2, %v6481_v42 }
 0x497   : > { %v2579_v18 = vmax.f32 %v2525_v59, 0.0  ;;  %3772 = vmatmul.mubr.msk.bf16.gmra.mrb[120].mxu1 %vm6492_vm4, %v2609_v49 }
 0x498   : > { %v2577_v20 = vmax.f32 %v2517_v23, 0.0  ;;  %v2400_v5 = vadd.f32 %v4189_v24, %v6481_v42 }
 0x499   : > { %v2591_v51 = vpack.c.bf16 %v2579_v18, %v2578_v9  ;;  %4500 = vmatpush3.bf16.msra.mxu1 %v6473_v35 }
 0x49a   : > { %v2590_v11 = vpack.c.bf16 %v2577_v20, %v2576_v28  ;;  %v4190_v1 = vpop.f32.mrb[120].mxu0  ;;  %4493 = vmatprep.subr.bf16.mxu1 %v6477_v61 }
 0x49b   : > { %v2612_v33 = vrot.slane %v2591_v51, 7  ;;  %v2662_v50 = vrot.slane %v2591_v51, 1  ;;  %v4191_v17 = vpop.f32.mrb[121].mxu0 }
 0x49c   : > { %v2610_v62 = vrot.slane %v2590_v11, 7  ;;  %v2660_v31 = vrot.slane %v2590_v11, 1  ;;  %v4192_v21 = vadd.f32 %v4191_v17, %v4190_v1  ;;  %v4193_v36 = vpop.f32.mrb[122].mxu0  ;;  %2955 = vmatprep.mubr.bf16.mxu1 %v2590_v11 }
 0x49d   : > { %v4194_v45 = vpop.f32.mrb[123].mxu0  ;;  %4501 = vmatpush3.bf16.msra.mxu1 %v6477_v61 }
 0x49e   : > { %v4195_v34 = vadd.f32 %v4194_v45, %v4193_v36  ;;  %v2611_v35 = vsel %vm1431_vm6, %v2608_v4, %v2610_v62  ;;  %v2661_v10 = vsel %vm2654_vm12, %v2658_v13, %v2660_v31  ;;  %v2663_v16 = vsel %vm2654_vm12, %v2660_v31, %v2662_v50 }
 0x49f   : > { %3773 = vmatmul.mubr.msk.bf16.gmra.mrb[124].mxu1 %vm6492_vm4, %v2611_v35  ;;  %4474 = vmatprep.mubr.msk.bf16.mxu0 %vm6516_vm3, %v2661_v10  ;;  %v2613_v40 = vsel %vm1431_vm6, %v2610_v62, %v2612_v33  ;;  %v2405_v61 = vadd.f32 %v4192_v21, %v6481_v42 }
 0x4a0   : > { %2963 = vmatprep.mubr.bf16.mxu1 %v2591_v51  ;;  %4475 = vmatmul.mubr.msk.bf16.gmra.mrb[144].mxu0 %vm6516_vm3, %v2663_v16  ;;  %v2408_v47 = vadd.f32 %v4195_v34, %v6481_v42 }
 0x4a2   : > { %v4196_v43 = vpop.f32.mrb[124].mxu0  ;;  %v4444_v3 = vpop.f32.mrb[100].mxu1 }
 0x4a3   : > { %v2538_v41 = vadd.f32 %v4444_v3, %v2405_v61  ;;  %v4197_v0 = vpop.f32.mrb[125].mxu0  ;;  %v2529_v39 = vpop.f32.mrb[101].mxu1 }
 0x4a4   : > { %v4198_v44 = vadd.f32 %v4197_v0, %v4196_v43  ;;  %v2530_v4 = vadd.f32 %v2529_v39, %v2397_v12  ;;  %v4199_v13 = vpop.f32.mrb[126].mxu0  ;;  %v4445_v37 = vpop.f32.mrb[102].mxu1 }
 0x4a5   : > { %v2541_v15 = vadd.f32 %v4445_v37, %v2408_v47  ;;  %v4200_v46 = vpop.f32.mrb[127].mxu0  ;;  %v2532_v56 = vpop.f32.mrb[103].mxu1  ;;  %v2582_v14 = vmax.f32 %v2538_v41, 0.0 }
 0x4a6   : > { %v4201_v54 = vadd.f32 %v4200_v46, %v4199_v13  ;;  %v2533_v52 = vadd.f32 %v2532_v56, %v2400_v5  ;;  %v2580_v38 = vmax.f32 %v2530_v4, 0.0  ;;  %v2413_v58 = vadd.f32 %v4198_v44, %v6481_v42  ;;  %v6594_v44 = vld [vmem:[#allocation19] ss:$0 sm:$0xff] }
 0x4a7   : > { %v2583_v29 = vmax.f32 %v2541_v15, 0.0  ;;  %3774 = vmatmul.mubr.msk.bf16.gmra.mrb[128].mxu1 %vm6492_vm4, %v2613_v40  ;;  %v4781_v5 = vld [vmem:[%s5624_s29] sm:$0xff]  }
 0x4a8   : > { %v2581_v6 = vmax.f32 %v2533_v52, 0.0  ;;  %v2416_v18 = vadd.f32 %v4201_v54, %v6481_v42  ;;  %v3093_v15 = vunpack.c.l.bf16 %v4781_v5 }
 0x4a9   : > { %v2593_v49 = vpack.c.bf16 %v2583_v29, %v2582_v14 }
 0x4aa   : > { %v2592_v25 = vpack.c.bf16 %v2581_v6, %v2580_v38  ;;  %v4202_v53 = vpop.f32.mrb[128].mxu0  ;;  %v3094_v38 = vunpack.c.h.bf16 %v4781_v5 }
 0x4ab   : > { %v2616_v48 = vrot.slane %v2593_v49, 7  ;;  %v2666_v8 = vrot.slane %v2593_v49, 1  ;;  %v4203_v7 = vpop.f32.mrb[129].mxu0 }
 0x4ac   : > { %v2614_v63 = vrot.slane %v2592_v25, 7  ;;  %v2664_v30 = vrot.slane %v2592_v25, 1  ;;  %v4205_v27 = vpop.f32.mrb[130].mxu0  ;;  %2971 = vmatprep.mubr.bf16.mxu1 %v2592_v25 }
 0x4ad   : > { %v4206_v2 = vpop.f32.mrb[131].mxu0 }
 0x4ae   : > { %v2615_v60 = vsel %vm1431_vm6, %v2612_v33, %v2614_v63  ;;  %v2665_v26 = vsel %vm2654_vm12, %v2662_v50, %v2664_v30  ;;  %v2667_v57 = vsel %vm2654_vm12, %v2664_v30, %v2666_v8  ;;  %v2617_v22 = vsel %vm1431_vm6, %v2614_v63, %v2616_v48 }
 0x4af   : > { %3775 = vmatmul.mubr.msk.bf16.gmra.mrb[132].mxu1 %vm6492_vm4, %v2615_v60  ;;  %4478 = vmatprep.mubr.msk.bf16.mxu0 %vm6516_vm3, %v2665_v26  ;;  %v4448_v59 = vpop.f32.mrb[104].mxu1 }
 0x4b0   : > { %2979 = vmatprep.mubr.bf16.mxu1 %v2593_v49  ;;  %4479 = vmatmul.mubr.msk.bf16.gmra.mrb[148].mxu0 %vm6516_vm3, %v2667_v57  ;;  %v2545_v32 = vpop.f32.mrb[105].mxu1  ;;  %v4782_v49 = vld [vmem:[%s5624_s29 + $0x8] sm:$0xff]  }
 0x4b1   : > { %v2546_v24 = vadd.f32 %v2545_v32, %v2413_v58  ;;  %v4449_v23 = vpop.f32.mrb[106].mxu1  ;;  %v3095_v25 = vunpack.c.l.bf16 %v4782_v49  ;;  %v3096_v27 = vunpack.c.h.bf16 %v4782_v49 }
 0x4b2   : > { %v4208_v9 = vpop.f32.mrb[132].mxu0  ;;  %v2548_v28 = vpop.f32.mrb[107].mxu1 }
 0x4b3   : > { %v4209_v20 = vpop.f32.mrb[133].mxu0  ;;  %v2549_v51 = vadd.f32 %v2548_v28, %v2416_v18  ;;  %v2584_v33 = vmax.f32 %v2546_v24, 0.0 }
 0x4b4   : > { %v4211_v11 = vpop.f32.mrb[134].mxu0 }
 0x4b5   : > { %v4212_v1 = vpop.f32.mrb[135].mxu0  ;;  %v2585_v50 = vmax.f32 %v2549_v51, 0.0 }
 0x4b7   : > { %3776 = vmatmul.mubr.msk.bf16.gmra.mrb[136].mxu1 %vm6492_vm4, %v2617_v22  ;;  %v2594_v17 = vpack.c.bf16 %v2585_v50, %v2584_v33  ;;  %v4452_v36 = vpop.f32.mrb[108].mxu1 }
 0x4b8   : > { %v2559_v34 = vpop.f32.mrb[109].mxu1 }
 0x4b9   : > { %v2618_v62 = vrot.slane %v2594_v17, 7  ;;  %v2668_v31 = vrot.slane %v2594_v17, 1  ;;  %2987 = vmatprep.mubr.bf16.mxu1 %v2594_v17  ;;  %v4453_v16 = vpop.f32.mrb[110].mxu1 }
 0x4ba   : > { %v4214_v21 = vpop.f32.mrb[136].mxu0  ;;  %v2561_v61 = vpop.f32.mrb[111].mxu1 }
 0x4bb   : > { %v4215_v45 = vpop.f32.mrb[137].mxu0  ;;  %v2619_v42 = vsel %vm1431_vm6, %v2616_v48, %v2618_v62  ;;  %v2669_v10 = vsel %vm2654_vm12, %v2666_v8, %v2668_v31  ;;  %v2679_v43 = vsel %vm2654_vm12, %v2668_v31, 0  ;;  %v4783_v62 = vld [vmem:[%s5624_s29 + $0x10] sm:$0xff]   ;;  %v4784_v61 = vld [vmem:[%s5624_s29 + $0x18] sm:$0xff]  }
 0x4bc   : > { %v4217_v35 = vpop.f32.mrb[138].mxu0  ;;  %v3097_v31 = vunpack.c.l.bf16 %v4783_v62  ;;  %v3098_v16 = vunpack.c.h.bf16 %v4783_v62 }
 0x4bd   : > { %v4218_v40 = vpop.f32.mrb[139].mxu0 }
 0x4bf   : > { %3777 = vmatmul.mubr.msk.bf16.gmra.mrb[140].mxu1 %vm6492_vm4, %v2619_v42 }
 0x4c0   : > { %4482 = vmatprep.mubr.msk.bf16.mxu1 %vm6516_vm3, %v2669_v10 }
 0x4c7   : > { %4483 = vmatmul.mubr.msk.bf16.vlgmr.msra.gmra.mrb[144].mxu1 %vm6516_vm3, %v2679_v43  ;;  %v3099_v43 = vunpack.c.l.bf16 %v4784_v61 }
 0x551   : > { %v4258_v3 = vpop.f32.mrb[112].mxu1 }
 0x552   : > { %v4259_v12 = vpop.f32.mrb[113].mxu1 }
 0x553   : > { %v4260_v41 = vadd.f32 %v4259_v12, %v4258_v3  ;;  %v4261_v0 = vpop.f32.mrb[114].mxu1 }
 0x554   : > { %v4262_v39 = vpop.f32.mrb[115].mxu1 }
 0x555   : > { %v4263_v47 = vadd.f32 %v4262_v39, %v4261_v0  ;;  %v2934_v37 = vadd.f32 %v4260_v41, %v6594_v44 }
 0x557   : > { %v2937_v29 = vadd.f32 %v4263_v47, %v6594_v44 }
 0x562   : > { %v4264_v19 = vpop.f32.mrb[116].mxu1 }
 0x563   : > { %v4265_v4 = vpop.f32.mrb[117].mxu1  ;;  %v4472_v13 = vpop.f32.mrb[140].mxu0 }
 0x564   : > { %v4266_v46 = vadd.f32 %v4265_v4, %v4264_v19  ;;  %v4267_v56 = vpop.f32.mrb[118].mxu1  ;;  %v3030_v55 = vpop.f32.mrb[141].mxu0  ;;  %v3100_v19 = vunpack.c.h.bf16 %v4784_v61 }
 0x565   : > { %v3031_v54 = vadd.f32 %v3030_v55, %v2934_v37  ;;  %v4268_v52 = vpop.f32.mrb[119].mxu1  ;;  %v4473_v14 = vpop.f32.mrb[142].mxu0 }
 0x566   : > { %v2942_v6 = vadd.f32 %v4266_v46, %v6594_v44  ;;  %v4269_v53 = vadd.f32 %v4268_v52, %v4267_v56  ;;  %v3033_v48 = vpop.f32.mrb[143].mxu0 }
 0x567   : > { %v3109_v8 = vadd.f32 %v3093_v15, %v3031_v54  ;;  %v3034_v7 = vadd.f32 %v3033_v48, %v2937_v29 }
 0x568   : > { %v3039_v63 = vadd.f32 %v4472_v13, %v2942_v6  ;;  %v2945_v30 = vadd.f32 %v4269_v53, %v6594_v44 }
 0x569   : > { %v3110_v2 = vadd.f32 %v3094_v38, %v3034_v7  ;;  %v3125_v22 = vmax.f32 %v3109_v8, 0.0 }
 0x56a   : > { %v3111_v60 = vadd.f32 %v3095_v25, %v3039_v63  ;;  %v3042_v26 = vadd.f32 %v4473_v14, %v2945_v30  ;;  %v4270_v57 = vpop.f32.mrb[120].mxu1  ;;  %v4785_v63 = vld [vmem:[%s5624_s29 + $0x20] sm:$0xff]  }
 0x56b   : > { %v3126_v59 = vmax.f32 %v3110_v2, 0.0  ;;  %v4271_v58 = vpop.f32.mrb[121].mxu1  ;;  %v3101_v30 = vunpack.c.l.bf16 %v4785_v63 }
 0x56c   : > { %v3112_v32 = vadd.f32 %v3096_v27, %v3042_v26  ;;  %v4272_v24 = vadd.f32 %v4271_v58, %v4270_v57  ;;  %v4273_v23 = vpop.f32.mrb[122].mxu1  ;;  %v3127_v28 = vmax.f32 %v3111_v60, 0.0  ;;  %v3102_v58 = vunpack.c.h.bf16 %v4785_v63 }
 0x56d   : > { %v3832_v9 = vpack.c.bf16 %v3126_v59, %v3125_v22  ;;  %v4274_v18 = vpop.f32.mrb[123].mxu1 }
 0x56e   : > { %v3128_v20 = vmax.f32 %v3112_v32, 0.0  ;;  %v4275_v51 = vadd.f32 %v4274_v18, %v4273_v23  ;;  %v2950_v17 = vadd.f32 %v4272_v24, %v6594_v44  ;;  %v4786_v24 = vld [vmem:[%s5624_s29 + $0x28] sm:$0xff]  }
 0x56f   : > { %3833 = vst [vmem:[%s5799_s22] sm:$0xff] %v3832_v9   ;;  %v3103_v23 = vunpack.c.l.bf16 %v4786_v24 }
 0x570   : > { %v3837_v11 = vpack.c.bf16 %v3128_v20, %v3127_v28  ;;  %v2953_v10 = vadd.f32 %v4275_v51, %v6594_v44 }
 0x572   : > { %3869 = vst [vmem:[%s5799_s22 + $0x8] sm:$0xff] %v3837_v11   ;;  %v4276_v1 = vpop.f32.mrb[124].mxu1 }
 0x573   : > { %v4277_v33 = vpop.f32.mrb[125].mxu1  ;;  %v4476_v50 = vpop.f32.mrb[144].mxu0 }
 0x574   : > { %v4278_v21 = vadd.f32 %v4277_v33, %v4276_v1  ;;  %v4279_v36 = vpop.f32.mrb[126].mxu1  ;;  %v3046_v45 = vpop.f32.mrb[145].mxu0  ;;  %v3104_v1 = vunpack.c.h.bf16 %v4786_v24 }
 0x575   : > { %v3047_v34 = vadd.f32 %v3046_v45, %v2950_v17  ;;  %v4280_v35 = vpop.f32.mrb[127].mxu1  ;;  %v4477_v42 = vpop.f32.mrb[146].mxu0 }
 0x576   : > { %v2958_v40 = vadd.f32 %v4278_v21, %v6594_v44  ;;  %v4281_v3 = vadd.f32 %v4280_v35, %v4279_v36  ;;  %v3049_v12 = vpop.f32.mrb[147].mxu0 }
 0x577   : > { %v3113_v41 = vadd.f32 %v3097_v31, %v3047_v34  ;;  %v3050_v0 = vadd.f32 %v3049_v12, %v2953_v10 }
 0x578   : > { %v3055_v39 = vadd.f32 %v4476_v50, %v2958_v40  ;;  %v2961_v47 = vadd.f32 %v4281_v3, %v6594_v44 }
 0x579   : > { %v3114_v4 = vadd.f32 %v3098_v16, %v3050_v0  ;;  %v3129_v15 = vmax.f32 %v3113_v41, 0.0 }
 0x57a   : > { %v3115_v13 = vadd.f32 %v3099_v43, %v3055_v39  ;;  %v3058_v37 = vadd.f32 %v4477_v42, %v2961_v47  ;;  %v4282_v5 = vpop.f32.mrb[128].mxu1 }
 0x57b   : > { %v3130_v46 = vmax.f32 %v3114_v4, 0.0  ;;  %v4283_v56 = vpop.f32.mrb[129].mxu1  ;;  %v4787_v4 = vld [vmem:[%s5624_s29 + $0x38] sm:$0xff]  }
 0x57c   : > { %v3116_v55 = vadd.f32 %v3100_v19, %v3058_v37  ;;  %v4284_v54 = vadd.f32 %v4283_v56, %v4282_v5  ;;  %v4285_v52 = vpop.f32.mrb[130].mxu1  ;;  %v3131_v38 = vmax.f32 %v3115_v13, 0.0  ;;  %v3107_v13 = vunpack.c.l.bf16 %v4787_v4 }
 0x57d   : > { %v3842_v14 = vpack.c.bf16 %v3130_v46, %v3129_v15  ;;  %v4286_v29 = vpop.f32.mrb[131].mxu1  ;;  %v4788_v15 = vld [vmem:[%s5624_s29 + $0x30] sm:$0xff]   ;;  %s3806_s29 = sshll.u32 %s3235_s8, 6 }
 0x57e   : > { %v3132_v6 = vmax.f32 %v3116_v55, 0.0  ;;  %v4287_v49 = vadd.f32 %v4286_v29, %v4285_v52  ;;  %v2966_v7 = vadd.f32 %v4284_v54, %v6594_v44  ;;  %v3105_v46 = vunpack.c.l.bf16 %v4788_v15  ;;  %s6632_s21 = scalar_lea.hbm %s6891_s5, %s3806_s29 }
 0x57f   : > { %3870 = vst [vmem:[%s5799_s22 + $0x10] sm:$0xff] %v3842_v14   ;;  %v3108_v52 = vunpack.c.h.bf16 %v4787_v4 }
 0x580   : > { %v3847_v25 = vpack.c.bf16 %v3132_v6, %v3131_v38  ;;  %v2969_v59 = vadd.f32 %v4287_v49, %v6594_v44  ;;  %v3106_v6 = vunpack.c.h.bf16 %v4788_v15 }
 0x582   : > { %3871 = vst [vmem:[%s5799_s22 + $0x18] sm:$0xff] %v3847_v25   ;;  %v4288_v53 = vpop.f32.mrb[132].mxu1 }
 0x583   : > { %v4289_v48 = vpop.f32.mrb[133].mxu1  ;;  %v4480_v8 = vpop.f32.mrb[148].mxu0 }
 0x584   : > { %v4290_v27 = vadd.f32 %v4289_v48, %v4288_v53  ;;  %v4291_v2 = vpop.f32.mrb[134].mxu1  ;;  %v3062_v60 = vpop.f32.mrb[149].mxu0 }
 0x585   : > { %v3063_v26 = vadd.f32 %v3062_v60, %v2966_v7  ;;  %v4292_v57 = vpop.f32.mrb[135].mxu1  ;;  %v4481_v22 = vpop.f32.mrb[150].mxu0 }
 0x586   : > { %v2974_v32 = vadd.f32 %v4290_v27, %v6594_v44  ;;  %v4293_v9 = vadd.f32 %v4292_v57, %v4291_v2  ;;  %v3065_v18 = vpop.f32.mrb[151].mxu0 }
 0x587   : > { %v3117_v28 = vadd.f32 %v3101_v30, %v3063_v26  ;;  %v3066_v20 = vadd.f32 %v3065_v18, %v2969_v59 }
 0x588   : > { %v3071_v51 = vadd.f32 %v4480_v8, %v2974_v32  ;;  %v2977_v11 = vadd.f32 %v4293_v9, %v6594_v44 }
 0x589   : > { %v3118_v33 = vadd.f32 %v3102_v58, %v3066_v20  ;;  %v3133_v31 = vmax.f32 %v3117_v28, 0.0 }
 0x58a   : > { %v3119_v50 = vadd.f32 %v3103_v23, %v3071_v51  ;;  %v3074_v17 = vadd.f32 %v4481_v22, %v2977_v11  ;;  %v4294_v62 = vpop.f32.mrb[136].mxu1 }
 0x58b   : > { %v3134_v21 = vmax.f32 %v3118_v33, 0.0  ;;  %v4295_v36 = vpop.f32.mrb[137].mxu1 }
 0x58c   : > { %v3120_v45 = vadd.f32 %v3104_v1, %v3074_v17  ;;  %v4296_v34 = vadd.f32 %v4295_v36, %v4294_v62  ;;  %v4297_v35 = vpop.f32.mrb[138].mxu1  ;;  %v3135_v16 = vmax.f32 %v3119_v50, 0.0 }
 0x58d   : > { %v3852_v42 = vpack.c.bf16 %v3134_v21, %v3133_v31  ;;  %v4298_v10 = vpop.f32.mrb[139].mxu1 }
 0x58e   : > { %v3136_v40 = vmax.f32 %v3120_v45, 0.0  ;;  %v4299_v61 = vadd.f32 %v4298_v10, %v4297_v35  ;;  %v2982_v5 = vadd.f32 %v4296_v34, %v6594_v44 }
 0x58f   : > { %3872 = vst [vmem:[%s5799_s22 + $0x20] sm:$0xff] %v3852_v42  }
 0x590   : > { %v3857_v43 = vpack.c.bf16 %v3136_v40, %v3135_v16  ;;  %v2985_v38 = vadd.f32 %v4299_v61, %v6594_v44 }
 0x592   : > { %3873 = vst [vmem:[%s5799_s22 + $0x28] sm:$0xff] %v3857_v43   ;;  %v4300_v3 = vpop.f32.mrb[140].mxu1 }
 0x593   : > { %v4301_v12 = vpop.f32.mrb[141].mxu1 }
 0x594   : > { %v4302_v41 = vadd.f32 %v4301_v12, %v4300_v3  ;;  %v4303_v0 = vpop.f32.mrb[142].mxu1 }
 0x595   : > { %v4304_v39 = vpop.f32.mrb[143].mxu1 }
 0x596   : > { %v4305_v47 = vadd.f32 %v4304_v39, %v4303_v0  ;;  %v2990_v19 = vadd.f32 %v4302_v41, %v6594_v44 }
 0x598   : > { %v2993_v54 = vadd.f32 %v4305_v47, %v6594_v44 }
 0x59a   : > { %v4484_v37 = vpop.f32.mrb[144].mxu1 }
 0x59b   : > { %v3087_v56 = vadd.f32 %v4484_v37, %v2990_v19  ;;  %v3078_v55 = vpop.f32.mrb[145].mxu1 }
 0x59c   : > { %v3079_v14 = vadd.f32 %v3078_v55, %v2982_v5  ;;  %v4485_v29 = vpop.f32.mrb[146].mxu1 }
 0x59d   : > { %v3123_v49 = vadd.f32 %v3107_v13, %v3087_v56  ;;  %v3090_v25 = vadd.f32 %v4485_v29, %v2993_v54  ;;  %v3081_v53 = vpop.f32.mrb[147].mxu1 }
 0x59e   : > { %v3121_v48 = vadd.f32 %v3105_v46, %v3079_v14  ;;  %v3082_v8 = vadd.f32 %v3081_v53, %v2985_v38 }
 0x59f   : > { %v3124_v7 = vadd.f32 %v3108_v52, %v3090_v25  ;;  %v3139_v30 = vmax.f32 %v3123_v49, 0.0 }
 0x5a0   : > { %v3122_v63 = vadd.f32 %v3106_v6, %v3082_v8  ;;  %v3137_v2 = vmax.f32 %v3121_v48, 0.0 }
 0x5a1   : > { %v3140_v27 = vmax.f32 %v3124_v7, 0.0 }
 0x5a2   : > { %v3138_v60 = vmax.f32 %v3122_v63, 0.0 }
 0x5a3   : > { %v3867_v44 = vpack.c.bf16 %v3140_v27, %v3139_v30 }
 0x5a4   : > { %v3862_v26 = vpack.c.bf16 %v3138_v60, %v3137_v2 }
 0x5a5   : > { %3875 = vst [vmem:[%s5799_s22 + $0x38] sm:$0xff] %v3867_v44  }
 0x5a6   : > { %3874 = vst [vmem:[%s5799_s22 + $0x30] sm:$0xff] %v3862_v26  }
 0x5a7   : > { %5104 = shalt.err (!%p5101_p8)
}
 0x5a8   : > { %s5105_s16 = scalar_lea.hbm %s6632_s21, 1024  ;;  %s5109_s22 = scalar_lea.hbm %s6891_s5, 4096 }
 0x5a9   : > { %p5106_p9 = scmp.ne.s32.totalorder %s6632_s21, %s5105_s16  ;;  %p5110_p12 = scmp.lt.u32.totalorder %s6632_s21, %s6891_s5 }
 0x5aa   : > { %p5111_p13 = scmp.lt.u32.totalorder %s5109_s22, %s5105_s16  ;;  %p5113_p3 = scmp.lt.u32.totalorder %s5105_s16, %s6632_s21 }
 0x5ab   : > { %p5107_p1 = pnand %p5106_p9, %p6892_p4 }
 0x5ac   : > { %p5112_p0 = por %p5111_p13, %p5110_p12 }
 0x5ad   : > { %p5108_p11 = pneg %p5107_p1 }
 0x5ae   : > { %p5114_p2 = por %p5113_p3, %p5112_p0 }
 0x5b0   : > { %p5115_p10 = pnand %p5114_p2, %p5108_p11 }
 0x5b2   : > { %5118 = shalt.err (!%p5115_p10)
}
 0x5b3   : > { %s5227_s29 = smov 64   ;;  %s5228_s9 = smov 4  }
 0x5b4   : > { %4536 = dma.vmem_to_hbm [thread:$0]  (%p6892_p4), %s6634_s4, 1024, %s6632_s21, %s3222_s1, %s5227_s29, %s5227_s29, %s5228_s9  }
 0x5b5 PF: > { %p4588_p7 = scmp.ge.s32.totalorder %s5209_s20, 2  ;;  %s3253_s25 = sand.u32 1, %s5181_s13  }
 0x5b6   : > { %p6893_p5 = scmp.ne.s32.totalorder %s6763_s24, 0  ;;  %s3254_s10 = scalar_lea.sflag [#allocation7], %s3253_s25 }
 0x5b8   : > { %p4568_p6 = pnand %p4588_p7, %p6893_p5 }
 0x5ba   : > { %5176 = dma.done.wait (!%p4568_p6), %s3254_s10, 1024  }
 0x5bb   : > { %5178 = vsyncadd (!%p4568_p6), %s3254_s10, 4294966272  ;;  %s30_s20 = sadd.s32 1, %s5209_s20   ;;  %s6894_s13 = smov %s5185_s14 }
 0x5bc   : > { %p27_p8 = scmp.ge.s32.totalorder %s30_s20, 6   ;;  %s6895_s14 = smov %s5189_s15 }
 0x5bd   : > { %s6896_s15 = smov %s5566_s0  ;;  %s6897_s16 = smov %s5201_s18 }
 0x5be   : > { %s6898_s17 = smov %s5205_s19  ;;  %s6899_s18 = smov %s6902_s23 }
 0x5bf   : > { %s6900_s19 = smov %s6906_s26  ;;  %29 = sbr.rel (!%p27_p8) target bundleno = 23 (0x17), region = 145 }
 0x5c6   :  { %3259 = vsyncpa [#allocation6], 1 }
 0x5c7   :  { %3261 = vsyncpa [#allocation6 + $0x1], 1 }
 0x5c8   :  { %3262 = vsyncpa [#allocation9], 1 }
 0x5c9   :  { %3263 = vsyncpa [#allocation12], 1 }
 0x5ca   :  { %3264 = vsyncpa [#allocation15], 1 }
 0x5cb   :  { %3265 = vsyncpa [#allocation18], 1 }
 0x5cc   :  { %3266 = vsyncpa [#allocation7], 1 }
 0x5cd   :  { %3268 = vsyncpa [#allocation7 + $0x1], 1 }
 0x5ce   :  { %3269 = vsyncmov [#allocation4] }
 0x5d1   :  { %s3270_s24 = vpop.sfrf %3269 }
 0x5d2   :  { %p3809_p4 = scmp.ne.s32.totalorder %s3270_s24, 0 }
 0x5d4   :  { %3274 = shalt.err (%p3809_p4)  }
 0x5d5   :  { %3276 = vsyncmov [#allocation4 + $0x1] }
 0x5d8   :  { %s3277_s0 = vpop.sfrf %3276 }
 0x5d9   :  { %p3810_p9 = scmp.ne.s32.totalorder %s3277_s0, 0 }
 0x5db   :  { %3281 = shalt.err (%p3810_p9)  }

</bundles_post_ra>
